<compile_context>
chip_gen: v5e
topology: v5e:2x2
jax: 0.10.0
libtpu: 0.0.40
codegen_flags: <defaults>
</compile_context>

<pallas_src>
import functools

import jax
import jax.numpy as jnp
from jax.experimental import pallas as pl
from jax.experimental.pallas import tpu as pltpu


# Offsets into the flat parameter vector (45 f32 scalars).
_W1, _B1 = 0, 16     # w1[k, j] = p[4*k + j],      b1[j] = p[16 + j]
_W2, _B2 = 20, 36    # w2[k, j] = p[20 + 4*k + j], b2[j] = p[36 + j]
_W4, _B4 = 40, 44    # w4[k]    = p[40 + k],       b4    = p[44]
_LANES = 128


def _sigmoid(z):
    # exp and the approximate reciprocal both run on the EUP slot.
    return pl.reciprocal(1.0 + jnp.exp(-z), approx=True)


def ff_kernel(p_ref, x_ref, o_ref):
    # p_ref: (45,) f32 in SMEM (whole flat parameter vector)
    # x_ref: (4, tile_rows, 128) f32 in VMEM -- feature k, batch on (sublane, lane)
    # o_ref: (tile_rows, 128) f32 in VMEM
    x = [x_ref[k] for k in range(4)]          # four dense (tile_rows, 128) slabs

    # fc1 + sigmoid: h1[j] = sigmoid(sum_k x[k] * w1[k, j] + b1[j])
    h1 = []
    for j in range(4):
        s = x[0] * p_ref[_W1 + j]
        for k in range(1, 4):
            s = s + x[k] * p_ref[_W1 + 4 * k + j]
        h1.append(_sigmoid(s + p_ref[_B1 + j]))

    # fc2 + sigmoid
    h2 = []
    for j in range(4):
        s = h1[0] * p_ref[_W2 + j]
        for k in range(1, 4):
            s = s + h1[k] * p_ref[_W2 + 4 * k + j]
        h2.append(_sigmoid(s + p_ref[_B2 + j]))

    # fc4 + sigmoid -> single dense output slab (unmasked wide stores)
    s = h2[0] * p_ref[_W4 + 0]
    for k in range(1, 4):
        s = s + h2[k] * p_ref[_W4 + k]
    o_ref[...] = _sigmoid(s + p_ref[_B4]).astype(o_ref.dtype)


def pack_params(params):
    w1, b1, w2, b2, w4, b4 = params
    return jnp.concatenate([
        w1.reshape(-1), b1.reshape(-1),
        w2.reshape(-1), b2.reshape(-1),
        w4.reshape(-1), b4.reshape(-1),
    ]).astype(jnp.float32)


@functools.partial(jax.jit, static_argnames=("tile_rows",))
def ff_forward(x, params, *, tile_rows=128):
    """x: (B, 4) float32 -> (B, 1) float32."""
    B = x.shape[0]
    tile_elems = tile_rows * _LANES
    n_tiles = pl.cdiv(B, tile_elems)
    b_pad = n_tiles * tile_elems
    rows = b_pad // _LANES

    # Batch onto (sublane, lane): (B, 4) -> (4, B_pad) -> (4, rows, 128).
    xt = jnp.pad(x.T, ((0, 0), (0, b_pad - B))).reshape(4, rows, _LANES)
    flat_p = pack_params(params)                               # (45,)

    out = pl.pallas_call(
        ff_kernel,
        out_shape=jax.ShapeDtypeStruct((rows, _LANES), jnp.float32),
        grid=(n_tiles,),
        in_specs=[
            # Parameters: whole 45-scalar vector pinned in SMEM across all tiles.
            pl.BlockSpec(memory_space=pltpu.MemorySpace.SMEM),
            # Input: one batch tile per grid step (double-buffered by Pallas).
            pl.BlockSpec((4, tile_rows, _LANES), lambda i: (0, i, 0)),
        ],
        out_specs=pl.BlockSpec((tile_rows, _LANES), lambda i: (i, 0)),
        compiler_params=pltpu.CompilerParams(
            dimension_semantics=("parallel",),        # shard batch tiles across TCs
            vmem_limit_bytes=32 * 1024 * 1024,        # headroom even on v7x (64 MiB)
        ),
    )(flat_p, xt)                                              # (rows, 128)

    return out.reshape(b_pad)[:B].reshape(B, 1)


def init_params(key):
    """fc1: Linear(4,4), fc2: Linear(4,4), fc4: Linear(4,1); weights stored (in, out)."""
    k1, k2, k3, k4, k5, k6 = jax.random.split(key, 6)

    def uniform(k, shape, fan_in):
        bound = 1.0 / jnp.sqrt(fan_in)
        return jax.random.uniform(k, shape, jnp.float32, -bound, bound)

    w1 = uniform(k1, (4, 4), 4.0)
    b1 = uniform(k2, (4,), 4.0)
    w2 = uniform(k3, (4, 4), 4.0)
    b2 = uniform(k4, (4,), 4.0)
    w4 = uniform(k5, (4, 1), 4.0)
    b4 = uniform(k6, (1,), 4.0)
    return (w1, b1, w2, b2, w4, b4)


def ff_reference(x, params):
    w1, b1, w2, b2, w4, b4 = params
    h1 = jax.nn.sigmoid(x @ w1 + b1)
    h2 = jax.nn.sigmoid(h1 @ w2 + b2)
    return jax.nn.sigmoid(h2 @ w4 + b4)


if __name__ == "__main__":
    key = jax.random.PRNGKey(0)
    k_params, k_x1, k_x2 = jax.random.split(key, 3)

    params = init_params(k_params)

    # Small batch (single padded tile), matching the module's 4-feature rows.
    x_small = jax.random.normal(k_x1, (8, 4), jnp.float32)
    out_small = jax.block_until_ready(ff_forward(x_small, params))
    ref_small = ff_reference(x_small, params)
    assert out_small.shape == (8, 1), out_small.shape
    # approx-mode EUP reciprocal inside the in-kernel sigmoid -> slightly wider tol.
    assert jnp.allclose(out_small, ref_small, atol=5e-3, rtol=0.0), (
        float(jnp.max(jnp.abs(out_small - ref_small))))

    # Larger, non-tile-multiple batch spanning several grid steps (smaller tile).
    x_big = jax.random.normal(k_x2, (10000, 4), jnp.float32)
    out_big = jax.block_until_ready(ff_forward(x_big, params, tile_rows=32))
    ref_big = ff_reference(x_big, params)
    assert out_big.shape == (10000, 1), out_big.shape
    assert jnp.allclose(out_big, ref_big, atol=5e-3, rtol=0.0), (
        float(jnp.max(jnp.abs(out_big - ref_big))))

    print("KERNEL_OK")
</pallas_src>

<mosaic_0001>
module attributes {stable_mosaic.version = 11 : i64} {
  func.func @ff_kernel(%arg0: i32, %arg1: memref<45xf32, #tpu.memory_space<smem>>, %arg2: memref<4x128x128xf32, #tpu.memory_space<vmem>>, %arg3: memref<128x128xf32, #tpu.memory_space<vmem>>) attributes {dimension_semantics = [#tpu.dimension_semantics<parallel>], iteration_bounds = array<i64: 1>, scalar_prefetch = 0 : i64, scratch_operands = 0 : i64, tpu.core_type = #tpu.core_type<tc>, window_params = [{transform_indices = @transform_0, window_bounds = array<i64: 45>}, {transform_indices = @transform_1, window_bounds = array<i64: 4, 128, 128>}, {transform_indices = @transform_2, window_bounds = array<i64: 128, 128>}]} {
    %c0 = arith.constant 0 : index
    %c0_0 = arith.constant 0 : index
    %c0_1 = arith.constant 0 : index
    %0 = vector.load %arg2[%c0, %c0_0, %c0_1] : memref<4x128x128xf32, #tpu.memory_space<vmem>>, vector<1x128x128xf32>
    %1 = vector.shape_cast %0 : vector<1x128x128xf32> to vector<128x128xf32>
    %c1 = arith.constant 1 : index
    %c0_2 = arith.constant 0 : index
    %c0_3 = arith.constant 0 : index
    %2 = vector.load %arg2[%c1, %c0_2, %c0_3] : memref<4x128x128xf32, #tpu.memory_space<vmem>>, vector<1x128x128xf32>
    %3 = vector.shape_cast %2 : vector<1x128x128xf32> to vector<128x128xf32>
    %c2 = arith.constant 2 : index
    %c0_4 = arith.constant 0 : index
    %c0_5 = arith.constant 0 : index
    %4 = vector.load %arg2[%c2, %c0_4, %c0_5] : memref<4x128x128xf32, #tpu.memory_space<vmem>>, vector<1x128x128xf32>
    %5 = vector.shape_cast %4 : vector<1x128x128xf32> to vector<128x128xf32>
    %c3 = arith.constant 3 : index
    %c0_6 = arith.constant 0 : index
    %c0_7 = arith.constant 0 : index
    %6 = vector.load %arg2[%c3, %c0_6, %c0_7] : memref<4x128x128xf32, #tpu.memory_space<vmem>>, vector<1x128x128xf32>
    %7 = vector.shape_cast %6 : vector<1x128x128xf32> to vector<128x128xf32>
    %c0_8 = arith.constant 0 : index
    %8 = memref.load %arg1[%c0_8] : memref<45xf32, #tpu.memory_space<smem>>
    %9 = vector.broadcast %8 : f32 to vector<128x128xf32>
    %10 = arith.mulf %1, %9 : vector<128x128xf32>
    %c4 = arith.constant 4 : index
    %11 = memref.load %arg1[%c4] : memref<45xf32, #tpu.memory_space<smem>>
    %12 = vector.broadcast %11 : f32 to vector<128x128xf32>
    %13 = arith.mulf %3, %12 : vector<128x128xf32>
    %14 = arith.addf %10, %13 : vector<128x128xf32>
    %c8 = arith.constant 8 : index
    %15 = memref.load %arg1[%c8] : memref<45xf32, #tpu.memory_space<smem>>
    %16 = vector.broadcast %15 : f32 to vector<128x128xf32>
    %17 = arith.mulf %5, %16 : vector<128x128xf32>
    %18 = arith.addf %14, %17 : vector<128x128xf32>
    %c12 = arith.constant 12 : index
    %19 = memref.load %arg1[%c12] : memref<45xf32, #tpu.memory_space<smem>>
    %20 = vector.broadcast %19 : f32 to vector<128x128xf32>
    %21 = arith.mulf %7, %20 : vector<128x128xf32>
    %22 = arith.addf %18, %21 : vector<128x128xf32>
    %c16 = arith.constant 16 : index
    %23 = memref.load %arg1[%c16] : memref<45xf32, #tpu.memory_space<smem>>
    %24 = vector.broadcast %23 : f32 to vector<128x128xf32>
    %25 = arith.addf %22, %24 : vector<128x128xf32>
    %cst = arith.constant 0.000000e+00 : f32
    %26 = vector.broadcast %cst : f32 to vector<128x128xf32>
    %27 = arith.subf %26, %25 : vector<128x128xf32>
    %28 = math.exp %27 : vector<128x128xf32>
    %cst_9 = arith.constant 1.000000e+00 : f32
    %29 = vector.broadcast %cst_9 : f32 to vector<128x128xf32>
    %30 = arith.addf %29, %28 : vector<128x128xf32>
    %31 = tpu.reciprocal %30 {approx = true} : vector<128x128xf32> -> vector<128x128xf32>
    %c1_10 = arith.constant 1 : index
    %32 = memref.load %arg1[%c1_10] : memref<45xf32, #tpu.memory_space<smem>>
    %33 = vector.broadcast %32 : f32 to vector<128x128xf32>
    %34 = arith.mulf %1, %33 : vector<128x128xf32>
    %c5 = arith.constant 5 : index
    %35 = memref.load %arg1[%c5] : memref<45xf32, #tpu.memory_space<smem>>
    %36 = vector.broadcast %35 : f32 to vector<128x128xf32>
    %37 = arith.mulf %3, %36 : vector<128x128xf32>
    %38 = arith.addf %34, %37 : vector<128x128xf32>
    %c9 = arith.constant 9 : index
    %39 = memref.load %arg1[%c9] : memref<45xf32, #tpu.memory_space<smem>>
    %40 = vector.broadcast %39 : f32 to vector<128x128xf32>
    %41 = arith.mulf %5, %40 : vector<128x128xf32>
    %42 = arith.addf %38, %41 : vector<128x128xf32>
    %c13 = arith.constant 13 : index
    %43 = memref.load %arg1[%c13] : memref<45xf32, #tpu.memory_space<smem>>
    %44 = vector.broadcast %43 : f32 to vector<128x128xf32>
    %45 = arith.mulf %7, %44 : vector<128x128xf32>
    %46 = arith.addf %42, %45 : vector<128x128xf32>
    %c17 = arith.constant 17 : index
    %47 = memref.load %arg1[%c17] : memref<45xf32, #tpu.memory_space<smem>>
    %48 = vector.broadcast %47 : f32 to vector<128x128xf32>
    %49 = arith.addf %46, %48 : vector<128x128xf32>
    %cst_11 = arith.constant 0.000000e+00 : f32
    %50 = vector.broadcast %cst_11 : f32 to vector<128x128xf32>
    %51 = arith.subf %50, %49 : vector<128x128xf32>
    %52 = math.exp %51 : vector<128x128xf32>
    %cst_12 = arith.constant 1.000000e+00 : f32
    %53 = vector.broadcast %cst_12 : f32 to vector<128x128xf32>
    %54 = arith.addf %53, %52 : vector<128x128xf32>
    %55 = tpu.reciprocal %54 {approx = true} : vector<128x128xf32> -> vector<128x128xf32>
    %c2_13 = arith.constant 2 : index
    %56 = memref.load %arg1[%c2_13] : memref<45xf32, #tpu.memory_space<smem>>
    %57 = vector.broadcast %56 : f32 to vector<128x128xf32>
    %58 = arith.mulf %1, %57 : vector<128x128xf32>
    %c6 = arith.constant 6 : index
    %59 = memref.load %arg1[%c6] : memref<45xf32, #tpu.memory_space<smem>>
    %60 = vector.broadcast %59 : f32 to vector<128x128xf32>
    %61 = arith.mulf %3, %60 : vector<128x128xf32>
    %62 = arith.addf %58, %61 : vector<128x128xf32>
    %c10 = arith.constant 10 : index
    %63 = memref.load %arg1[%c10] : memref<45xf32, #tpu.memory_space<smem>>
    %64 = vector.broadcast %63 : f32 to vector<128x128xf32>
    %65 = arith.mulf %5, %64 : vector<128x128xf32>
    %66 = arith.addf %62, %65 : vector<128x128xf32>
    %c14 = arith.constant 14 : index
    %67 = memref.load %arg1[%c14] : memref<45xf32, #tpu.memory_space<smem>>
    %68 = vector.broadcast %67 : f32 to vector<128x128xf32>
    %69 = arith.mulf %7, %68 : vector<128x128xf32>
    %70 = arith.addf %66, %69 : vector<128x128xf32>
    %c18 = arith.constant 18 : index
    %71 = memref.load %arg1[%c18] : memref<45xf32, #tpu.memory_space<smem>>
    %72 = vector.broadcast %71 : f32 to vector<128x128xf32>
    %73 = arith.addf %70, %72 : vector<128x128xf32>
    %cst_14 = arith.constant 0.000000e+00 : f32
    %74 = vector.broadcast %cst_14 : f32 to vector<128x128xf32>
    %75 = arith.subf %74, %73 : vector<128x128xf32>
    %76 = math.exp %75 : vector<128x128xf32>
    %cst_15 = arith.constant 1.000000e+00 : f32
    %77 = vector.broadcast %cst_15 : f32 to vector<128x128xf32>
    %78 = arith.addf %77, %76 : vector<128x128xf32>
    %79 = tpu.reciprocal %78 {approx = true} : vector<128x128xf32> -> vector<128x128xf32>
    %c3_16 = arith.constant 3 : index
    %80 = memref.load %arg1[%c3_16] : memref<45xf32, #tpu.memory_space<smem>>
    %81 = vector.broadcast %80 : f32 to vector<128x128xf32>
    %82 = arith.mulf %1, %81 : vector<128x128xf32>
    %c7 = arith.constant 7 : index
    %83 = memref.load %arg1[%c7] : memref<45xf32, #tpu.memory_space<smem>>
    %84 = vector.broadcast %83 : f32 to vector<128x128xf32>
    %85 = arith.mulf %3, %84 : vector<128x128xf32>
    %86 = arith.addf %82, %85 : vector<128x128xf32>
    %c11 = arith.constant 11 : index
    %87 = memref.load %arg1[%c11] : memref<45xf32, #tpu.memory_space<smem>>
    %88 = vector.broadcast %87 : f32 to vector<128x128xf32>
    %89 = arith.mulf %5, %88 : vector<128x128xf32>
    %90 = arith.addf %86, %89 : vector<128x128xf32>
    %c15 = arith.constant 15 : index
    %91 = memref.load %arg1[%c15] : memref<45xf32, #tpu.memory_space<smem>>
    %92 = vector.broadcast %91 : f32 to vector<128x128xf32>
    %93 = arith.mulf %7, %92 : vector<128x128xf32>
    %94 = arith.addf %90, %93 : vector<128x128xf32>
    %c19 = arith.constant 19 : index
    %95 = memref.load %arg1[%c19] : memref<45xf32, #tpu.memory_space<smem>>
    %96 = vector.broadcast %95 : f32 to vector<128x128xf32>
    %97 = arith.addf %94, %96 : vector<128x128xf32>
    %cst_17 = arith.constant 0.000000e+00 : f32
    %98 = vector.broadcast %cst_17 : f32 to vector<128x128xf32>
    %99 = arith.subf %98, %97 : vector<128x128xf32>
    %100 = math.exp %99 : vector<128x128xf32>
    %cst_18 = arith.constant 1.000000e+00 : f32
    %101 = vector.broadcast %cst_18 : f32 to vector<128x128xf32>
    %102 = arith.addf %101, %100 : vector<128x128xf32>
    %103 = tpu.reciprocal %102 {approx = true} : vector<128x128xf32> -> vector<128x128xf32>
    %c20 = arith.constant 20 : index
    %104 = memref.load %arg1[%c20] : memref<45xf32, #tpu.memory_space<smem>>
    %105 = vector.broadcast %104 : f32 to vector<128x128xf32>
    %106 = arith.mulf %31, %105 : vector<128x128xf32>
    %c24 = arith.constant 24 : index
    %107 = memref.load %arg1[%c24] : memref<45xf32, #tpu.memory_space<smem>>
    %108 = vector.broadcast %107 : f32 to vector<128x128xf32>
    %109 = arith.mulf %55, %108 : vector<128x128xf32>
    %110 = arith.addf %106, %109 : vector<128x128xf32>
    %c28 = arith.constant 28 : index
    %111 = memref.load %arg1[%c28] : memref<45xf32, #tpu.memory_space<smem>>
    %112 = vector.broadcast %111 : f32 to vector<128x128xf32>
    %113 = arith.mulf %79, %112 : vector<128x128xf32>
    %114 = arith.addf %110, %113 : vector<128x128xf32>
    %c32 = arith.constant 32 : index
    %115 = memref.load %arg1[%c32] : memref<45xf32, #tpu.memory_space<smem>>
    %116 = vector.broadcast %115 : f32 to vector<128x128xf32>
    %117 = arith.mulf %103, %116 : vector<128x128xf32>
    %118 = arith.addf %114, %117 : vector<128x128xf32>
    %c36 = arith.constant 36 : index
    %119 = memref.load %arg1[%c36] : memref<45xf32, #tpu.memory_space<smem>>
    %120 = vector.broadcast %119 : f32 to vector<128x128xf32>
    %121 = arith.addf %118, %120 : vector<128x128xf32>
    %cst_19 = arith.constant 0.000000e+00 : f32
    %122 = vector.broadcast %cst_19 : f32 to vector<128x128xf32>
    %123 = arith.subf %122, %121 : vector<128x128xf32>
    %124 = math.exp %123 : vector<128x128xf32>
    %cst_20 = arith.constant 1.000000e+00 : f32
    %125 = vector.broadcast %cst_20 : f32 to vector<128x128xf32>
    %126 = arith.addf %125, %124 : vector<128x128xf32>
    %127 = tpu.reciprocal %126 {approx = true} : vector<128x128xf32> -> vector<128x128xf32>
    %c21 = arith.constant 21 : index
    %128 = memref.load %arg1[%c21] : memref<45xf32, #tpu.memory_space<smem>>
    %129 = vector.broadcast %128 : f32 to vector<128x128xf32>
    %130 = arith.mulf %31, %129 : vector<128x128xf32>
    %c25 = arith.constant 25 : index
    %131 = memref.load %arg1[%c25] : memref<45xf32, #tpu.memory_space<smem>>
    %132 = vector.broadcast %131 : f32 to vector<128x128xf32>
    %133 = arith.mulf %55, %132 : vector<128x128xf32>
    %134 = arith.addf %130, %133 : vector<128x128xf32>
    %c29 = arith.constant 29 : index
    %135 = memref.load %arg1[%c29] : memref<45xf32, #tpu.memory_space<smem>>
    %136 = vector.broadcast %135 : f32 to vector<128x128xf32>
    %137 = arith.mulf %79, %136 : vector<128x128xf32>
    %138 = arith.addf %134, %137 : vector<128x128xf32>
    %c33 = arith.constant 33 : index
    %139 = memref.load %arg1[%c33] : memref<45xf32, #tpu.memory_space<smem>>
    %140 = vector.broadcast %139 : f32 to vector<128x128xf32>
    %141 = arith.mulf %103, %140 : vector<128x128xf32>
    %142 = arith.addf %138, %141 : vector<128x128xf32>
    %c37 = arith.constant 37 : index
    %143 = memref.load %arg1[%c37] : memref<45xf32, #tpu.memory_space<smem>>
    %144 = vector.broadcast %143 : f32 to vector<128x128xf32>
    %145 = arith.addf %142, %144 : vector<128x128xf32>
    %cst_21 = arith.constant 0.000000e+00 : f32
    %146 = vector.broadcast %cst_21 : f32 to vector<128x128xf32>
    %147 = arith.subf %146, %145 : vector<128x128xf32>
    %148 = math.exp %147 : vector<128x128xf32>
    %cst_22 = arith.constant 1.000000e+00 : f32
    %149 = vector.broadcast %cst_22 : f32 to vector<128x128xf32>
    %150 = arith.addf %149, %148 : vector<128x128xf32>
    %151 = tpu.reciprocal %150 {approx = true} : vector<128x128xf32> -> vector<128x128xf32>
    %c22 = arith.constant 22 : index
    %152 = memref.load %arg1[%c22] : memref<45xf32, #tpu.memory_space<smem>>
    %153 = vector.broadcast %152 : f32 to vector<128x128xf32>
    %154 = arith.mulf %31, %153 : vector<128x128xf32>
    %c26 = arith.constant 26 : index
    %155 = memref.load %arg1[%c26] : memref<45xf32, #tpu.memory_space<smem>>
    %156 = vector.broadcast %155 : f32 to vector<128x128xf32>
    %157 = arith.mulf %55, %156 : vector<128x128xf32>
    %158 = arith.addf %154, %157 : vector<128x128xf32>
    %c30 = arith.constant 30 : index
    %159 = memref.load %arg1[%c30] : memref<45xf32, #tpu.memory_space<smem>>
    %160 = vector.broadcast %159 : f32 to vector<128x128xf32>
    %161 = arith.mulf %79, %160 : vector<128x128xf32>
    %162 = arith.addf %158, %161 : vector<128x128xf32>
    %c34 = arith.constant 34 : index
    %163 = memref.load %arg1[%c34] : memref<45xf32, #tpu.memory_space<smem>>
    %164 = vector.broadcast %163 : f32 to vector<128x128xf32>
    %165 = arith.mulf %103, %164 : vector<128x128xf32>
    %166 = arith.addf %162, %165 : vector<128x128xf32>
    %c38 = arith.constant 38 : index
    %167 = memref.load %arg1[%c38] : memref<45xf32, #tpu.memory_space<smem>>
    %168 = vector.broadcast %167 : f32 to vector<128x128xf32>
    %169 = arith.addf %166, %168 : vector<128x128xf32>
    %cst_23 = arith.constant 0.000000e+00 : f32
    %170 = vector.broadcast %cst_23 : f32 to vector<128x128xf32>
    %171 = arith.subf %170, %169 : vector<128x128xf32>
    %172 = math.exp %171 : vector<128x128xf32>
    %cst_24 = arith.constant 1.000000e+00 : f32
    %173 = vector.broadcast %cst_24 : f32 to vector<128x128xf32>
    %174 = arith.addf %173, %172 : vector<128x128xf32>
    %175 = tpu.reciprocal %174 {approx = true} : vector<128x128xf32> -> vector<128x128xf32>
    %c23 = arith.constant 23 : index
    %176 = memref.load %arg1[%c23] : memref<45xf32, #tpu.memory_space<smem>>
    %177 = vector.broadcast %176 : f32 to vector<128x128xf32>
    %178 = arith.mulf %31, %177 : vector<128x128xf32>
    %c27 = arith.constant 27 : index
    %179 = memref.load %arg1[%c27] : memref<45xf32, #tpu.memory_space<smem>>
    %180 = vector.broadcast %179 : f32 to vector<128x128xf32>
    %181 = arith.mulf %55, %180 : vector<128x128xf32>
    %182 = arith.addf %178, %181 : vector<128x128xf32>
    %c31 = arith.constant 31 : index
    %183 = memref.load %arg1[%c31] : memref<45xf32, #tpu.memory_space<smem>>
    %184 = vector.broadcast %183 : f32 to vector<128x128xf32>
    %185 = arith.mulf %79, %184 : vector<128x128xf32>
    %186 = arith.addf %182, %185 : vector<128x128xf32>
    %c35 = arith.constant 35 : index
    %187 = memref.load %arg1[%c35] : memref<45xf32, #tpu.memory_space<smem>>
    %188 = vector.broadcast %187 : f32 to vector<128x128xf32>
    %189 = arith.mulf %103, %188 : vector<128x128xf32>
    %190 = arith.addf %186, %189 : vector<128x128xf32>
    %c39 = arith.constant 39 : index
    %191 = memref.load %arg1[%c39] : memref<45xf32, #tpu.memory_space<smem>>
    %192 = vector.broadcast %191 : f32 to vector<128x128xf32>
    %193 = arith.addf %190, %192 : vector<128x128xf32>
    %cst_25 = arith.constant 0.000000e+00 : f32
    %194 = vector.broadcast %cst_25 : f32 to vector<128x128xf32>
    %195 = arith.subf %194, %193 : vector<128x128xf32>
    %196 = math.exp %195 : vector<128x128xf32>
    %cst_26 = arith.constant 1.000000e+00 : f32
    %197 = vector.broadcast %cst_26 : f32 to vector<128x128xf32>
    %198 = arith.addf %197, %196 : vector<128x128xf32>
    %199 = tpu.reciprocal %198 {approx = true} : vector<128x128xf32> -> vector<128x128xf32>
    %c40 = arith.constant 40 : index
    %200 = memref.load %arg1[%c40] : memref<45xf32, #tpu.memory_space<smem>>
    %201 = vector.broadcast %200 : f32 to vector<128x128xf32>
    %202 = arith.mulf %127, %201 : vector<128x128xf32>
    %c41 = arith.constant 41 : index
    %203 = memref.load %arg1[%c41] : memref<45xf32, #tpu.memory_space<smem>>
    %204 = vector.broadcast %203 : f32 to vector<128x128xf32>
    %205 = arith.mulf %151, %204 : vector<128x128xf32>
    %206 = arith.addf %202, %205 : vector<128x128xf32>
    %c42 = arith.constant 42 : index
    %207 = memref.load %arg1[%c42] : memref<45xf32, #tpu.memory_space<smem>>
    %208 = vector.broadcast %207 : f32 to vector<128x128xf32>
    %209 = arith.mulf %175, %208 : vector<128x128xf32>
    %210 = arith.addf %206, %209 : vector<128x128xf32>
    %c43 = arith.constant 43 : index
    %211 = memref.load %arg1[%c43] : memref<45xf32, #tpu.memory_space<smem>>
    %212 = vector.broadcast %211 : f32 to vector<128x128xf32>
    %213 = arith.mulf %199, %212 : vector<128x128xf32>
    %214 = arith.addf %210, %213 : vector<128x128xf32>
    %c44 = arith.constant 44 : index
    %215 = memref.load %arg1[%c44] : memref<45xf32, #tpu.memory_space<smem>>
    %216 = vector.broadcast %215 : f32 to vector<128x128xf32>
    %217 = arith.addf %214, %216 : vector<128x128xf32>
    %cst_27 = arith.constant 0.000000e+00 : f32
    %218 = vector.broadcast %cst_27 : f32 to vector<128x128xf32>
    %219 = arith.subf %218, %217 : vector<128x128xf32>
    %220 = math.exp %219 : vector<128x128xf32>
    %cst_28 = arith.constant 1.000000e+00 : f32
    %221 = vector.broadcast %cst_28 : f32 to vector<128x128xf32>
    %222 = arith.addf %221, %220 : vector<128x128xf32>
    %223 = tpu.reciprocal %222 {approx = true} : vector<128x128xf32> -> vector<128x128xf32>
    %c0_29 = arith.constant 0 : index
    %c0_30 = arith.constant 0 : index
    %224 = vector.load %arg3[%c0_29, %c0_30] : memref<128x128xf32, #tpu.memory_space<vmem>>, vector<128x128xf32>
    tpu.vector_store %arg3[%c0_29, %c0_30], %223 {strides = array<i32>} : memref<128x128xf32, #tpu.memory_space<vmem>>, vector<128x128xf32>,
    return
  }
  func.func @transform_0(%arg0: i32) -> i32 {
    %c0_i32 = arith.constant 0 : i32
    %c0_i32_0 = arith.constant 0 : i32
    return %c0_i32 : i32
  }
  func.func @transform_1(%arg0: i32) -> (i32, i32, i32) {
    %c0_i32 = arith.constant 0 : i32
    %c0_i32_0 = arith.constant 0 : i32
    %c0_i32_1 = arith.constant 0 : i32
    return %c0_i32, %arg0, %c0_i32_0 : i32, i32, i32
  }
  func.func @transform_2(%arg0: i32) -> (i32, i32) {
    %c0_i32 = arith.constant 0 : i32
    %c0_i32_0 = arith.constant 0 : i32
    return %arg0, %c0_i32 : i32, i32
  }
}

</mosaic_0001>

<bundles_post_ra>
// kernel: ff_forward.1
= control target key start
LH: loop header
LB: loop body
LE: loop exit
PB: predicated region body
PF: predicated region fallthrough
CT: control target
= control target key end

     0   :  { %7 = vsyncpa [#allocation3], 0  ;;  %s2821_s12 = smov [#allocation2]   ;;  %s5134_s0 = inlined_call_operand.vmem [shape: f32[45], index: 0, kind: input, shape index: {}]   ;;  %s5135_s1 = inlined_call_operand.vmem [shape: f32[4,128,128], index: 1, kind: input, shape index: {}]   ;;  %s5136_s2 = inlined_call_operand.vmem [shape: f32[128,128], index: 2, kind: output, shape index: {}]  }
   0x1   :  { %s13_s11 = sshll.u32 %s5134_s0, 4  ;;  %s14_s11 = int_to_ptr.vmem [resolvable:$true] %s13_s11 }
   0x2   :  { %16 = dma.vmem_to_smem %s14_s11, 16, %s2821_s12, [#allocation3]  }
   0x3   :  { %2819 = dma.done.wait [#allocation3], 16  }
   0x4   :  { %2820 = vsyncadd [#allocation3], 4294967280 }
   0x5   :  { %23 = sfence }
   0x6   :  { %s91_s13 = sld [smem:[#allocation2]]  ;;  %v2845_v0 = vld [vmem:[%s5135_s1] sm:$0xff]  ;;  %v2850_v1 = vld [vmem:[%s5135_s1 + $0x8] sm:$0xff]  ;;  %v2855_v2 = vld [vmem:[%s5135_s1 + $0x10] sm:$0xff] }
   0x7   :  { %s2840_s14 = sld [smem:[#allocation2 + $0x4]]  ;;  %v2860_v3 = vld [vmem:[%s5135_s1 + $0x18] sm:$0xff]  ;;  %v2865_v4 = vld [vmem:[%s5135_s1 + $0x20] sm:$0xff]  ;;  %v2870_v5 = vld [vmem:[%s5135_s1 + $0x28] sm:$0xff] }
   0x8   :  { %v2875_v6 = vld [vmem:[%s5135_s1 + $0x30] sm:$0xff]  ;;  %v2880_v7 = vld [vmem:[%s5135_s1 + $0x38] sm:$0xff]  ;;  %v2885_v8 = vld [vmem:[%s5135_s1 + $0x40] sm:$0xff]  ;;  %s2960_s30 = sld [smem:[#allocation2 + $0x8]] }
   0x9   :  { %v2890_v9 = vld [vmem:[%s5135_s1 + $0x48] sm:$0xff]  ;;  %v2895_v11 = vld [vmem:[%s5135_s1 + $0x50] sm:$0xff]  ;;  %v2900_v12 = vld [vmem:[%s5135_s1 + $0x58] sm:$0xff]  ;;  %s3047_s26 = sld [smem:[#allocation2 + $0xc]] }
   0xa   :  { %5310 = vst [vmem:[#allocation5_spill] sm:$0xff] %v2890_v9  ;;  %v2905_v13 = vld [vmem:[%s5135_s1 + $0x60] sm:$0xff]  ;;  %v2910_v14 = vld [vmem:[%s5135_s1 + $0x68] sm:$0xff]  ;;  %v2915_v15 = vld [vmem:[%s5135_s1 + $0x70] sm:$0xff]  ;;  %s3126_s27 = sld [smem:[#allocation2 + $0x10]] }
   0xb   :  { %5311 = vst [vmem:[#allocation6_spill] sm:$0xff] %v2895_v11  ;;  %v2920_v16 = vld [vmem:[%s5135_s1 + $0x78] sm:$0xff]  ;;  %v2925_v17 = vld [vmem:[%s5135_s1 + $0x80] sm:$0xff]  ;;  %v2930_v18 = vld [vmem:[%s5135_s1 + $0x88] sm:$0xff]  ;;  %s3137_s3 = sld [smem:[#allocation2 + $0x1]] }
   0xc   :  { %v92_v10 = vstv %s91_s13  ;;  %5312 = vst [vmem:[#allocation7_spill] sm:$0xff] %v2900_v12  ;;  %v2935_v19 = vld [vmem:[%s5135_s1 + $0x90] sm:$0xff]  ;;  %v2944_v24 = vld [vmem:[%s5135_s1 + $0x98] sm:$0xff]  ;;  %v2949_v25 = vld [vmem:[%s5135_s1 + $0xa0] sm:$0xff]  ;;  %s3148_s6 = sld [smem:[#allocation2 + $0x5]] }
   0xd   :  { %5313 = vst [vmem:[#allocation8_spill] sm:$0xff] %v2905_v13  ;;  %v93_v20 = vmul.f32 %v92_v10, %v2845_v0  ;;  %v94_v21 = vmul.f32 %v92_v10, %v2850_v1  ;;  %v95_v22 = vmul.f32 %v92_v10, %v2855_v2  ;;  %v96_v23 = vmul.f32 %v92_v10, %v2860_v3  ;;  %v2954_v26 = vld [vmem:[%s5135_s1 + $0xa8] sm:$0xff]  ;;  %v2965_v31 = vld [vmem:[%s5135_s1 + $0xb0] sm:$0xff]  ;;  %v2970_v32 = vld [vmem:[%s5135_s1 + $0xb8] sm:$0xff]  ;;  %s3349_s8 = sld [smem:[#allocation2 + $0x11]] }
   0xe   :  { %5314 = vst [vmem:[#allocation9_spill] sm:$0xff] %v2910_v14  ;;  %v97_v27 = vmul.f32 %v92_v10, %v2865_v4  ;;  %v98_v28 = vmul.f32 %v92_v10, %v2870_v5  ;;  %v99_v29 = vmul.f32 %v92_v10, %v2875_v6  ;;  %v110_v30 = vstv %s2840_s14  ;;  %v2975_v33 = vld [vmem:[%s5135_s1 + $0xc0] sm:$0xff]  ;;  %v2984_v38 = vld [vmem:[%s5135_s1 + $0xc8] sm:$0xff]  ;;  %v2989_v39 = vld [vmem:[%s5135_s1 + $0xd0] sm:$0xff]  ;;  %s3477_s14 = sld [smem:[#allocation2 + $0x2]] }
   0xf   :  { %5315 = vst [vmem:[#allocation10_spill] sm:$0xff] %v2915_v15  ;;  %v100_v34 = vmul.f32 %v92_v10, %v2880_v7  ;;  %v101_v35 = vmul.f32 %v92_v10, %v2885_v8  ;;  %v102_v36 = vmul.f32 %v92_v10, %v2890_v9  ;;  %v103_v37 = vmul.f32 %v92_v10, %v2895_v11  ;;  %v2994_v40 = vld [vmem:[%s5135_s1 + $0xd8] sm:$0xff]  ;;  %v3003_v45 = vld [vmem:[%s5135_s1 + $0xe0] sm:$0xff]  ;;  %v3008_v46 = vld [vmem:[%s5135_s1 + $0xe8] sm:$0xff]  ;;  %s3484_s9 = sld [smem:[#allocation2 + $0x6]] }
  0x10   :  { %5316 = vst [vmem:[#allocation11_spill] sm:$0xff] %v2920_v16  ;;  %v104_v41 = vmul.f32 %v92_v10, %v2900_v12  ;;  %v105_v42 = vmul.f32 %v92_v10, %v2905_v13  ;;  %v106_v43 = vmul.f32 %v92_v10, %v2910_v14  ;;  %v107_v44 = vmul.f32 %v92_v10, %v2915_v15  ;;  %v3013_v47 = vld [vmem:[%s5135_s1 + $0xf0] sm:$0xff]  ;;  %v3022_v52 = vld [vmem:[%s5135_s1 + $0xf8] sm:$0xff]  ;;  %s3598_s24 = sld [smem:[#allocation2 + $0xa]] }
  0x11   :  { %5317 = vst [vmem:[#allocation12_spill] sm:$0xff] %v2925_v17  ;;  %v108_v48 = vmul.f32 %v92_v10, %v2920_v16  ;;  %v111_v49 = vmul.f32 %v2925_v17, %v110_v30  ;;  %v112_v50 = vmul.f32 %v2930_v18, %v110_v30  ;;  %v113_v51 = vmul.f32 %v2935_v19, %v110_v30  ;;  %s3670_s10 = sld [smem:[#allocation2 + $0xe]] }
  0x12   :  { %5318 = vst [vmem:[#allocation13_spill] sm:$0xff] %v2930_v18  ;;  %v114_v53 = vmul.f32 %v2944_v24, %v110_v30  ;;  %v115_v54 = vmul.f32 %v2949_v25, %v110_v30  ;;  %v116_v55 = vmul.f32 %v2954_v26, %v110_v30  ;;  %v117_v56 = vmul.f32 %v2965_v31, %v110_v30  ;;  %s3930_s15 = sld [smem:[#allocation2 + $0xb]] }
  0x13   :  { %5319 = vst [vmem:[#allocation14_spill] sm:$0xff] %v2935_v19  ;;  %v118_v57 = vmul.f32 %v2970_v32, %v110_v30  ;;  %v119_v58 = vmul.f32 %v2975_v33, %v110_v30  ;;  %v120_v59 = vmul.f32 %v2984_v38, %v110_v30  ;;  %v121_v60 = vmul.f32 %v2989_v39, %v110_v30  ;;  %v3167_v19 = vld [vmem:[%s5135_s1 + $0x1a0] sm:$0xff]  ;;  %s4056_s0 = sld [smem:[#allocation2 + $0xf]] }
  0x14   :  { %5320 = vst [vmem:[#allocation15_spill] sm:$0xff] %v2944_v24  ;;  %v122_v61 = vmul.f32 %v2994_v40, %v110_v30  ;;  %v123_v62 = vmul.f32 %v3003_v45, %v110_v30  ;;  %v124_v63 = vmul.f32 %v3008_v46, %v110_v30  ;;  %v125_v10 = vmul.f32 %v3013_v47, %v110_v30  ;;  %s4117_s19 = sld [smem:[#allocation2 + $0x13]] }
  0x15   :  { %5321 = vst [vmem:[#allocation16_spill] sm:$0xff] %v2949_v25  ;;  %v178_v25 = vstv %s3047_s26  ;;  %s3922_s26 = sld [smem:[#allocation2 + $0x7]] }
  0x16   :  { %5322 = vst [vmem:[#allocation17_spill] sm:$0xff] %v2954_v26  ;;  %v137_v26 = vadd.f32 %v121_v60, %v103_v37  ;;  %s4158_s4 = sld [smem:[#allocation2 + $0x18]] }
  0x17   :  { %5323 = vst [vmem:[#allocation18_spill] sm:$0xff] %v2965_v31  ;;  %v3039_v31 = vld [vmem:[%s5135_s1 + $0x100] sm:$0xff]  ;;  %s4222_s5 = sld [smem:[#allocation2 + $0x1c]] }
  0x18   :  { %5324 = vst [vmem:[#allocation19_spill] sm:$0xff] %v2970_v32  ;;  %v3062_v32 = vld [vmem:[%s5135_s1 + $0x120] sm:$0xff]  ;;  %s4230_s7 = sld [smem:[#allocation2 + $0x24]] }
  0x19   :  { %5325 = vst [vmem:[#allocation20_spill] sm:$0xff] %v2975_v33  ;;  %v128_v33 = vadd.f32 %v112_v50, %v94_v21  ;;  %v131_v21 = vadd.f32 %v115_v54, %v97_v27  ;;  %v3073_v50 = vld [vmem:[%s5135_s1 + $0x130] sm:$0xff]  ;;  %v135_v27 = vadd.f32 %v119_v58, %v101_v35  ;;  %v3088_v54 = vld [vmem:[%s5135_s1 + $0x148] sm:$0xff]  ;;  %v140_v35 = vadd.f32 %v124_v63, %v106_v43  ;;  %s4539_s11 = sld [smem:[#allocation2 + $0x1a]] }
  0x1a   :  { %5326 = vst [vmem:[#allocation21_spill] sm:$0xff] %v2984_v38  ;;  %v3044_v38 = vld [vmem:[%s5135_s1 + $0x108] sm:$0xff]  ;;  %v141_v58 = vadd.f32 %v125_v10, %v107_v44  ;;  %v3115_v43 = vld [vmem:[%s5135_s1 + $0x170] sm:$0xff]  ;;  %s4624_s12 = sld [smem:[#allocation2 + $0x22]] }
  0x1b   :  { %5327 = vst [vmem:[#allocation22_spill] sm:$0xff] %v2989_v39  ;;  %v126_v39 = vmul.f32 %v3022_v52, %v110_v30  ;;  %v144_v30 = vstv %s2960_s30  ;;  %s3917_s30 = sld [smem:[#allocation2 + $0x3]] }
  0x1c   :  { %5328 = vst [vmem:[#allocation23_spill] sm:$0xff] %v2994_v40  ;;  %v127_v40 = vadd.f32 %v111_v49, %v93_v20  ;;  %v130_v20 = vadd.f32 %v114_v53, %v96_v23  ;;  %v3068_v49 = vld [vmem:[%s5135_s1 + $0x128] sm:$0xff]  ;;  %v134_v23 = vadd.f32 %v118_v57, %v100_v34  ;;  %v3083_v53 = vld [vmem:[%s5135_s1 + $0x140] sm:$0xff]  ;;  %v139_v34 = vadd.f32 %v123_v62, %v105_v42  ;;  %s4744_s13 = sld [smem:[#allocation2 + $0x1b]] }
  0x1d   :  { %5329 = vst [vmem:[#allocation24_spill] sm:$0xff] %v3003_v45  ;;  %v129_v45 = vadd.f32 %v113_v51, %v95_v22  ;;  %v132_v22 = vadd.f32 %v116_v55, %v98_v28  ;;  %v3078_v51 = vld [vmem:[%s5135_s1 + $0x138] sm:$0xff]  ;;  %v136_v28 = vadd.f32 %v120_v59, %v102_v36  ;;  %v3093_v55 = vld [vmem:[%s5135_s1 + $0x150] sm:$0xff]  ;;  %v3108_v57 = vld [vmem:[%s5135_s1 + $0x168] sm:$0xff]  ;;  %v142_v37 = vadd.f32 %v126_v39, %v108_v48  ;;  %s4749_s16 = sld [smem:[#allocation2 + $0x1f]] }
  0x1e   :  { %5330 = vst [vmem:[#allocation25_spill] sm:$0xff] %v3008_v46  ;;  %v3057_v46 = vld [vmem:[%s5135_s1 + $0x118] sm:$0xff]  ;;  %v146_v42 = vmul.f32 %v3044_v38, %v144_v30  ;;  %v149_v39 = vmul.f32 %v3062_v32, %v144_v30  ;;  %v150_v44 = vmul.f32 %v3068_v49, %v144_v30  ;;  %v3131_v48 = vld [vmem:[%s5135_s1 + $0x180] sm:$0xff]  ;;  %v151_v62 = vmul.f32 %v3073_v50, %v144_v30  ;;  %s4827_s17 = sld [smem:[#allocation2 + $0x23]] }
  0x1f   :  { %5331 = vst [vmem:[#allocation26_spill] sm:$0xff] %v3013_v47  ;;  %v3052_v47 = vld [vmem:[%s5135_s1 + $0x110] sm:$0xff]  ;;  %v3098_v36 = vld [vmem:[%s5135_s1 + $0x158] sm:$0xff]  ;;  %v152_v63 = vmul.f32 %v3078_v51, %v144_v30  ;;  %v153_v10 = vmul.f32 %v3083_v53, %v144_v30  ;;  %v179_v24 = vmul.f32 %v3131_v48, %v178_v25  ;;  %s4887_s18 = sld [smem:[#allocation2 + $0x27]] }
  0x20   :  { %5332 = vst [vmem:[#allocation27_spill] sm:$0xff] %v3022_v52  ;;  %v133_v52 = vadd.f32 %v117_v56, %v99_v29  ;;  %v138_v29 = vadd.f32 %v122_v61, %v104_v41  ;;  %v3103_v56 = vld [vmem:[%s5135_s1 + $0x160] sm:$0xff]  ;;  %v145_v41 = vmul.f32 %v3039_v31, %v144_v30  ;;  %v3120_v59 = vld [vmem:[%s5135_s1 + $0x178] sm:$0xff]  ;;  %v147_v60 = vmul.f32 %v3052_v47, %v144_v30  ;;  %s4982_s20 = sld [smem:[#allocation2 + $0x2a]] }
  0x21   :  { %5333 = vst [vmem:[#allocation28_spill] sm:$0xff] %v3039_v31  ;;  %v148_v61 = vmul.f32 %v3057_v46, %v144_v30  ;;  %v166_v18 = vadd.f32 %v150_v44, %v132_v22  ;;  %s4988_s21 = sld [smem:[#allocation2 + $0x2b]] }
  0x22   :  { %5334 = vst [vmem:[#allocation29_spill] sm:$0xff] %v3044_v38  ;;  %v157_v38 = vmul.f32 %v3103_v56, %v144_v30  ;;  %v161_v31 = vadd.f32 %v145_v41, %v127_v40  ;;  %v3173_v41 = vld [vmem:[%s5135_s1 + $0x1a8] sm:$0xff]  ;;  %s4992_s22 = sld [smem:[#allocation2 + $0x2c]] }
  0x23   :  { %5335 = vst [vmem:[#allocation30_spill] sm:$0xff] %v3052_v47  ;;  %v156_v47 = vmul.f32 %v3098_v36, %v144_v30 }
  0x24   :  { %5336 = vst [vmem:[#allocation31_spill] sm:$0xff] %v3057_v46  ;;  %v154_v46 = vmul.f32 %v3088_v54, %v144_v30  ;;  %v173_v22 = vadd.f32 %v157_v38, %v139_v34  ;;  %v184_v34 = vmul.f32 %v3173_v41, %v178_v25 }
  0x25   :  { %5337 = vst [vmem:[#allocation32_spill] sm:$0xff] %v3062_v32  ;;  %v155_v32 = vmul.f32 %v3093_v55, %v144_v30 }
  0x26   :  { %5338 = vst [vmem:[#allocation33_spill] sm:$0xff] %v3068_v49  ;;  %v3142_v49 = vld [vmem:[%s5135_s1 + $0x188] sm:$0xff] }
  0x27   :  { %5339 = vst [vmem:[#allocation34_spill] sm:$0xff] %v3073_v50  ;;  %v158_v50 = vmul.f32 %v3108_v57, %v144_v30  ;;  %v180_v40 = vmul.f32 %v3142_v49, %v178_v25 }
  0x28   :  { %5340 = vst [vmem:[#allocation35_spill] sm:$0xff] %v3078_v51  ;;  %v160_v51 = vmul.f32 %v3120_v59, %v144_v30 }
  0x29   :  { %5341 = vst [vmem:[#allocation36_spill] sm:$0xff] %v3083_v53  ;;  %v159_v53 = vmul.f32 %v3115_v43, %v144_v30  ;;  %v167_v30 = vadd.f32 %v151_v62, %v133_v52  ;;  %v172_v52 = vadd.f32 %v156_v47, %v138_v29  ;;  %v183_v47 = vmul.f32 %v3167_v19, %v178_v25 }
  0x2a   :  { %5342 = vst [vmem:[#allocation37_spill] sm:$0xff] %v3088_v54  ;;  %v3153_v54 = vld [vmem:[%s5135_s1 + $0x190] sm:$0xff]  ;;  %v176_v29 = vadd.f32 %v160_v51, %v142_v37  ;;  %v212_v62 = vstv %s3126_s27  ;;  %v3225_v51 = vstv %s3148_s6  ;;  %s3342_s6 = sld [smem:[#allocation2 + $0xd]] }
  0x2b   :  { %5343 = vst [vmem:[#allocation38_spill] sm:$0xff] %v3093_v55  ;;  %v164_v55 = vadd.f32 %v148_v61, %v130_v20  ;;  %v170_v20 = vadd.f32 %v154_v46, %v136_v28  ;;  %v3190_v46 = vld [vmem:[%s5135_s1 + $0x1c0] sm:$0xff]  ;;  %v175_v38 = vadd.f32 %v159_v53, %v141_v58  ;;  %v3206_v28 = vld [vmem:[%s5135_s1 + $0x1d8] sm:$0xff]  ;;  %s4226_s27 = sld [smem:[#allocation2 + $0x20]] }
  0x2c   :  { %5344 = vst [vmem:[#allocation39_spill] sm:$0xff] %v3098_v36  ;;  %v3161_v36 = vld [vmem:[%s5135_s1 + $0x198] sm:$0xff] }
  0x2d   :  { %5345 = vst [vmem:[#allocation40_spill] sm:$0xff] %v3103_v56  ;;  %v162_v56 = vadd.f32 %v146_v42, %v128_v33  ;;  %v168_v33 = vadd.f32 %v152_v63, %v134_v23  ;;  %v181_v42 = vmul.f32 %v3153_v54, %v178_v25  ;;  %v182_v61 = vmul.f32 %v3161_v36, %v178_v25  ;;  %v3235_v58 = vld [vmem:[%s5135_s1 + $0x1f8] sm:$0xff] }
  0x2e   :  { %5346 = vst [vmem:[#allocation41_spill] sm:$0xff] %v3108_v57  ;;  %v163_v57 = vadd.f32 %v147_v60, %v129_v45  ;;  %v169_v45 = vadd.f32 %v153_v10, %v135_v27  ;;  %v3179_v60 = vld [vmem:[%s5135_s1 + $0x1b0] sm:$0xff]  ;;  %v195_v23 = vadd.f32 %v179_v24, %v161_v31  ;;  %v3218_v24 = vld [vmem:[%s5135_s1 + $0x1e8] sm:$0xff]  ;;  %v187_v63 = vmul.f32 %v3190_v46, %v178_v25 }
  0x2f   :  { %5347 = vst [vmem:[#allocation42_spill] sm:$0xff] %v3115_v43  ;;  %v165_v43 = vadd.f32 %v149_v39, %v131_v21  ;;  %v171_v21 = vadd.f32 %v155_v32, %v137_v26  ;;  %v3185_v39 = vld [vmem:[%s5135_s1 + $0x1b8] sm:$0xff]  ;;  %v3195_v26 = vld [vmem:[%s5135_s1 + $0x1c8] sm:$0xff]  ;;  %v174_v32 = vadd.f32 %v158_v50, %v140_v35  ;;  %v3201_v27 = vld [vmem:[%s5135_s1 + $0x1d0] sm:$0xff]  ;;  %v196_v44 = vadd.f32 %v180_v40, %v162_v56 }
  0x30   :  { %5348 = vst [vmem:[#allocation43_spill] sm:$0xff] %v3120_v59  ;;  %v3213_v50 = vld [vmem:[%s5135_s1 + $0x1e0] sm:$0xff]  ;;  %v185_v31 = vmul.f32 %v3179_v60, %v178_v25  ;;  %v197_v53 = vadd.f32 %v181_v42, %v163_v57  ;;  %v3222_v35 = vstv %s3137_s3  ;;  %v3230_v56 = vld [vmem:[%s5135_s1 + $0x1f0] sm:$0xff]  ;;  %v186_v37 = vmul.f32 %v3185_v39, %v178_v25  ;;  %s3332_s3 = sld [smem:[#allocation2 + $0x9]] }
  0x31   :  { %5349 = vst [vmem:[#allocation44_spill] sm:$0xff] %v3131_v48  ;;  %v188_v57 = vmul.f32 %v3195_v26, %v178_v25  ;;  %v198_v10 = vadd.f32 %v182_v61, %v164_v55  ;;  %v189_v40 = vmul.f32 %v3201_v27, %v178_v25  ;;  %v190_v42 = vmul.f32 %v3206_v28, %v178_v25 }
  0x32   :  { %5350 = vst [vmem:[#allocation45_spill] sm:$0xff] %v3142_v49  ;;  %v214_v49 = vadd.f32 %v212_v62, %v196_v44  ;;  %v193_v48 = vmul.f32 %v3230_v56, %v178_v25  ;;  %v215_v59 = vadd.f32 %v212_v62, %v197_v53  ;;  %v203_v55 = vadd.f32 %v187_v63, %v169_v45 }
  0x33   :  { %5351 = vst [vmem:[#allocation46_spill] sm:$0xff] %v3153_v54  ;;  %v200_v54 = vadd.f32 %v184_v34, %v166_v18  ;;  %v204_v61 = vadd.f32 %v188_v57, %v170_v20  ;;  %v205_v17 = vadd.f32 %v189_v40, %v171_v21 }
  0x34   :  { %5352 = vst [vmem:[#allocation47_spill] sm:$0xff] %v3161_v36  ;;  %v192_v36 = vmul.f32 %v3218_v24, %v178_v25  ;;  %v209_v18 = vadd.f32 %v193_v48, %v175_v38 }
  0x35   :  { %5353 = vst [vmem:[#allocation48_spill] sm:$0xff] %v3167_v19  ;;  %v191_v19 = vmul.f32 %v3213_v50, %v178_v25 }
  0x36   :  { %5354 = vst [vmem:[#allocation49_spill] sm:$0xff] %v3173_v41  ;;  %v213_v41 = vadd.f32 %v212_v62, %v195_v23 }
  0x37   :  { %5355 = vst [vmem:[#allocation50_spill] sm:$0xff] %v3179_v60  ;;  %v199_v60 = vadd.f32 %v183_v47, %v165_v43  ;;  %v207_v23 = vadd.f32 %v191_v19, %v173_v22  ;;  %v227_v19 = vadd.f32 %v212_v62, %v209_v18  ;;  %v3268_v18 = vmul.f32 %v3222_v35, %v2870_v5 }
  0x38   :  { %5356 = vst [vmem:[#allocation51_spill] sm:$0xff] %v3185_v39  ;;  %v194_v39 = vmul.f32 %v3235_v58, %v178_v25  ;;  %v229_v47 = vsub.f32 0.0, %v213_v41  ;;  %v221_v25 = vadd.f32 %v212_v62, %v203_v55 }
  0x39   :  { %5357 = vst [vmem:[#allocation52_spill] sm:$0xff] %v3190_v46  ;;  %v201_v46 = vadd.f32 %v185_v31, %v167_v30  ;;  %v217_v43 = vadd.f32 %v212_v62, %v199_v60  ;;  %v222_v30 = vadd.f32 %v212_v62, %v204_v61  ;;  %v225_v21 = vadd.f32 %v212_v62, %v207_v23 }
  0x3a   :  { %5358 = vst [vmem:[#allocation53_spill] sm:$0xff] %v3195_v26  ;;  %v202_v26 = vadd.f32 %v186_v37, %v168_v33  ;;  %v210_v34 = vadd.f32 %v194_v39, %v176_v29  ;;  %v223_v33 = vadd.f32 %v212_v62, %v205_v17  ;;  %v245_v53 = vmul.f32 1.442695, %v229_v47 }
  0x3b   :  { %5359 = vst [vmem:[#allocation54_spill] sm:$0xff] %v3201_v27  ;;  %v216_v27 = vadd.f32 %v212_v62, %v198_v10  ;;  %v219_v44 = vadd.f32 %v212_v62, %v201_v46  ;;  %v233_v20 = vsub.f32 0.0, %v217_v43  ;;  %v237_v22 = vsub.f32 0.0, %v221_v25 }
  0x3c   :  { %5360 = vst [vmem:[#allocation55_spill] sm:$0xff] %v3206_v28  ;;  %v206_v28 = vadd.f32 %v190_v42, %v172_v52  ;;  %v220_v16 = vadd.f32 %v212_v62, %v202_v26  ;;  %v238_v39 = vsub.f32 0.0, %v222_v30  ;;  %v239_v46 = vsub.f32 0.0, %v223_v33 }
  0x3d   :  { %5361 = vst [vmem:[#allocation56_spill] sm:$0xff] %v3213_v50  ;;  %v208_v50 = vadd.f32 %v192_v36, %v174_v32  ;;  %v232_v31 = vsub.f32 0.0, %v216_v27  ;;  %v228_v36 = vadd.f32 %v212_v62, %v210_v34  ;;  %2167 = vpow2.f32 %v245_v53 }
  0x3e   :  { %5362 = vst [vmem:[#allocation57_spill] sm:$0xff] %v3218_v24  ;;  %v230_v24 = vsub.f32 0.0, %v214_v49  ;;  %v224_v45 = vadd.f32 %v212_v62, %v206_v28  ;;  %v236_v48 = vsub.f32 0.0, %v220_v16  ;;  %v253_v32 = vmul.f32 1.442695, %v233_v20 }
  0x3f   :  { %5363 = vst [vmem:[#allocation58_spill] sm:$0xff] %v3225_v51  ;;  %v218_v51 = vadd.f32 %v212_v62, %v200_v54  ;;  %v226_v52 = vadd.f32 %v212_v62, %v208_v50  ;;  %v235_v54 = vsub.f32 0.0, %v219_v44  ;;  %v241_v17 = vsub.f32 0.0, %v225_v21 }
  0x40   :  { %5364 = vst [vmem:[#allocation59_spill] sm:$0xff] %v3230_v56  ;;  %v231_v56 = vsub.f32 0.0, %v215_v59  ;;  %v247_v41 = vmul.f32 1.442695, %v230_v24  ;;  %v251_v59 = vmul.f32 1.442695, %v232_v31  ;;  %v3248_v16 = vmul.f32 %v3222_v35, %v2845_v0 }
  0x41   :  { %v234_v60 = vsub.f32 0.0, %v218_v51  ;;  %v240_v26 = vsub.f32 0.0, %v224_v45  ;;  %v242_v38 = vsub.f32 0.0, %v226_v52  ;;  %v243_v28 = vsub.f32 0.0, %v227_v19 }
  0x42   :  { %v249_v49 = vmul.f32 1.442695, %v231_v56  ;;  %2169 = vpow2.f32 %v247_v41  ;;  %v244_v29 = vsub.f32 0.0, %v228_v36  ;;  %v257_v50 = vmul.f32 1.442695, %v235_v54  ;;  %v5365_v54 = vld [vmem:[#allocation11_spill] sm:$0xff] }
  0x43   :  { %v255_v27 = vmul.f32 1.442695, %v234_v60  ;;  %v259_v62 = vmul.f32 1.442695, %v236_v48  ;;  %v3252_v24 = vmul.f32 %v3222_v35, %v2850_v1  ;;  %v261_v51 = vmul.f32 1.442695, %v237_v22  ;;  %v2168_v40 = vpop.eup %2167 }
  0x44   :  { %2171 = vpow2.f32 %v249_v49  ;;  %v263_v56 = vmul.f32 1.442695, %v238_v39  ;;  %v265_v37 = vmul.f32 1.442695, %v239_v46  ;;  %v267_v63 = vmul.f32 1.442695, %v240_v26 }
  0x45   :  { %2173 = vpow2.f32 %v251_v59  ;;  %v269_v57 = vmul.f32 1.442695, %v241_v17  ;;  %v271_v10 = vmul.f32 1.442695, %v242_v38  ;;  %v273_v42 = vmul.f32 1.442695, %v243_v28 }
  0x46   :  { %2175 = vpow2.f32 %v253_v32  ;;  %v275_v55 = vmul.f32 1.442695, %v244_v29  ;;  %v3256_v61 = vmul.f32 %v3222_v35, %v2855_v2  ;;  %v3260_v47 = vmul.f32 %v3222_v35, %v2860_v3  ;;  %v5366_v39 = vld [vmem:[#allocation58_spill] sm:$0xff]  ;;  %v5367_v59 = vld [vmem:[#allocation12_spill] sm:$0xff]  ;;  %v5368_v26 = vld [vmem:[#allocation13_spill] sm:$0xff] }
  0x47   :  { %2177 = vpow2.f32 %v255_v27  ;;  %v3264_v23 = vmul.f32 %v3222_v35, %v2865_v4  ;;  %v3272_v44 = vmul.f32 %v3222_v35, %v2875_v6  ;;  %v3276_v25 = vmul.f32 %v3222_v35, %v2880_v7  ;;  %v5369_v27 = vld [vmem:[#allocation14_spill] sm:$0xff]  ;;  %v5370_v29 = vld [vmem:[#allocation15_spill] sm:$0xff] }
  0x48   :  { %2179 = vpow2.f32 %v257_v50  ;;  %v2170_v43 = vpop.eup %2169  ;;  %v3280_v30 = vmul.f32 %v3222_v35, %v2885_v8  ;;  %v3284_v33 = vmul.f32 %v3222_v35, %v2890_v9  ;;  %v3288_v45 = vmul.f32 %v3222_v35, %v2895_v11 }
  0x49   :  { %2181 = vpow2.f32 %v259_v62  ;;  %v3292_v20 = vmul.f32 %v3222_v35, %v2900_v12  ;;  %v277_v21 = vadd.f32 1.0, %v2168_v40  ;;  %v3296_v52 = vmul.f32 %v3222_v35, %v2905_v13  ;;  %v5381_v12 = vld [vmem:[#allocation26_spill] sm:$0xff] }
  0x4a   :  { %v2172_v34 = vpop.eup %2171  ;;  %2183 = vpow2.f32 %v261_v51  ;;  %v3300_v60 = vmul.f32 %v3222_v35, %v2910_v14  ;;  %v278_v19 = vadd.f32 1.0, %v2170_v43  ;;  %v3304_v36 = vmul.f32 %v3222_v35, %v2915_v15  ;;  %v5371_v51 = vld [vmem:[#allocation16_spill] sm:$0xff]  ;;  %v5378_v15 = vld [vmem:[#allocation23_spill] sm:$0xff] }
  0x4b   :  { %v2174_v31 = vpop.eup %2173  ;;  %2185 = vpow2.f32 %v263_v56  ;;  %v3308_v49 = vmul.f32 %v3222_v35, %v5365_v54  ;;  %v279_v22 = vadd.f32 1.0, %v2172_v34  ;;  %v329_v46 = vmul.f32 %v5367_v59, %v5366_v39  ;;  %v5374_v34 = vld [vmem:[#allocation19_spill] sm:$0xff]  ;;  %v5375_v54 = vld [vmem:[#allocation20_spill] sm:$0xff] }
  0x4c   :  { %v2176_v53 = vpop.eup %2175  ;;  %2187 = vpow2.f32 %v265_v37  ;;  %v330_v32 = vmul.f32 %v5368_v26, %v5366_v39  ;;  %v280_v38 = vadd.f32 1.0, %v2174_v31  ;;  %v331_v28 = vmul.f32 %v5369_v27, %v5366_v39  ;;  %v5372_v37 = vld [vmem:[#allocation17_spill] sm:$0xff]  ;;  %v5379_v14 = vld [vmem:[#allocation24_spill] sm:$0xff] }
  0x4d   :  { %v2178_v41 = vpop.eup %2177  ;;  %2189 = vpow2.f32 %v267_v63  ;;  %v332_v50 = vmul.f32 %v5370_v29, %v5366_v39  ;;  %v281_v62 = vadd.f32 1.0, %v2176_v53  ;;  %v333_v56 = vmul.f32 %v5371_v51, %v5366_v39  ;;  %v5376_v53 = vld [vmem:[#allocation21_spill] sm:$0xff]  ;;  %v5377_v29 = vld [vmem:[#allocation22_spill] sm:$0xff] }
  0x4e   :  { %v2180_v48 = vpop.eup %2179  ;;  %2191 = vpow2.f32 %v269_v57  ;;  %v334_v63 = vmul.f32 %v5372_v37, %v5366_v39  ;;  %v282_v40 = vadd.f32 1.0, %v2178_v41  ;;  %v336_v31 = vmul.f32 %v5374_v34, %v5366_v39 }
  0x4f   :  { %v2182_v17 = vpop.eup %2181  ;;  %2193 = vpow2.f32 %v271_v10  ;;  %v5373_v10 = vld [vmem:[#allocation18_spill] sm:$0xff]  ;;  %v337_v59 = vmul.f32 %v5375_v54, %v5366_v39  ;;  %v338_v27 = vmul.f32 %v5376_v53, %v5366_v39  ;;  %v339_v51 = vmul.f32 %v5377_v29, %v5366_v39 }
  0x50   :  { %v2184_v35 = vpop.eup %2183  ;;  %2195 = vpow2.f32 %v273_v42  ;;  %v335_v43 = vmul.f32 %v5373_v10, %v5366_v39  ;;  %v283_v42 = vadd.f32 1.0, %v2180_v48  ;;  %v284_v37 = vadd.f32 1.0, %v2182_v17  ;;  %v5380_v48 = vld [vmem:[#allocation25_spill] sm:$0xff] }
  0x51   :  { %v2186_v57 = vpop.eup %2185  ;;  %2197 = vpow2.f32 %v275_v55  ;;  %v285_v10 = vadd.f32 1.0, %v2184_v35  ;;  %v340_v34 = vmul.f32 %v5378_v15, %v5366_v39  ;;  %v341_v54 = vmul.f32 %v5379_v14, %v5366_v39  ;;  %v5382_v35 = vld [vmem:[#allocation27_spill] sm:$0xff] }
  0x52   :  { %v2188_v26 = vpop.eup %2187  ;;  %v286_v55 = vadd.f32 1.0, %v2186_v57  ;;  %2199 = vrcp.f32 %v277_v21  ;;  %v342_v53 = vmul.f32 %v5380_v48, %v5366_v39  ;;  %v343_v29 = vmul.f32 %v5381_v12, %v5366_v39 }
  0x53   :  { %v2190_v41 = vpop.eup %2189  ;;  %v287_v17 = vadd.f32 1.0, %v2188_v26  ;;  %2201 = vrcp.f32 %v278_v19  ;;  %v344_v15 = vmul.f32 %v5382_v35, %v5366_v39  ;;  %v3347_v9 = vadd.f32 %v329_v46, %v3248_v16 }
  0x54   :  { %v2192_v13 = vpop.eup %2191  ;;  %v288_v21 = vadd.f32 1.0, %v2190_v41  ;;  %2203 = vrcp.f32 %v279_v22  ;;  %v3352_v57 = vadd.f32 %v330_v32, %v3252_v24  ;;  %v3355_v12 = vadd.f32 %v331_v28, %v3256_v61 }
  0x55   :  { %v2194_v11 = vpop.eup %2193  ;;  %v289_v48 = vadd.f32 1.0, %v2192_v13  ;;  %2205 = vrcp.f32 %v280_v38  ;;  %v3358_v19 = vadd.f32 %v332_v50, %v3260_v47  ;;  %v3361_v16 = vadd.f32 %v333_v56, %v3264_v23  ;;  %v5387_v56 = vld [vmem:[#allocation28_spill] sm:$0xff] }
  0x56   :  { %v2196_v14 = vpop.eup %2195  ;;  %v290_v46 = vadd.f32 1.0, %v2194_v11  ;;  %2207 = vrcp.f32 %v281_v62  ;;  %v350_v22 = vadd.f32 %v334_v63, %v3268_v18  ;;  %v351_v24 = vadd.f32 %v335_v43, %v3272_v44 }
  0x57   :  { %v2198_v39 = vpop.eup %2197  ;;  %v291_v32 = vadd.f32 1.0, %v2196_v14  ;;  %2209 = vrcp.f32 %v282_v40  ;;  %v352_v61 = vadd.f32 %v336_v31, %v3276_v25  ;;  %v353_v13 = vadd.f32 %v337_v59, %v3280_v30  ;;  %v5391_v31 = vld [vmem:[#allocation31_spill] sm:$0xff]  ;;  %v5401_v14 = vld [vmem:[#allocation38_spill] sm:$0xff] }
  0x58   :  { %v3367_v38 = vpop.eup %2199  ;;  %2211 = vrcp.f32 %v283_v42  ;;  %v354_v47 = vadd.f32 %v338_v27, %v3284_v33  ;;  %v355_v23 = vadd.f32 %v339_v51, %v3288_v45  ;;  %v362_v11 = vstv %s3332_s3  ;;  %v5394_v42 = vld [vmem:[#allocation33_spill] sm:$0xff]  ;;  %v5395_v27 = vld [vmem:[#allocation34_spill] sm:$0xff]  ;;  %s4352_s3 = sld [smem:[#allocation2 + $0x15]] }
  0x59   :  { %5383 = vst [vmem:[#allocation11_spill] sm:$0xff] %v3367_v38  ;;  %v3372_v28 = vpop.eup %2201  ;;  %v292_v18 = vadd.f32 1.0, %v2198_v39  ;;  %2213 = vrcp.f32 %v284_v37  ;;  %v356_v44 = vadd.f32 %v340_v34, %v3292_v20  ;;  %v357_v25 = vadd.f32 %v341_v54, %v3296_v52  ;;  %v5389_v52 = vld [vmem:[#allocation29_spill] sm:$0xff]  ;;  %v5390_v34 = vld [vmem:[#allocation30_spill] sm:$0xff]  ;;  %v5397_v37 = vld [vmem:[#allocation35_spill] sm:$0xff] }
  0x5a   :  { %5384 = vst [vmem:[#allocation58_spill] sm:$0xff] %v3372_v28  ;;  %v3376_v50 = vpop.eup %2203  ;;  %2215 = vrcp.f32 %v285_v10  ;;  %v358_v30 = vadd.f32 %v342_v53, %v3300_v60  ;;  %v359_v33 = vadd.f32 %v343_v29, %v3304_v36  ;;  %v360_v62 = vadd.f32 %v344_v15, %v3308_v49  ;;  %v5393_v49 = vld [vmem:[#allocation32_spill] sm:$0xff]  ;;  %v5402_v39 = vld [vmem:[#allocation39_spill] sm:$0xff] }
  0x5b   :  { %5385 = vst [vmem:[#allocation12_spill] sm:$0xff] %v3376_v50  ;;  %v3381_v45 = vpop.eup %2205  ;;  %2217 = vrcp.f32 %v286_v55  ;;  %v363_v63 = vmul.f32 %v5387_v56, %v362_v11  ;;  %v3385_v40 = vstv %s3342_s6  ;;  %v3388_v43 = vstv %s3349_s8  ;;  %v5398_v55 = vld [vmem:[#allocation36_spill] sm:$0xff]  ;;  %s3783_s6 = sld [smem:[#allocation2 + $0x12]] }
  0x5c   :  { %5386 = vst [vmem:[#allocation13_spill] sm:$0xff] %v3381_v45  ;;  %v3390_v20 = vpop.eup %2207  ;;  %2219 = vrcp.f32 %v287_v17  ;;  %v364_v10 = vmul.f32 %v5389_v52, %v362_v11  ;;  %v365_v60 = vmul.f32 %v5390_v34, %v362_v11  ;;  %v366_v36 = vmul.f32 %v5391_v31, %v362_v11  ;;  %v5399_v17 = vld [vmem:[#allocation37_spill] sm:$0xff]  ;;  %v5403_v52 = vld [vmem:[#allocation40_spill] sm:$0xff]  ;;  %s4362_s8 = sld [smem:[#allocation2 + $0x1d]] }
  0x5d   :  { %5388 = vst [vmem:[#allocation14_spill] sm:$0xff] %v3390_v20  ;;  %v3395_v59 = vpop.eup %2209  ;;  %2221 = vrcp.f32 %v288_v21  ;;  %v367_v26 = vmul.f32 %v5393_v49, %v362_v11  ;;  %v368_v53 = vmul.f32 %v5394_v42, %v362_v11  ;;  %v369_v51 = vmul.f32 %v5395_v27, %v362_v11  ;;  %v5405_v49 = vld [vmem:[#allocation41_spill] sm:$0xff]  ;;  %v5406_v42 = vld [vmem:[#allocation42_spill] sm:$0xff]  ;;  %v3638_v28 = vld [vmem:[%s5135_s1 + $0xf8] sm:$0xff] }
  0x5e   :  { %5392 = vst [vmem:[#allocation15_spill] sm:$0xff] %v3395_v59  ;;  %v3400_v41 = vpop.eup %2211  ;;  %2223 = vrcp.f32 %v289_v48  ;;  %v370_v54 = vmul.f32 %v5397_v37, %v362_v11  ;;  %v371_v29 = vmul.f32 %v5398_v55, %v362_v11  ;;  %v372_v35 = vmul.f32 %v5399_v17, %v362_v11  ;;  %v5407_v37 = vld [vmem:[#allocation43_spill] sm:$0xff]  ;;  %v3624_v59 = vld [vmem:[%s5135_s1 + $0xe8] sm:$0xff] }
  0x5f   :  { %5396 = vst [vmem:[#allocation16_spill] sm:$0xff] %v3400_v41  ;;  %v3405_v15 = vpop.eup %2213  ;;  %2225 = vrcp.f32 %v290_v46  ;;  %v373_v21 = vmul.f32 %v5401_v14, %v362_v11  ;;  %v374_v56 = vmul.f32 %v5402_v39, %v362_v11  ;;  %v375_v34 = vmul.f32 %v5403_v52, %v362_v11  ;;  %v5409_v14 = vld [vmem:[#allocation44_spill] sm:$0xff] }
  0x60   :  { %5400 = vst [vmem:[#allocation17_spill] sm:$0xff] %v3405_v15  ;;  %v3410_v31 = vpop.eup %2215  ;;  %2227 = vrcp.f32 %v291_v32  ;;  %v376_v48 = vmul.f32 %v5405_v49, %v362_v11  ;;  %v377_v27 = vmul.f32 %v5406_v42, %v362_v11  ;;  %v378_v55 = vmul.f32 %v5407_v37, %v362_v11  ;;  %v5411_v11 = vld [vmem:[#allocation45_spill] sm:$0xff] }
  0x61   :  { %5404 = vst [vmem:[#allocation20_spill] sm:$0xff] %v3410_v31  ;;  %v3415_v41 = vpop.eup %2217  ;;  %2229 = vrcp.f32 %v292_v18  ;;  %v379_v46 = vadd.f32 %v363_v63, %v3347_v9  ;;  %v380_v17 = vadd.f32 %v364_v10, %v3352_v57  ;;  %v397_v39 = vmul.f32 %v5409_v14, %v3385_v40  ;;  %v5413_v57 = vld [vmem:[#allocation46_spill] sm:$0xff] }
  0x62   :  { %5408 = vst [vmem:[#allocation22_spill] sm:$0xff] %v3415_v41  ;;  %v3421_v52 = vpop.eup %2219  ;;  %v381_v32 = vadd.f32 %v365_v60, %v3355_v12  ;;  %v382_v49 = vadd.f32 %v366_v36, %v3358_v19  ;;  %v383_v42 = vadd.f32 %v367_v26, %v3361_v16  ;;  %v398_v37 = vmul.f32 %v5411_v11, %v3385_v40  ;;  %v5415_v19 = vld [vmem:[#allocation47_spill] sm:$0xff]  ;;  %v5417_v11 = vld [vmem:[#allocation48_spill] sm:$0xff] }
  0x63   :  { %5410 = vst [vmem:[#allocation23_spill] sm:$0xff] %v3421_v52  ;;  %v3428_v41 = vpop.eup %2221  ;;  %v384_v18 = vadd.f32 %v368_v53, %v350_v22  ;;  %v385_v9 = vadd.f32 %v369_v51, %v351_v24  ;;  %v386_v63 = vadd.f32 %v370_v54, %v352_v61  ;;  %v399_v10 = vmul.f32 %v5413_v57, %v3385_v40  ;;  %v5419_v54 = vld [vmem:[#allocation49_spill] sm:$0xff] }
  0x64   :  { %5412 = vst [vmem:[#allocation24_spill] sm:$0xff] %v3428_v41  ;;  %v3432_v14 = vpop.eup %2223  ;;  %v387_v52 = vadd.f32 %v371_v29, %v353_v13  ;;  %v388_v31 = vadd.f32 %v372_v35, %v354_v47  ;;  %v389_v12 = vadd.f32 %v373_v21, %v355_v23  ;;  %v400_v60 = vmul.f32 %v5415_v19, %v3385_v40  ;;  %v5421_v35 = vld [vmem:[#allocation50_spill] sm:$0xff] }
  0x65   :  { %5414 = vst [vmem:[#allocation25_spill] sm:$0xff] %v3432_v14  ;;  %v3436_v16 = vpop.eup %2225  ;;  %v390_v36 = vadd.f32 %v374_v56, %v356_v44  ;;  %v391_v26 = vadd.f32 %v375_v34, %v357_v25  ;;  %v401_v22 = vmul.f32 %v5417_v11, %v3385_v40  ;;  %v413_v24 = vadd.f32 %v397_v39, %v379_v46  ;;  %v5422_v44 = vld [vmem:[#allocation51_spill] sm:$0xff]  ;;  %v5423_v34 = vld [vmem:[#allocation52_spill] sm:$0xff] }
  0x66   :  { %5416 = vst [vmem:[#allocation26_spill] sm:$0xff] %v3436_v16  ;;  %v3440_v61 = vpop.eup %2227  ;;  %v392_v53 = vadd.f32 %v376_v48, %v358_v30  ;;  %v393_v51 = vadd.f32 %v377_v27, %v359_v33  ;;  %v402_v13 = vmul.f32 %v5419_v54, %v3385_v40  ;;  %v414_v47 = vadd.f32 %v398_v37, %v380_v17  ;;  %v5424_v30 = vld [vmem:[#allocation53_spill] sm:$0xff]  ;;  %v5425_v48 = vld [vmem:[#allocation54_spill] sm:$0xff]  ;;  %v5426_v39 = vld [vmem:[#allocation55_spill] sm:$0xff] }
  0x67   :  { %5418 = vst [vmem:[#allocation27_spill] sm:$0xff] %v3440_v61  ;;  %v3444_v23 = vpop.eup %2229  ;;  %v394_v29 = vadd.f32 %v378_v55, %v360_v62  ;;  %v403_v21 = vmul.f32 %v5421_v35, %v3385_v40  ;;  %v404_v25 = vmul.f32 %v5422_v44, %v3385_v40  ;;  %v415_v56 = vadd.f32 %v399_v10, %v381_v32  ;;  %v5427_v55 = vld [vmem:[#allocation56_spill] sm:$0xff]  ;;  %v5428_v32 = vld [vmem:[#allocation57_spill] sm:$0xff]  ;;  %v5429_v11 = vld [vmem:[#allocation59_spill] sm:$0xff] }
  0x68   :  { %5420 = vst [vmem:[#allocation28_spill] sm:$0xff] %v3444_v23  ;;  %v405_v46 = vmul.f32 %v5423_v34, %v3385_v40  ;;  %v406_v33 = vmul.f32 %v5424_v30, %v3385_v40  ;;  %v407_v27 = vmul.f32 %v5425_v48, %v3385_v40  ;;  %v416_v17 = vadd.f32 %v400_v60, %v382_v49 }
  0x69   :  { %v408_v62 = vmul.f32 %v5426_v39, %v3385_v40  ;;  %v409_v37 = vmul.f32 %v5427_v55, %v3385_v40  ;;  %v417_v57 = vadd.f32 %v401_v22, %v383_v42  ;;  %v431_v19 = vadd.f32 %v3388_v43, %v413_v24  ;;  %5443 = vst [vmem:[#allocation33_spill] sm:$0xff] %v3624_v59 }
  0x6a   :  { %v410_v10 = vmul.f32 %v5428_v32, %v3385_v40  ;;  %v411_v54 = vmul.f32 %v5429_v11, %v3385_v40  ;;  %v418_v35 = vadd.f32 %v402_v13, %v384_v18  ;;  %v432_v44 = vadd.f32 %v3388_v43, %v414_v47 }
  0x6b   :  { %v412_v49 = vmul.f32 %v3235_v58, %v3385_v40  ;;  %v419_v60 = vadd.f32 %v403_v21, %v385_v9  ;;  %v420_v34 = vadd.f32 %v404_v25, %v386_v63  ;;  %v433_v30 = vadd.f32 %v3388_v43, %v415_v56 }
  0x6c   :  { %v421_v48 = vadd.f32 %v405_v46, %v387_v52  ;;  %v422_v42 = vadd.f32 %v406_v33, %v388_v31  ;;  %v423_v22 = vadd.f32 %v407_v27, %v389_v12  ;;  %v434_v24 = vadd.f32 %v3388_v43, %v416_v17 }
  0x6d   :  { %v424_v39 = vadd.f32 %v408_v62, %v390_v36  ;;  %v425_v23 = vadd.f32 %v409_v37, %v391_v26  ;;  %v435_v61 = vadd.f32 %v3388_v43, %v417_v57  ;;  %v447_v16 = vsub.f32 0.0, %v431_v19 }
  0x6e   :  { %v426_v18 = vadd.f32 %v410_v10, %v392_v53  ;;  %v427_v13 = vadd.f32 %v411_v54, %v393_v51  ;;  %v436_v47 = vadd.f32 %v3388_v43, %v418_v35  ;;  %v448_v14 = vsub.f32 0.0, %v432_v44 }
  0x6f   :  { %v428_v40 = vadd.f32 %v412_v49, %v394_v29  ;;  %v437_v9 = vadd.f32 %v3388_v43, %v419_v60  ;;  %v438_v63 = vadd.f32 %v3388_v43, %v420_v34  ;;  %v449_v52 = vsub.f32 0.0, %v433_v30 }
  0x70   :  { %v439_v31 = vadd.f32 %v3388_v43, %v421_v48  ;;  %v440_v12 = vadd.f32 %v3388_v43, %v422_v42  ;;  %v441_v36 = vadd.f32 %v3388_v43, %v423_v22  ;;  %v450_v26 = vsub.f32 0.0, %v434_v24 }
  0x71   :  { %v442_v53 = vadd.f32 %v3388_v43, %v424_v39  ;;  %v443_v51 = vadd.f32 %v3388_v43, %v425_v23  ;;  %v451_v21 = vsub.f32 0.0, %v435_v61  ;;  %v463_v29 = vmul.f32 1.442695, %v447_v16 }
  0x72   :  { %v444_v25 = vadd.f32 %v3388_v43, %v426_v18  ;;  %v445_v56 = vadd.f32 %v3388_v43, %v427_v13  ;;  %v452_v46 = vsub.f32 0.0, %v436_v47  ;;  %v465_v33 = vmul.f32 1.442695, %v448_v14 }
  0x73   :  { %v446_v27 = vadd.f32 %v3388_v43, %v428_v40  ;;  %v453_v17 = vsub.f32 0.0, %v437_v9  ;;  %v454_v62 = vsub.f32 0.0, %v438_v63  ;;  %v467_v37 = vmul.f32 1.442695, %v449_v52 }
  0x74   :  { %v455_v57 = vsub.f32 0.0, %v439_v31  ;;  %v456_v19 = vsub.f32 0.0, %v440_v12  ;;  %v457_v10 = vsub.f32 0.0, %v441_v36  ;;  %v469_v54 = vmul.f32 1.442695, %v450_v26 }
  0x75   :  { %v458_v35 = vsub.f32 0.0, %v442_v53  ;;  %v459_v23 = vsub.f32 0.0, %v443_v51  ;;  %2231 = vpow2.f32 %v463_v29  ;;  %v471_v16 = vmul.f32 1.442695, %v451_v21  ;;  %v5430_v51 = vld [vmem:[#allocation5_spill] sm:$0xff] }
  0x76   :  { %v460_v61 = vsub.f32 0.0, %v444_v25  ;;  %v461_v44 = vsub.f32 0.0, %v445_v56  ;;  %2233 = vpow2.f32 %v465_v33  ;;  %v473_v49 = vmul.f32 1.442695, %v452_v46  ;;  %v5432_v46 = vld [vmem:[#allocation7_spill] sm:$0xff] }
  0x77   :  { %v462_v60 = vsub.f32 0.0, %v446_v27  ;;  %2235 = vpow2.f32 %v467_v37  ;;  %v475_v14 = vmul.f32 1.442695, %v453_v17  ;;  %v477_v43 = vmul.f32 1.442695, %v454_v62  ;;  %v5433_v27 = vld [vmem:[#allocation8_spill] sm:$0xff] }
  0x78   :  { %2237 = vpow2.f32 %v469_v54  ;;  %v479_v34 = vmul.f32 1.442695, %v455_v57  ;;  %v528_v30 = vstv %s3477_s14  ;;  %v481_v48 = vmul.f32 1.442695, %v456_v19  ;;  %v5434_v37 = vld [vmem:[#allocation9_spill] sm:$0xff]  ;;  %v5435_v19 = vld [vmem:[#allocation10_spill] sm:$0xff] }
  0x79   :  { %2239 = vpow2.f32 %v471_v16  ;;  %v483_v42 = vmul.f32 1.442695, %v457_v10  ;;  %v485_v22 = vmul.f32 1.442695, %v458_v35  ;;  %v487_v24 = vmul.f32 1.442695, %v459_v23 }
  0x7a   :  { %2241 = vpow2.f32 %v473_v49  ;;  %v489_v39 = vmul.f32 1.442695, %v460_v61  ;;  %v491_v18 = vmul.f32 1.442695, %v461_v44  ;;  %v493_v47 = vmul.f32 1.442695, %v462_v60 }
  0x7b   :  { %v2232_v13 = vpop.eup %2231  ;;  %2243 = vpow2.f32 %v475_v14  ;;  %v3488_v40 = vmul.f32 %v528_v30, %v2845_v0  ;;  %v3491_v9 = vmul.f32 %v528_v30, %v2850_v1  ;;  %v3494_v52 = vmul.f32 %v528_v30, %v2855_v2  ;;  %v3538_v23 = vld [vmem:[%s5135_s1 + $0x78] sm:$0xff]  ;;  %v3546_v61 = vld [vmem:[%s5135_s1 + $0x80] sm:$0xff]  ;;  %v3553_v14 = vld [vmem:[%s5135_s1 + $0x88] sm:$0xff]  ;;  %s4447_s14 = sld [smem:[#allocation2 + $0x21]] }
  0x7c   :  { %v2234_v63 = vpop.eup %2233  ;;  %2245 = vpow2.f32 %v477_v43  ;;  %v3497_v31 = vmul.f32 %v528_v30, %v2860_v3  ;;  %v3500_v12 = vmul.f32 %v528_v30, %v2865_v4  ;;  %v3503_v0 = vmul.f32 %v528_v30, %v2870_v5  ;;  %v5431_v5 = vld [vmem:[#allocation6_spill] sm:$0xff] }
  0x7d   :  { %v2236_v36 = vpop.eup %2235  ;;  %2247 = vpow2.f32 %v479_v34  ;;  %v3506_v1 = vmul.f32 %v528_v30, %v2875_v6  ;;  %v3509_v26 = vmul.f32 %v528_v30, %v2880_v7  ;;  %v495_v53 = vadd.f32 1.0, %v2232_v13  ;;  %v3560_v34 = vld [vmem:[%s5135_s1 + $0x90] sm:$0xff] }
  0x7e   :  { %v2238_v2 = vpop.eup %2237  ;;  %2249 = vpow2.f32 %v481_v48  ;;  %v3512_v3 = vmul.f32 %v528_v30, %v2885_v8  ;;  %v3515_v4 = vmul.f32 %v528_v30, %v5430_v51  ;;  %v496_v29 = vadd.f32 1.0, %v2234_v63 }
  0x7f   :  { %v2240_v21 = vpop.eup %2239  ;;  %2251 = vpow2.f32 %v483_v42  ;;  %v3518_v25 = vmul.f32 %v528_v30, %v5431_v5  ;;  %v3521_v6 = vstv %s3484_s9  ;;  %v497_v7 = vadd.f32 1.0, %v2236_v36  ;;  %s4484_s9 = sld [smem:[#allocation2 + $0x25]] }
  0x80   :  { %v2242_v56 = vpop.eup %2241  ;;  %2253 = vpow2.f32 %v485_v22  ;;  %v3524_v33 = vmul.f32 %v528_v30, %v5432_v46  ;;  %v3527_v8 = vmul.f32 %v528_v30, %v5433_v27  ;;  %v498_v62 = vadd.f32 1.0, %v2238_v2  ;;  %v3567_v22 = vld [vmem:[%s5135_s1 + $0x98] sm:$0xff]  ;;  %v5436_v2 = vld [vmem:[#allocation18_spill] sm:$0xff]  ;;  %v3592_v27 = vld [vmem:[%s5135_s1 + $0xc0] sm:$0xff] }
  0x81   :  { %v2244_v17 = vpop.eup %2243  ;;  %2255 = vpow2.f32 %v487_v24  ;;  %v3530_v57 = vmul.f32 %v528_v30, %v5434_v37  ;;  %v3533_v10 = vmul.f32 %v528_v30, %v5435_v19  ;;  %v499_v35 = vadd.f32 1.0, %v2240_v21  ;;  %v5437_v21 = vld [vmem:[#allocation19_spill] sm:$0xff]  ;;  %5438 = vst [vmem:[#allocation29_spill] sm:$0xff] %v3592_v27  ;;  %v5439_v37 = vld [vmem:[#allocation21_spill] sm:$0xff] }
  0x82   :  { %v2246_v54 = vpop.eup %2245  ;;  %2257 = vpow2.f32 %v489_v39  ;;  %v3541_v16 = vmul.f32 %v3538_v23, %v528_v30  ;;  %v547_v44 = vmul.f32 %v3546_v61, %v3521_v6  ;;  %v500_v60 = vadd.f32 1.0, %v2242_v56  ;;  %v3574_v39 = vld [vmem:[%s5135_s1 + $0xa0] sm:$0xff] }
  0x83   :  { %v2248_v49 = vpop.eup %2247  ;;  %2259 = vpow2.f32 %v491_v18  ;;  %v548_v43 = vmul.f32 %v3553_v14, %v3521_v6  ;;  %v549_v30 = vmul.f32 %v3560_v34, %v3521_v6  ;;  %v501_v42 = vadd.f32 1.0, %v2244_v17 }
  0x84   :  { %v2250_v48 = vpop.eup %2249  ;;  %2261 = vpow2.f32 %v493_v47  ;;  %v550_v24 = vmul.f32 %v3567_v22, %v3521_v6  ;;  %v551_v18 = vmul.f32 %v3574_v39, %v3521_v6  ;;  %v502_v63 = vadd.f32 1.0, %v2246_v54  ;;  %v3581_v47 = vld [vmem:[%s5135_s1 + $0xa8] sm:$0xff] }
  0x85   :  { %v2252_v13 = vpop.eup %2251  ;;  %v552_v36 = vmul.f32 %v3581_v47, %v3521_v6  ;;  %v553_v51 = vmul.f32 %v5436_v2, %v3521_v6  ;;  %v554_v5 = vmul.f32 %v5437_v21, %v3521_v6  ;;  %v503_v46 = vadd.f32 1.0, %v2248_v49  ;;  %v3610_v21 = vld [vmem:[%s5135_s1 + $0xd8] sm:$0xff] }
  0x86   :  { %v2254_v56 = vpop.eup %2253  ;;  %2263 = vrcp.f32 %v495_v53  ;;  %v555_v17 = vmul.f32 %v3592_v27, %v3521_v6  ;;  %v556_v19 = vmul.f32 %v5439_v37, %v3521_v6  ;;  %v504_v2 = vadd.f32 1.0, %v2250_v48  ;;  %v3603_v53 = vld [vmem:[%s5135_s1 + $0xd0] sm:$0xff]  ;;  %5441 = vst [vmem:[#allocation31_spill] sm:$0xff] %v3610_v21 }
  0x87   :  { %v2256_v54 = vpop.eup %2255  ;;  %2265 = vrcp.f32 %v496_v29  ;;  %5440 = vst [vmem:[#allocation30_spill] sm:$0xff] %v3603_v53  ;;  %v557_v49 = vmul.f32 %v3603_v53, %v3521_v6  ;;  %v558_v37 = vmul.f32 %v3610_v21, %v3521_v6  ;;  %v505_v15 = vadd.f32 1.0, %v2252_v13  ;;  %v3617_v29 = vld [vmem:[%s5135_s1 + $0xe0] sm:$0xff] }
  0x88   :  { %v2258_v41 = vpop.eup %2257  ;;  %2267 = vrcp.f32 %v497_v7  ;;  %5442 = vst [vmem:[#allocation32_spill] sm:$0xff] %v3617_v29  ;;  %v559_v48 = vmul.f32 %v3617_v29, %v3521_v6  ;;  %v560_v20 = vmul.f32 %v3624_v59, %v3521_v6  ;;  %v506_v50 = vadd.f32 1.0, %v2254_v56  ;;  %v3631_v7 = vld [vmem:[%s5135_s1 + $0xf0] sm:$0xff] }
  0x89   :  { %v2260_v45 = vpop.eup %2259  ;;  %2269 = vrcp.f32 %v498_v62  ;;  %5444 = vst [vmem:[#allocation34_spill] sm:$0xff] %v3631_v7  ;;  %v561_v13 = vmul.f32 %v3631_v7, %v3521_v6  ;;  %v562_v38 = vmul.f32 %v3638_v28, %v3521_v6  ;;  %v507_v29 = vadd.f32 1.0, %v2256_v54 }
  0x8a   :  { %v2262_v59 = vpop.eup %2261  ;;  %2271 = vrcp.f32 %v499_v35  ;;  %v3643_v62 = vadd.f32 %v547_v44, %v3488_v40  ;;  %v3646_v56 = vadd.f32 %v548_v43, %v3491_v9  ;;  %v508_v21 = vadd.f32 1.0, %v2258_v41 }
  0x8b   :  { %2273 = vrcp.f32 %v500_v60  ;;  %v3649_v7 = vadd.f32 %v549_v30, %v3494_v52  ;;  %v3652_v53 = vadd.f32 %v550_v24, %v3497_v31  ;;  %v509_v6 = vadd.f32 1.0, %v2260_v45 }
  0x8c   :  { %v3654_v27 = vpop.eup %2263  ;;  %2275 = vrcp.f32 %v501_v42  ;;  %v3657_v35 = vadd.f32 %v551_v18, %v3500_v12  ;;  %v3660_v40 = vadd.f32 %v552_v36, %v3503_v0  ;;  %v510_v41 = vadd.f32 1.0, %v2262_v59  ;;  %v3734_v42 = vld [vmem:[%s5135_s1 + $0x120] sm:$0xff]  ;;  %v3740_v18 = vld [vmem:[%s5135_s1 + $0x128] sm:$0xff] }
  0x8d   :  { %5445 = vst [vmem:[#allocation35_spill] sm:$0xff] %v3654_v27  ;;  %v3662_v9 = vpop.eup %2265  ;;  %2277 = vrcp.f32 %v502_v63  ;;  %v3665_v52 = vadd.f32 %v553_v51, %v3506_v1  ;;  %v3668_v31 = vadd.f32 %v554_v5, %v3509_v26  ;;  %v3675_v12 = vadd.f32 %v555_v17, %v3512_v3  ;;  %v3748_v51 = vld [vmem:[%s5135_s1 + $0x130] sm:$0xff] }
  0x8e   :  { %5446 = vst [vmem:[#allocation36_spill] sm:$0xff] %v3662_v9  ;;  %v3672_v45 = vpop.eup %2267  ;;  %2279 = vrcp.f32 %v503_v46  ;;  %v3678_v0 = vadd.f32 %v556_v19, %v3515_v4  ;;  %v580_v44 = vstv %s3598_s24  ;;  %v3684_v1 = vadd.f32 %v557_v49, %v3518_v25  ;;  %v3754_v46 = vld [vmem:[%s5135_s1 + $0x138] sm:$0xff]  ;;  %v3760_v19 = vld [vmem:[%s5135_s1 + $0x140] sm:$0xff]  ;;  %v3768_v49 = vld [vmem:[%s5135_s1 + $0x148] sm:$0xff] }
  0x8f   :  { %5447 = vst [vmem:[#allocation37_spill] sm:$0xff] %v3672_v45  ;;  %v3681_v59 = vpop.eup %2269  ;;  %2281 = vrcp.f32 %v504_v2  ;;  %v3687_v26 = vadd.f32 %v558_v37, %v3524_v33  ;;  %v3690_v60 = vadd.f32 %v559_v48, %v3527_v8  ;;  %v3695_v3 = vadd.f32 %v560_v20, %v3530_v57  ;;  %v3708_v33 = vld [vmem:[%s5135_s1 + $0x100] sm:$0xff]  ;;  %v3714_v20 = vld [vmem:[%s5135_s1 + $0x108] sm:$0xff]  ;;  %v3774_v37 = vld [vmem:[%s5135_s1 + $0x150] sm:$0xff] }
  0x90   :  { %5448 = vst [vmem:[#allocation38_spill] sm:$0xff] %v3681_v59  ;;  %v3692_v43 = vpop.eup %2271  ;;  %2283 = vrcp.f32 %v505_v15  ;;  %v3698_v4 = vadd.f32 %v561_v13, %v3533_v10  ;;  %v3701_v30 = vadd.f32 %v562_v38, %v3541_v16  ;;  %v581_v8 = vmul.f32 %v3708_v33, %v580_v44  ;;  %v3720_v38 = vld [vmem:[%s5135_s1 + $0x110] sm:$0xff]  ;;  %v3728_v10 = vld [vmem:[%s5135_s1 + $0x118] sm:$0xff] }
  0x91   :  { %5449 = vst [vmem:[#allocation39_spill] sm:$0xff] %v3692_v43  ;;  %v3703_v25 = vpop.eup %2273  ;;  %2285 = vrcp.f32 %v506_v50  ;;  %v582_v15 = vmul.f32 %v3714_v20, %v580_v44  ;;  %v583_v50 = vmul.f32 %v3720_v38, %v580_v44  ;;  %v584_v16 = vmul.f32 %v3728_v10, %v580_v44  ;;  %v3780_v48 = vld [vmem:[%s5135_s1 + $0x158] sm:$0xff]  ;;  %v3802_v43 = vld [vmem:[%s5135_s1 + $0x170] sm:$0xff] }
  0x92   :  { %5450 = vst [vmem:[#allocation40_spill] sm:$0xff] %v3703_v25  ;;  %v3723_v57 = vpop.eup %2275  ;;  %2287 = vrcp.f32 %v507_v29  ;;  %v585_v24 = vmul.f32 %v3734_v42, %v580_v44  ;;  %v586_v63 = vmul.f32 %v3740_v18, %v580_v44  ;;  %v587_v5 = vmul.f32 %v3748_v51, %v580_v44  ;;  %v3811_v9 = vld [vmem:[%s5135_s1 + $0x178] sm:$0xff] }
  0x93   :  { %5451 = vst [vmem:[#allocation41_spill] sm:$0xff] %v3723_v57  ;;  %v3743_v36 = vpop.eup %2277  ;;  %2289 = vrcp.f32 %v508_v21  ;;  %v588_v17 = vmul.f32 %v3754_v46, %v580_v44  ;;  %v589_v54 = vmul.f32 %v3760_v19, %v580_v44  ;;  %v590_v21 = vmul.f32 %v3768_v49, %v580_v44  ;;  %v3796_v57 = vld [vmem:[%s5135_s1 + $0x168] sm:$0xff] }
  0x94   :  { %5452 = vst [vmem:[#allocation42_spill] sm:$0xff] %v3743_v36  ;;  %v3763_v2 = vpop.eup %2279  ;;  %2291 = vrcp.f32 %v509_v6  ;;  %v591_v29 = vmul.f32 %v3774_v37, %v580_v44  ;;  %v592_v13 = vmul.f32 %v3780_v48, %v580_v44  ;;  %v594_v25 = vmul.f32 %v3796_v57, %v580_v44 }
  0x95   :  { %5453 = vst [vmem:[#allocation43_spill] sm:$0xff] %v3754_v46  ;;  %v3785_v6 = vpop.eup %2281  ;;  %v614_v59 = vstv %s3670_s10  ;;  %2293 = vrcp.f32 %v510_v41  ;;  %v596_v27 = vmul.f32 %v3811_v9, %v580_v44  ;;  %v3824_v41 = vld [vmem:[%s5135_s1 + $0x180] sm:$0xff]  ;;  %s4741_s10 = sld [smem:[#allocation2 + $0x17]] }
  0x96   :  { %5454 = vst [vmem:[#allocation44_spill] sm:$0xff] %v3760_v19  ;;  %v3806_v45 = vpop.eup %2283 }
  0x97   :  { %5455 = vst [vmem:[#allocation45_spill] sm:$0xff] %v3763_v2  ;;  %v3790_v2 = vld [vmem:[%s5135_s1 + $0x160] sm:$0xff] }
  0x98   :  { %5456 = vst [vmem:[#allocation46_spill] sm:$0xff] %v3768_v49  ;;  %v593_v36 = vmul.f32 %v3790_v2, %v580_v44  ;;  %v615_v49 = vmul.f32 %v3824_v41, %v614_v59 }
  0x99   :  { %5457 = vst [vmem:[#allocation47_spill] sm:$0xff] %v3774_v37  ;;  %v599_v37 = vadd.f32 %v583_v50, %v3649_v7  ;;  %v606_v50 = vadd.f32 %v590_v21, %v3678_v0  ;;  %v3857_v0 = vld [vmem:[%s5135_s1 + $0x198] sm:$0xff]  ;;  %v648_v21 = vstv %s3783_s6  ;;  %s4359_s6 = sld [smem:[#allocation2 + $0x19]] }
  0x9a   :  { %5458 = vst [vmem:[#allocation48_spill] sm:$0xff] %v3780_v48  ;;  %v3816_v48 = vpop.eup %2285 }
  0x9b   :  { %5459 = vst [vmem:[#allocation49_spill] sm:$0xff] %v3785_v6  ;;  %v595_v6 = vmul.f32 %v3802_v43, %v580_v44  ;;  %v3827_v44 = vpop.eup %2287 }
  0x9c   :  { %5460 = vst [vmem:[#allocation50_spill] sm:$0xff] %v3790_v2  ;;  %v598_v2 = vadd.f32 %v582_v15, %v3646_v56  ;;  %v603_v56 = vadd.f32 %v587_v5, %v3665_v52  ;;  %v605_v15 = vadd.f32 %v589_v54, %v3675_v12  ;;  %v610_v12 = vadd.f32 %v594_v25, %v3695_v3  ;;  %v3873_v25 = vld [vmem:[%s5135_s1 + $0x1a8] sm:$0xff] }
  0x9d   :  { %5461 = vst [vmem:[#allocation51_spill] sm:$0xff] %v3796_v57  ;;  %v597_v57 = vadd.f32 %v581_v8, %v3643_v62  ;;  %v602_v62 = vadd.f32 %v586_v63, %v3660_v40  ;;  %v604_v8 = vadd.f32 %v588_v17, %v3668_v31  ;;  %v3846_v40 = vld [vmem:[%s5135_s1 + $0x190] sm:$0xff]  ;;  %v609_v63 = vadd.f32 %v593_v36, %v3690_v60 }
  0x9e   :  { %5462 = vst [vmem:[#allocation52_spill] sm:$0xff] %v3802_v43  ;;  %v600_v43 = vadd.f32 %v584_v16, %v3652_v53  ;;  %v3835_v53 = vld [vmem:[%s5135_s1 + $0x188] sm:$0xff]  ;;  %v607_v16 = vadd.f32 %v591_v29, %v3684_v1  ;;  %v617_v52 = vmul.f32 %v3846_v40, %v614_v59  ;;  %v618_v1 = vmul.f32 %v3857_v0, %v614_v59  ;;  %v3892_v29 = vld [vmem:[%s5135_s1 + $0x1c0] sm:$0xff] }
  0x9f   :  { %5463 = vst [vmem:[#allocation53_spill] sm:$0xff] %v3806_v45  ;;  %v601_v45 = vadd.f32 %v585_v24, %v3657_v35  ;;  %v616_v7 = vmul.f32 %v3835_v53, %v614_v59  ;;  %v3838_v35 = vpop.eup %2289  ;;  %v608_v24 = vadd.f32 %v592_v13, %v3687_v26  ;;  %v611_v5 = vadd.f32 %v595_v6, %v3698_v4  ;;  %v3865_v26 = vld [vmem:[%s5135_s1 + $0x1a0] sm:$0xff]  ;;  %v3898_v6 = vld [vmem:[%s5135_s1 + $0x1c8] sm:$0xff] }
  0xa0   :  { %5464 = vst [vmem:[#allocation54_spill] sm:$0xff] %v3811_v9  ;;  %v3849_v31 = vpop.eup %2291  ;;  %v612_v17 = vadd.f32 %v596_v27, %v3701_v30  ;;  %v619_v60 = vmul.f32 %v3865_v26, %v614_v59  ;;  %v631_v36 = vadd.f32 %v615_v49, %v597_v57  ;;  %v620_v54 = vmul.f32 %v3873_v25, %v614_v59  ;;  %v3879_v27 = vld [vmem:[%s5135_s1 + $0x1b0] sm:$0xff]  ;;  %v3886_v57 = vld [vmem:[%s5135_s1 + $0x1b8] sm:$0xff] }
  0xa1   :  { %5465 = vst [vmem:[#allocation55_spill] sm:$0xff] %v3816_v48  ;;  %v3868_v3 = vpop.eup %2293  ;;  %v621_v4 = vmul.f32 %v3879_v27, %v614_v59  ;;  %v632_v30 = vadd.f32 %v616_v7, %v598_v2  ;;  %v622_v49 = vmul.f32 %v3886_v57, %v614_v59  ;;  %v623_v13 = vmul.f32 %v3892_v29, %v614_v59 }
  0xa2   :  { %5466 = vst [vmem:[#allocation56_spill] sm:$0xff] %v3824_v41  ;;  %v624_v2 = vmul.f32 %v3898_v6, %v614_v59  ;;  %v633_v7 = vadd.f32 %v617_v52, %v599_v37  ;;  %v627_v48 = vmul.f32 %v5427_v55, %v614_v59  ;;  %v629_v37 = vmul.f32 %v5429_v11, %v614_v59 }
  0xa3   :  { %5467 = vst [vmem:[#allocation57_spill] sm:$0xff] %v3827_v44  ;;  %v635_v52 = vadd.f32 %v619_v60, %v601_v45 }
  0xa4   :  { %5468 = vst [vmem:[#allocation59_spill] sm:$0xff] %v3835_v53  ;;  %v640_v53 = vadd.f32 %v624_v2, %v606_v50  ;;  %v651_v41 = vadd.f32 %v648_v21, %v633_v7  ;;  %v643_v19 = vadd.f32 %v627_v48, %v609_v63 }
  0xa5   :  { %5469 = vst [vmem:[#allocation5_spill] sm:$0xff] %v3838_v35  ;;  %v3910_v35 = vld [vmem:[%s5135_s1 + $0x1d8] sm:$0xff]  ;;  %v653_v11 = vadd.f32 %v648_v21, %v635_v52 }
  0xa6   :  { %5470 = vst [vmem:[#allocation6_spill] sm:$0xff] %v3846_v40  ;;  %v626_v44 = vmul.f32 %v3910_v35, %v614_v59  ;;  %v639_v40 = vadd.f32 %v623_v13, %v605_v15  ;;  %v667_v15 = vsub.f32 0.0, %v651_v41 }
  0xa7   :  { %5471 = vst [vmem:[#allocation7_spill] sm:$0xff] %v3849_v31 }
  0xa8   :  { %5472 = vst [vmem:[#allocation8_spill] sm:$0xff] %v3857_v0  ;;  %v638_v0 = vadd.f32 %v622_v49, %v604_v8  ;;  %v658_v8 = vadd.f32 %v648_v21, %v640_v53 }
  0xa9   :  { %5473 = vst [vmem:[#allocation9_spill] sm:$0xff] %v3865_v26  ;;  %v650_v26 = vadd.f32 %v648_v21, %v632_v30 }
  0xaa   :  { %5474 = vst [vmem:[#allocation10_spill] sm:$0xff] %v3868_v3  ;;  %v3904_v3 = vld [vmem:[%s5135_s1 + $0x1d0] sm:$0xff] }
  0xab   :  { %5475 = vst [vmem:[#allocation18_spill] sm:$0xff] %v3873_v25  ;;  %v625_v31 = vmul.f32 %v3904_v3, %v614_v59  ;;  %v636_v25 = vadd.f32 %v620_v54, %v602_v62  ;;  %v656_v62 = vadd.f32 %v648_v21, %v638_v0  ;;  %v685_v0 = vmul.f32 1.442695, %v667_v15 }
  0xac   :  { %5476 = vst [vmem:[#allocation19_spill] sm:$0xff] %v3879_v27  ;;  %v630_v27 = vmul.f32 %v3235_v58, %v614_v59 }
  0xad   :  { %5477 = vst [vmem:[#allocation21_spill] sm:$0xff] %v3886_v57  ;;  %v649_v57 = vadd.f32 %v648_v21, %v631_v36  ;;  %v641_v9 = vadd.f32 %v625_v31, %v607_v16  ;;  %v654_v60 = vadd.f32 %v648_v21, %v636_v25  ;;  %v661_v16 = vadd.f32 %v648_v21, %v643_v19 }
  0xae   :  { %5478 = vst [vmem:[#allocation60_spill] sm:$0xff] %v3892_v29  ;;  %v634_v29 = vadd.f32 %v618_v1, %v600_v43  ;;  %v645_v43 = vadd.f32 %v629_v37, %v611_v5  ;;  %v646_v1 = vadd.f32 %v630_v27, %v612_v17  ;;  %v672_v25 = vsub.f32 0.0, %v656_v62 }
  0xaf   :  { %5479 = vst [vmem:[#allocation61_spill] sm:$0xff] %v3898_v6  ;;  %v628_v6 = vmul.f32 %v5428_v32, %v614_v59  ;;  %v665_v45 = vsub.f32 0.0, %v649_v57  ;;  %v666_v59 = vsub.f32 0.0, %v650_v26  ;;  %v659_v50 = vadd.f32 %v648_v21, %v641_v9 }
  0xb0   :  { %5480 = vst [vmem:[#allocation62_spill] sm:$0xff] %v3904_v3  ;;  %v637_v3 = vadd.f32 %v621_v4, %v603_v56  ;;  %v652_v55 = vadd.f32 %v648_v21, %v634_v29  ;;  %v657_v56 = vadd.f32 %v648_v21, %v639_v40  ;;  %v663_v31 = vadd.f32 %v648_v21, %v645_v43  ;;  %v2785_v29 = vld [vmem:[%s5135_s1] sm:$0xff] }
  0xb1   :  { %5481 = vst [vmem:[#allocation63_spill] sm:$0xff] %v3910_v35  ;;  %v642_v35 = vadd.f32 %v626_v44, %v608_v24  ;;  %v644_v32 = vadd.f32 %v628_v6, %v610_v12  ;;  %v669_v24 = vsub.f32 0.0, %v653_v11  ;;  %v681_v63 = vmul.f32 1.442695, %v665_v45  ;;  %v2786_v11 = vld [vmem:[%s5135_s1 + $0x8] sm:$0xff] }
  0xb2   :  { %v655_v58 = vadd.f32 %v648_v21, %v637_v3  ;;  %v668_v44 = vsub.f32 0.0, %v652_v55  ;;  %v664_v12 = vadd.f32 %v648_v21, %v646_v1  ;;  %v670_v5 = vsub.f32 0.0, %v654_v60  ;;  %v2787_v60 = vld [vmem:[%s5135_s1 + $0x10] sm:$0xff] }
  0xb3   :  { %v660_v36 = vadd.f32 %v648_v21, %v642_v35  ;;  %v662_v48 = vadd.f32 %v648_v21, %v644_v32  ;;  %v683_v17 = vmul.f32 1.442695, %v666_v59  ;;  %v673_v3 = vsub.f32 0.0, %v657_v56  ;;  %v2788_v59 = vld [vmem:[%s5135_s1 + $0x18] sm:$0xff]  ;;  %v2789_v56 = vld [vmem:[%s5135_s1 + $0x20] sm:$0xff] }
  0xb4   :  { %v671_v54 = vsub.f32 0.0, %v655_v58  ;;  %v674_v26 = vsub.f32 0.0, %v658_v8  ;;  %v675_v40 = vsub.f32 0.0, %v659_v50  ;;  %v687_v41 = vmul.f32 1.442695, %v668_v44  ;;  %v2790_v50 = vld [vmem:[%s5135_s1 + $0x28] sm:$0xff] }
  0xb5   :  { %v676_v53 = vsub.f32 0.0, %v660_v36  ;;  %v3920_v9 = vstv %s3917_s30  ;;  %v677_v19 = vsub.f32 0.0, %v661_v16  ;;  %v678_v35 = vsub.f32 0.0, %v662_v48  ;;  %v2791_v16 = vld [vmem:[%s5135_s1 + $0x30] sm:$0xff]  ;;  %v2792_v48 = vld [vmem:[%s5135_s1 + $0x38] sm:$0xff]  ;;  %s4494_s30 = sld [smem:[#allocation2 + $0x16]] }
  0xb6   :  { %2295 = vpow2.f32 %v681_v63  ;;  %v689_v27 = vmul.f32 1.442695, %v669_v24  ;;  %v679_v4 = vsub.f32 0.0, %v663_v31  ;;  %v680_v30 = vsub.f32 0.0, %v664_v12  ;;  %v2793_v63 = vld [vmem:[%s5135_s1 + $0x40] sm:$0xff] }
  0xb7   :  { %2297 = vpow2.f32 %v683_v17  ;;  %v691_v21 = vmul.f32 1.442695, %v670_v5  ;;  %v693_v57 = vmul.f32 1.442695, %v671_v54  ;;  %v695_v49 = vmul.f32 1.442695, %v672_v25 }
  0xb8   :  { %2299 = vpow2.f32 %v685_v0  ;;  %v3928_v13 = vmul.f32 %v2785_v29, %v3920_v9  ;;  %v697_v6 = vmul.f32 1.442695, %v673_v3  ;;  %v699_v2 = vmul.f32 1.442695, %v674_v26  ;;  %v2794_v5 = vld [vmem:[%s5135_s1 + $0x48] sm:$0xff]  ;;  %v2795_v17 = vld [vmem:[%s5135_s1 + $0x50] sm:$0xff] }
  0xb9   :  { %2301 = vpow2.f32 %v687_v41  ;;  %v701_v7 = vmul.f32 1.442695, %v675_v40  ;;  %v703_v37 = vmul.f32 1.442695, %v676_v53  ;;  %v705_v52 = vmul.f32 1.442695, %v677_v19 }
  0xba   :  { %2303 = vpow2.f32 %v689_v27  ;;  %v707_v55 = vmul.f32 1.442695, %v678_v35  ;;  %v709_v32 = vmul.f32 1.442695, %v679_v4  ;;  %v711_v43 = vmul.f32 1.442695, %v680_v30 }
  0xbb   :  { %2305 = vpow2.f32 %v691_v21  ;;  %v3936_v45 = vmul.f32 %v2786_v11, %v3920_v9  ;;  %v3942_v58 = vmul.f32 %v2787_v60, %v3920_v9  ;;  %v3948_v62 = vmul.f32 %v2788_v59, %v3920_v9  ;;  %v2796_v0 = vld [vmem:[%s5135_s1 + $0x58] sm:$0xff]  ;;  %v2797_v35 = vld [vmem:[%s5135_s1 + $0x60] sm:$0xff]  ;;  %v2798_v4 = vld [vmem:[%s5135_s1 + $0x68] sm:$0xff] }
  0xbc   :  { %v2296_v1 = vpop.eup %2295  ;;  %2307 = vpow2.f32 %v693_v57  ;;  %v3954_v8 = vmul.f32 %v2789_v56, %v3920_v9  ;;  %v3960_v36 = vmul.f32 %v2790_v50, %v3920_v9  ;;  %v3966_v44 = vmul.f32 %v2791_v16, %v3920_v9 }
  0xbd   :  { %v2298_v15 = vpop.eup %2297  ;;  %2309 = vpow2.f32 %v695_v49  ;;  %v3972_v31 = vmul.f32 %v2792_v48, %v3920_v9  ;;  %v3978_v12 = vmul.f32 %v2793_v63, %v3920_v9  ;;  %v3984_v54 = vmul.f32 %v2794_v5, %v3920_v9  ;;  %v2799_v49 = vld [vmem:[%s5135_s1 + $0x70] sm:$0xff] }
  0xbe   :  { %v2300_v24 = vpop.eup %2299  ;;  %2311 = vpow2.f32 %v697_v6  ;;  %v3990_v25 = vmul.f32 %v2795_v17, %v3920_v9  ;;  %v713_v26 = vadd.f32 1.0, %v2296_v1  ;;  %v3996_v40 = vmul.f32 %v2796_v0, %v3920_v9  ;;  %v5483_v17 = vld [vmem:[#allocation30_spill] sm:$0xff]  ;;  %v5484_v0 = vld [vmem:[#allocation31_spill] sm:$0xff] }
  0xbf   :  { %v2302_v3 = vpop.eup %2301  ;;  %2313 = vpow2.f32 %v699_v2  ;;  %v764_v53 = vstv %s3922_s26  ;;  %v714_v19 = vadd.f32 1.0, %v2298_v15  ;;  %v4003_v27 = vmul.f32 %v2797_v35, %v3920_v9  ;;  %s4617_s26 = sld [smem:[#allocation2 + $0x1e]] }
  0xc0   :  { %v2304_v41 = vpop.eup %2303  ;;  %2315 = vpow2.f32 %v701_v7  ;;  %v4009_v30 = vmul.f32 %v2798_v4, %v3920_v9  ;;  %v715_v57 = vadd.f32 1.0, %v2300_v24  ;;  %v4015_v29 = vmul.f32 %v2799_v49, %v3920_v9 }
  0xc1   :  { %v2306_v21 = vpop.eup %2305  ;;  %2317 = vpow2.f32 %v703_v37  ;;  %v4019_v6 = vmul.f32 %v3538_v23, %v3920_v9  ;;  %v716_v7 = vadd.f32 1.0, %v2302_v3  ;;  %v765_v11 = vmul.f32 %v3546_v61, %v764_v53 }
  0xc2   :  { %v2308_v2 = vpop.eup %2307  ;;  %2319 = vpow2.f32 %v705_v52  ;;  %v4023_v1 = vstv %s3930_s15  ;;  %v717_v60 = vadd.f32 1.0, %v2304_v41  ;;  %v766_v59 = vmul.f32 %v3553_v14, %v764_v53  ;;  %s4690_s15 = sld [smem:[#allocation2 + $0x26]] }
  0xc3   :  { %v2310_v37 = vpop.eup %2309  ;;  %2321 = vpow2.f32 %v707_v55  ;;  %v767_v56 = vmul.f32 %v3560_v34, %v764_v53  ;;  %v718_v50 = vadd.f32 1.0, %v2306_v21  ;;  %v768_v23 = vmul.f32 %v3567_v22, %v764_v53  ;;  %v2800_v55 = vld [vmem:[%s5135_s1 + $0xb0] sm:$0xff]  ;;  %v2801_v34 = vld [vmem:[%s5135_s1 + $0xb8] sm:$0xff]  ;;  %v5482_v22 = vld [vmem:[#allocation29_spill] sm:$0xff] }
  0xc4   :  { %v2312_v15 = vpop.eup %2311  ;;  %2323 = vpow2.f32 %v709_v32  ;;  %v769_v9 = vmul.f32 %v3574_v39, %v764_v53  ;;  %v719_v16 = vadd.f32 1.0, %v2308_v2  ;;  %v770_v61 = vmul.f32 %v3581_v47, %v764_v53  ;;  %v2802_v39 = vld [vmem:[%s5135_s1 + $0xc8] sm:$0xff]  ;;  %v5485_v21 = vld [vmem:[#allocation32_spill] sm:$0xff]  ;;  %v5486_v2 = vld [vmem:[#allocation33_spill] sm:$0xff] }
  0xc5   :  { %v2314_v52 = vpop.eup %2313  ;;  %2325 = vpow2.f32 %v711_v43  ;;  %v771_v48 = vmul.f32 %v2800_v55, %v764_v53  ;;  %v720_v24 = vadd.f32 1.0, %v2310_v37  ;;  %v772_v32 = vmul.f32 %v2801_v34, %v764_v53 }
  0xc6   :  { %v2316_v14 = vpop.eup %2315  ;;  %v773_v63 = vmul.f32 %v5482_v22, %v764_v53  ;;  %v774_v43 = vmul.f32 %v2802_v39, %v764_v53  ;;  %v721_v5 = vadd.f32 1.0, %v2312_v15  ;;  %2327 = vrcp.f32 %v713_v26  ;;  %v5487_v22 = vld [vmem:[#allocation34_spill] sm:$0xff] }
  0xc7   :  { %v2318_v47 = vpop.eup %2317  ;;  %v775_v3 = vmul.f32 %v5483_v17, %v764_v53  ;;  %v776_v41 = vmul.f32 %v5484_v0, %v764_v53  ;;  %v722_v4 = vadd.f32 1.0, %v2314_v52  ;;  %2329 = vrcp.f32 %v714_v19 }
  0xc8   :  { %v2320_v35 = vpop.eup %2319  ;;  %v777_v49 = vmul.f32 %v5485_v21, %v764_v53  ;;  %v778_v37 = vmul.f32 %v5486_v2, %v764_v53  ;;  %v723_v34 = vadd.f32 1.0, %v2316_v14  ;;  %2331 = vrcp.f32 %v715_v57 }
  0xc9   :  { %v2322_v55 = vpop.eup %2321  ;;  %v779_v46 = vmul.f32 %v5487_v22, %v764_v53  ;;  %v780_v39 = vmul.f32 %v3638_v28, %v764_v53  ;;  %v724_v26 = vadd.f32 1.0, %v2318_v47  ;;  %2333 = vrcp.f32 %v716_v7  ;;  %v5498_v47 = vld [vmem:[#allocation51_spill] sm:$0xff] }
  0xca   :  { %v2324_v15 = vpop.eup %2323  ;;  %v781_v17 = vadd.f32 %v765_v11, %v3928_v13  ;;  %v782_v0 = vadd.f32 %v766_v59, %v3936_v45  ;;  %v725_v19 = vadd.f32 1.0, %v2320_v35  ;;  %2335 = vrcp.f32 %v717_v60 }
  0xcb   :  { %v2326_v52 = vpop.eup %2325  ;;  %v783_v21 = vadd.f32 %v767_v56, %v3942_v58  ;;  %v784_v2 = vadd.f32 %v768_v23, %v3948_v62  ;;  %v726_v14 = vadd.f32 1.0, %v2322_v55  ;;  %2337 = vrcp.f32 %v718_v50 }
  0xcc   :  { %v785_v57 = vadd.f32 %v769_v9, %v3954_v8  ;;  %v786_v28 = vadd.f32 %v770_v61, %v3960_v36  ;;  %v4052_v53 = vpop.eup %2327  ;;  %v727_v7 = vadd.f32 1.0, %v2324_v15  ;;  %2339 = vrcp.f32 %v719_v16  ;;  %v5491_v9 = vld [vmem:[#allocation44_spill] sm:$0xff] }
  0xcd   :  { %v787_v13 = vadd.f32 %v771_v48, %v3966_v44  ;;  %v788_v45 = vadd.f32 %v772_v32, %v3972_v31  ;;  %v4058_v11 = vpop.eup %2329  ;;  %v728_v58 = vadd.f32 1.0, %v2326_v52  ;;  %2341 = vrcp.f32 %v720_v24  ;;  %v5495_v24 = vld [vmem:[#allocation48_spill] sm:$0xff] }
  0xce   :  { %v789_v62 = vadd.f32 %v773_v63, %v3978_v12  ;;  %v790_v8 = vadd.f32 %v774_v43, %v3984_v54  ;;  %v4062_v60 = vpop.eup %2331  ;;  %2343 = vrcp.f32 %v721_v5  ;;  %v791_v36 = vadd.f32 %v775_v3, %v3990_v25  ;;  %v5499_v3 = vld [vmem:[#allocation52_spill] sm:$0xff] }
  0xcf   :  { %v792_v59 = vadd.f32 %v776_v41, %v3996_v40  ;;  %v793_v44 = vadd.f32 %v777_v49, %v4003_v27  ;;  %v4067_v31 = vpop.eup %2333  ;;  %2345 = vrcp.f32 %v722_v4  ;;  %v794_v56 = vadd.f32 %v778_v37, %v4009_v30  ;;  %v5501_v49 = vld [vmem:[#allocation54_spill] sm:$0xff] }
  0xd0   :  { %v795_v50 = vadd.f32 %v779_v46, %v4015_v29  ;;  %v796_v12 = vadd.f32 %v780_v39, %v4019_v6  ;;  %v4072_v23 = vpop.eup %2335  ;;  %2347 = vrcp.f32 %v723_v34  ;;  %v799_v54 = vmul.f32 %v3708_v33, %v4023_v1 }
  0xd1   :  { %v800_v25 = vmul.f32 %v3714_v20, %v4023_v1  ;;  %v801_v40 = vmul.f32 %v3720_v38, %v4023_v1  ;;  %v4080_v27 = vpop.eup %2337  ;;  %2349 = vrcp.f32 %v724_v26  ;;  %v802_v46 = vmul.f32 %v3728_v10, %v4023_v1  ;;  %v5490_v38 = vld [vmem:[#allocation43_spill] sm:$0xff]  ;;  %v5503_v26 = vld [vmem:[#allocation56_spill] sm:$0xff] }
  0xd2   :  { %5488 = vst [vmem:[#allocation29_spill] sm:$0xff] %v4080_v27  ;;  %v803_v30 = vmul.f32 %v3734_v42, %v4023_v1  ;;  %v804_v29 = vmul.f32 %v3740_v18, %v4023_v1  ;;  %v4088_v33 = vpop.eup %2339  ;;  %2351 = vrcp.f32 %v725_v19  ;;  %v805_v20 = vmul.f32 %v3748_v51, %v4023_v1  ;;  %v5493_v42 = vld [vmem:[#allocation46_spill] sm:$0xff]  ;;  %v5494_v18 = vld [vmem:[#allocation47_spill] sm:$0xff] }
  0xd3   :  { %5489 = vst [vmem:[#allocation30_spill] sm:$0xff] %v4088_v33  ;;  %v806_v6 = vmul.f32 %v5490_v38, %v4023_v1  ;;  %v807_v16 = vmul.f32 %v5491_v9, %v4023_v1  ;;  %v4096_v10 = vpop.eup %2341  ;;  %2353 = vrcp.f32 %v726_v14  ;;  %v808_v61 = vmul.f32 %v5493_v42, %v4023_v1  ;;  %v5497_v51 = vld [vmem:[#allocation50_spill] sm:$0xff] }
  0xd4   :  { %5492 = vst [vmem:[#allocation31_spill] sm:$0xff] %v4096_v10  ;;  %v809_v48 = vmul.f32 %v5494_v18, %v4023_v1  ;;  %v810_v32 = vmul.f32 %v5495_v24, %v4023_v1  ;;  %v4104_v63 = vpop.eup %2343  ;;  %v811_v43 = vmul.f32 %v5497_v51, %v4023_v1  ;;  %v812_v5 = vmul.f32 %v5498_v47, %v4023_v1 }
  0xd5   :  { %5496 = vst [vmem:[#allocation32_spill] sm:$0xff] %v4104_v63  ;;  %v813_v41 = vmul.f32 %v5499_v3, %v4023_v1  ;;  %v832_v35 = vstv %s4056_s0  ;;  %v4113_v4 = vpop.eup %2345  ;;  %2355 = vrcp.f32 %v727_v7  ;;  %v814_v37 = vmul.f32 %v5501_v49, %v4023_v1  ;;  %v5505_v7 = vld [vmem:[#allocation59_spill] sm:$0xff]  ;;  %v2803_v49 = vld [vmem:[%s5135_s1 + $0x1e0] sm:$0xff]  ;;  %s4918_s0 = sld [smem:[#allocation2 + $0x28]] }
  0xd6   :  { %5500 = vst [vmem:[#allocation33_spill] sm:$0xff] %v4113_v4  ;;  %v815_v55 = vadd.f32 %v799_v54, %v781_v17  ;;  %v816_v34 = vadd.f32 %v800_v25, %v782_v0  ;;  %v4119_v22 = vpop.eup %2347  ;;  %2357 = vrcp.f32 %v728_v58  ;;  %v817_v39 = vadd.f32 %v801_v40, %v783_v21  ;;  %v5507_v54 = vld [vmem:[#allocation6_spill] sm:$0xff]  ;;  %v5509_v40 = vld [vmem:[#allocation8_spill] sm:$0xff] }
  0xd7   :  { %5502 = vst [vmem:[#allocation34_spill] sm:$0xff] %v4119_v22  ;;  %v818_v15 = vadd.f32 %v802_v46, %v784_v2  ;;  %v833_v52 = vmul.f32 %v5503_v26, %v832_v35  ;;  %v4122_v19 = vpop.eup %2349  ;;  %v819_v14 = vadd.f32 %v803_v30, %v785_v57  ;;  %v820_v38 = vadd.f32 %v804_v29, %v786_v28  ;;  %v5510_v28 = vld [vmem:[#allocation9_spill] sm:$0xff] }
  0xd8   :  { %5504 = vst [vmem:[#allocation43_spill] sm:$0xff] %v4122_v19  ;;  %v821_v9 = vadd.f32 %v805_v20, %v787_v13  ;;  %v834_v42 = vmul.f32 %v5505_v7, %v832_v35  ;;  %v4125_v18 = vpop.eup %2351  ;;  %v822_v1 = vadd.f32 %v806_v6, %v788_v45  ;;  %v823_v17 = vadd.f32 %v807_v16, %v789_v62  ;;  %v5512_v62 = vld [vmem:[#allocation18_spill] sm:$0xff]  ;;  %v5513_v20 = vld [vmem:[#allocation19_spill] sm:$0xff] }
  0xd9   :  { %5506 = vst [vmem:[#allocation44_spill] sm:$0xff] %v4125_v18  ;;  %v824_v0 = vadd.f32 %v808_v61, %v790_v8  ;;  %v835_v25 = vmul.f32 %v5507_v54, %v832_v35  ;;  %v4128_v24 = vpop.eup %2353  ;;  %v825_v21 = vadd.f32 %v809_v48, %v791_v36  ;;  %v826_v2 = vadd.f32 %v810_v32, %v792_v59  ;;  %v5515_v36 = vld [vmem:[#allocation21_spill] sm:$0xff]  ;;  %v5551_v19 = vld [vmem:[#allocation10_spill] sm:$0xff] }
  0xda   :  { %5508 = vst [vmem:[#allocation46_spill] sm:$0xff] %v4128_v24  ;;  %v827_v58 = vadd.f32 %v811_v43, %v793_v44  ;;  %v836_v46 = vmul.f32 %v5509_v40, %v832_v35  ;;  %v828_v51 = vadd.f32 %v812_v5, %v794_v56  ;;  %v829_v57 = vadd.f32 %v813_v41, %v795_v50  ;;  %v5516_v44 = vld [vmem:[#allocation60_spill] sm:$0xff]  ;;  %v5517_v56 = vld [vmem:[#allocation61_spill] sm:$0xff]  ;;  %v5518_v43 = vld [vmem:[#allocation62_spill] sm:$0xff] }
  0xdb   :  { %v837_v13 = vmul.f32 %v5510_v28, %v832_v35  ;;  %v849_v30 = vadd.f32 %v833_v52, %v815_v55  ;;  %v4132_v29 = vpop.eup %2355  ;;  %v830_v45 = vadd.f32 %v814_v37, %v796_v12  ;;  %v838_v8 = vmul.f32 %v5512_v62, %v832_v35  ;;  %v5519_v5 = vld [vmem:[#allocation63_spill] sm:$0xff]  ;;  %v2804_v55 = vld [vmem:[%s5135_s1 + $0x1e8] sm:$0xff]  ;;  %v5549_v18 = vld [vmem:[#allocation5_spill] sm:$0xff] }
  0xdc   :  { %5511 = vst [vmem:[#allocation47_spill] sm:$0xff] %v4132_v29  ;;  %v839_v6 = vmul.f32 %v5513_v20, %v832_v35  ;;  %v850_v16 = vadd.f32 %v834_v42, %v816_v34  ;;  %v4136_v61 = vpop.eup %2357  ;;  %v840_v59 = vmul.f32 %v5515_v36, %v832_v35  ;;  %v841_v48 = vmul.f32 %v5516_v44, %v832_v35  ;;  %v5547_v24 = vld [vmem:[#allocation55_spill] sm:$0xff] }
  0xdd   :  { %5514 = vst [vmem:[#allocation48_spill] sm:$0xff] %v4136_v61  ;;  %v842_v50 = vmul.f32 %v5517_v56, %v832_v35  ;;  %v851_v32 = vadd.f32 %v835_v25, %v817_v39  ;;  %v843_v47 = vmul.f32 %v5518_v43, %v832_v35  ;;  %v844_v3 = vmul.f32 %v5519_v5, %v832_v35  ;;  %v2805_v39 = vld [vmem:[%s5135_s1 + $0x1f0] sm:$0xff] }
  0xde   :  { %v852_v41 = vadd.f32 %v836_v46, %v818_v15  ;;  %v866_v12 = vstv %s4117_s19  ;;  %v845_v37 = vmul.f32 %v2803_v49, %v832_v35  ;;  %v846_v34 = vmul.f32 %v2804_v55, %v832_v35  ;;  %v2806_v15 = vld [vmem:[%s5135_s1 + $0x1f8] sm:$0xff]  ;;  %s4156_s1 = sld [smem:[#allocation2 + $0x14]] }
  0xdf   :  { %v853_v26 = vadd.f32 %v837_v13, %v819_v14  ;;  %v867_v52 = vadd.f32 %v866_v12, %v849_v30  ;;  %v847_v7 = vmul.f32 %v2805_v39, %v832_v35  ;;  %v848_v42 = vmul.f32 %v2806_v15, %v832_v35  ;;  %s4920_s19 = sld [smem:[#allocation2 + $0x29]] }
  0xe0   :  { %v854_v54 = vadd.f32 %v838_v8, %v820_v38  ;;  %v868_v25 = vadd.f32 %v866_v12, %v850_v16  ;;  %v855_v40 = vadd.f32 %v839_v6, %v821_v9  ;;  %v856_v46 = vadd.f32 %v840_v59, %v822_v1 }
  0xe1   :  { %v857_v28 = vadd.f32 %v841_v48, %v823_v17  ;;  %v869_v62 = vadd.f32 %v866_v12, %v851_v32  ;;  %v858_v20 = vadd.f32 %v842_v50, %v824_v0  ;;  %v859_v36 = vadd.f32 %v843_v47, %v825_v21 }
  0xe2   :  { %v860_v14 = vadd.f32 %v844_v3, %v826_v2  ;;  %v870_v13 = vadd.f32 %v866_v12, %v852_v41  ;;  %v861_v30 = vadd.f32 %v845_v37, %v827_v58  ;;  %v862_v44 = vadd.f32 %v846_v34, %v828_v51 }
  0xe3   :  { %v871_v56 = vadd.f32 %v866_v12, %v853_v26  ;;  %v883_v43 = vsub.f32 0.0, %v867_v52  ;;  %v863_v5 = vadd.f32 %v847_v7, %v829_v57  ;;  %v864_v49 = vadd.f32 %v848_v42, %v830_v45 }
  0xe4   :  { %v872_v55 = vadd.f32 %v866_v12, %v854_v54  ;;  %v884_v39 = vsub.f32 0.0, %v868_v25  ;;  %v873_v61 = vadd.f32 %v866_v12, %v855_v40  ;;  %v874_v35 = vadd.f32 %v866_v12, %v856_v46 }
  0xe5   :  { %v875_v38 = vadd.f32 %v866_v12, %v857_v28  ;;  %v885_v8 = vsub.f32 0.0, %v869_v62  ;;  %v876_v9 = vadd.f32 %v866_v12, %v858_v20  ;;  %v877_v1 = vadd.f32 %v866_v12, %v859_v36 }
  0xe6   :  { %v878_v17 = vadd.f32 %v866_v12, %v860_v14  ;;  %v886_v0 = vsub.f32 0.0, %v870_v13  ;;  %v879_v21 = vadd.f32 %v866_v12, %v861_v30  ;;  %v880_v2 = vadd.f32 %v866_v12, %v862_v44  ;;  %v5520_v13 = vld [vmem:[#allocation11_spill] sm:$0xff] }
  0xe7   :  { %v887_v58 = vsub.f32 0.0, %v871_v56  ;;  %v899_v51 = vmul.f32 1.442695, %v883_v43  ;;  %v881_v6 = vadd.f32 %v866_v12, %v863_v5  ;;  %v882_v16 = vadd.f32 %v866_v12, %v864_v49  ;;  %v5521_v56 = vld [vmem:[#allocation58_spill] sm:$0xff]  ;;  %v5522_v5 = vld [vmem:[#allocation12_spill] sm:$0xff] }
  0xe8   :  { %v888_v57 = vsub.f32 0.0, %v872_v55  ;;  %v901_v45 = vmul.f32 1.442695, %v884_v39  ;;  %v889_v59 = vsub.f32 0.0, %v873_v61  ;;  %v890_v48 = vsub.f32 0.0, %v874_v35  ;;  %v5523_v55 = vld [vmem:[#allocation13_spill] sm:$0xff] }
  0xe9   :  { %v891_v50 = vsub.f32 0.0, %v875_v38  ;;  %v903_v32 = vmul.f32 1.442695, %v885_v8  ;;  %v892_v47 = vsub.f32 0.0, %v876_v9  ;;  %v893_v3 = vsub.f32 0.0, %v877_v1  ;;  %v5524_v38 = vld [vmem:[#allocation14_spill] sm:$0xff] }
  0xea   :  { %v894_v41 = vsub.f32 0.0, %v878_v17  ;;  %v905_v37 = vmul.f32 1.442695, %v886_v0  ;;  %v895_v34 = vsub.f32 0.0, %v879_v21  ;;  %v896_v26 = vsub.f32 0.0, %v880_v2  ;;  %v5525_v9 = vld [vmem:[#allocation15_spill] sm:$0xff] }
  0xeb   :  { %2359 = vpow2.f32 %v899_v51  ;;  %v907_v52 = vmul.f32 1.442695, %v887_v58  ;;  %v897_v7 = vsub.f32 0.0, %v881_v6  ;;  %v898_v15 = vsub.f32 0.0, %v882_v16  ;;  %v5526_v17 = vld [vmem:[#allocation16_spill] sm:$0xff]  ;;  %v5527_v2 = vld [vmem:[#allocation17_spill] sm:$0xff] }
  0xec   :  { %2361 = vpow2.f32 %v901_v45  ;;  %v909_v42 = vmul.f32 1.442695, %v888_v57  ;;  %v911_v61 = vmul.f32 1.442695, %v889_v59  ;;  %v913_v12 = vmul.f32 1.442695, %v890_v48 }
  0xed   :  { %2363 = vpow2.f32 %v903_v32  ;;  %v964_v54 = vstv %s4156_s1  ;;  %v915_v25 = vmul.f32 1.442695, %v891_v50  ;;  %v917_v40 = vmul.f32 1.442695, %v892_v47  ;;  %v5528_v51 = vld [vmem:[#allocation20_spill] sm:$0xff]  ;;  %v5529_v16 = vld [vmem:[#allocation22_spill] sm:$0xff] }
  0xee   :  { %2365 = vpow2.f32 %v905_v37  ;;  %v919_v46 = vmul.f32 1.442695, %v893_v3  ;;  %v921_v28 = vmul.f32 1.442695, %v894_v41  ;;  %v923_v62 = vmul.f32 1.442695, %v895_v34 }
  0xef   :  { %2367 = vpow2.f32 %v907_v52  ;;  %v925_v20 = vmul.f32 1.442695, %v896_v26  ;;  %v927_v36 = vmul.f32 1.442695, %v897_v7  ;;  %v929_v14 = vmul.f32 1.442695, %v898_v15 }
  0xf0   :  { %2369 = vpow2.f32 %v909_v42  ;;  %v4162_v30 = vmul.f32 %v5520_v13, %v964_v54  ;;  %v4165_v43 = vmul.f32 %v5521_v56, %v964_v54  ;;  %v4168_v49 = vmul.f32 %v5522_v5, %v964_v54  ;;  %v5530_v48 = vld [vmem:[#allocation23_spill] sm:$0xff]  ;;  %v5531_v41 = vld [vmem:[#allocation24_spill] sm:$0xff]  ;;  %v5532_v34 = vld [vmem:[#allocation25_spill] sm:$0xff] }
  0xf1   :  { %v2360_v44 = vpop.eup %2359  ;;  %2371 = vpow2.f32 %v911_v61  ;;  %v4171_v39 = vmul.f32 %v5523_v55, %v964_v54  ;;  %v4174_v8 = vmul.f32 %v5524_v38, %v964_v54  ;;  %v4177_v1 = vmul.f32 %v5525_v9, %v964_v54  ;;  %v5533_v15 = vld [vmem:[#allocation26_spill] sm:$0xff]  ;;  %v5534_v61 = vld [vmem:[#allocation27_spill] sm:$0xff]  ;;  %v5544_v56 = vld [vmem:[#allocation45_spill] sm:$0xff] }
  0xf2   :  { %v2362_v35 = vpop.eup %2361  ;;  %2373 = vpow2.f32 %v913_v12  ;;  %v4180_v0 = vmul.f32 %v5526_v17, %v964_v54  ;;  %v4183_v58 = vmul.f32 %v5527_v2, %v964_v54  ;;  %v4186_v6 = vmul.f32 %v5528_v51, %v964_v54  ;;  %v5540_v9 = vld [vmem:[#allocation39_spill] sm:$0xff]  ;;  %v5543_v5 = vld [vmem:[#allocation42_spill] sm:$0xff]  ;;  %v5545_v13 = vld [vmem:[#allocation49_spill] sm:$0xff] }
  0xf3   :  { %v2364_v21 = vpop.eup %2363  ;;  %2375 = vpow2.f32 %v915_v25  ;;  %v4189_v57 = vmul.f32 %v5529_v16, %v964_v54  ;;  %v931_v59 = vadd.f32 1.0, %v2360_v44  ;;  %v4192_v50 = vmul.f32 %v5530_v48, %v964_v54  ;;  %v5537_v16 = vld [vmem:[#allocation36_spill] sm:$0xff] }
  0xf4   :  { %v2366_v45 = vpop.eup %2365  ;;  %2377 = vpow2.f32 %v917_v40  ;;  %v982_v32 = vstv %s4158_s4  ;;  %v932_v3 = vadd.f32 1.0, %v2362_v35  ;;  %v4196_v37 = vmul.f32 %v5531_v41, %v964_v54  ;;  %v5536_v35 = vld [vmem:[#allocation35_spill] sm:$0xff] }
  0xf5   :  { %v2368_v47 = vpop.eup %2367  ;;  %2379 = vpow2.f32 %v919_v46  ;;  %v4199_v26 = vmul.f32 %v5532_v34, %v964_v54  ;;  %v933_v7 = vadd.f32 1.0, %v2364_v21  ;;  %v4202_v42 = vmul.f32 %v5533_v15, %v964_v54  ;;  %v5535_v46 = vld [vmem:[#allocation28_spill] sm:$0xff]  ;;  %v5538_v21 = vld [vmem:[#allocation37_spill] sm:$0xff] }
  0xf6   :  { %v2370_v52 = vpop.eup %2369  ;;  %2381 = vpow2.f32 %v921_v28  ;;  %v4205_v12 = vmul.f32 %v5534_v61, %v964_v54  ;;  %v934_v40 = vadd.f32 1.0, %v2366_v45  ;;  %v4208_v44 = vmul.f32 %v5535_v46, %v964_v54  ;;  %v5539_v61 = vld [vmem:[#allocation38_spill] sm:$0xff]  ;;  %v5541_v46 = vld [vmem:[#allocation40_spill] sm:$0xff] }
  0xf7   :  { %v2372_v25 = vpop.eup %2371  ;;  %2383 = vpow2.f32 %v923_v62  ;;  %v983_v41 = vmul.f32 %v5536_v35, %v982_v32  ;;  %v935_v34 = vadd.f32 1.0, %v2368_v47  ;;  %v984_v28 = vmul.f32 %v5537_v16, %v982_v32  ;;  %v5542_v35 = vld [vmem:[#allocation41_spill] sm:$0xff] }
  0xf8   :  { %v2374_v48 = vpop.eup %2373  ;;  %2385 = vpow2.f32 %v925_v20  ;;  %v985_v51 = vmul.f32 %v5538_v21, %v982_v32  ;;  %v936_v2 = vadd.f32 1.0, %v2370_v52  ;;  %v986_v17 = vmul.f32 %v5539_v61, %v982_v32  ;;  %v5546_v61 = vld [vmem:[#allocation53_spill] sm:$0xff] }
  0xf9   :  { %v2376_v15 = vpop.eup %2375  ;;  %2387 = vpow2.f32 %v927_v36  ;;  %v987_v62 = vmul.f32 %v5540_v9, %v982_v32  ;;  %v937_v54 = vadd.f32 1.0, %v2372_v25  ;;  %v988_v38 = vmul.f32 %v5541_v46, %v982_v32 }
  0xfa   :  { %v2378_v45 = vpop.eup %2377  ;;  %2389 = vpow2.f32 %v929_v14  ;;  %v989_v55 = vmul.f32 %v5542_v35, %v982_v32  ;;  %v938_v47 = vadd.f32 1.0, %v2374_v48  ;;  %v990_v16 = vmul.f32 %v5543_v5, %v982_v32  ;;  %v5548_v35 = vld [vmem:[#allocation57_spill] sm:$0xff] }
  0xfb   :  { %v2380_v20 = vpop.eup %2379  ;;  %v991_v21 = vmul.f32 %v5544_v56, %v982_v32  ;;  %v992_v36 = vmul.f32 %v5545_v13, %v982_v32  ;;  %v939_v29 = vadd.f32 1.0, %v2376_v15  ;;  %2391 = vrcp.f32 %v931_v59  ;;  %v5550_v15 = vld [vmem:[#allocation7_spill] sm:$0xff] }
  0xfc   :  { %v2382_v52 = vpop.eup %2381  ;;  %v993_v9 = vmul.f32 %v5546_v61, %v982_v32  ;;  %v994_v14 = vmul.f32 %v5547_v24, %v982_v32  ;;  %v940_v46 = vadd.f32 1.0, %v2378_v45  ;;  %2393 = vrcp.f32 %v932_v3 }
  0xfd   :  { %v2384_v25 = vpop.eup %2383  ;;  %v995_v48 = vmul.f32 %v5548_v35, %v982_v32  ;;  %v996_v5 = vmul.f32 %v5549_v18, %v982_v32  ;;  %v941_v13 = vadd.f32 1.0, %v2380_v20  ;;  %2395 = vrcp.f32 %v933_v7 }
  0xfe   :  { %v2386_v56 = vpop.eup %2385  ;;  %v997_v59 = vmul.f32 %v5550_v15, %v982_v32  ;;  %v998_v61 = vmul.f32 %v5551_v19, %v982_v32  ;;  %v942_v22 = vadd.f32 1.0, %v2382_v52  ;;  %2397 = vrcp.f32 %v934_v40 }
  0xff   :  { %v2388_v24 = vpop.eup %2387  ;;  %v4233_v3 = vadd.f32 %v983_v41, %v4162_v30  ;;  %v4236_v45 = vadd.f32 %v984_v28, %v4165_v43  ;;  %v943_v35 = vadd.f32 1.0, %v2384_v25  ;;  %2399 = vrcp.f32 %v935_v34  ;;  %v5562_v28 = vld [vmem:[#allocation43_spill] sm:$0xff] }
 0x100   :  { %v2390_v18 = vpop.eup %2389  ;;  %v1001_v7 = vadd.f32 %v985_v51, %v4168_v49  ;;  %v1002_v20 = vadd.f32 %v986_v17, %v4171_v39  ;;  %v944_v15 = vadd.f32 1.0, %v2386_v56  ;;  %2401 = vrcp.f32 %v936_v2  ;;  %v5566_v25 = vld [vmem:[#allocation47_spill] sm:$0xff] }
 0x101   :  { %v1003_v32 = vadd.f32 %v987_v62, %v4174_v8  ;;  %v1004_v40 = vadd.f32 %v988_v38, %v4177_v1  ;;  %v4242_v52 = vpop.eup %2391  ;;  %v945_v30 = vadd.f32 1.0, %v2388_v24  ;;  %2403 = vrcp.f32 %v937_v54  ;;  %v5564_v54 = vld [vmem:[#allocation44_spill] sm:$0xff] }
 0x102   :  { %5552 = vst [vmem:[#allocation50_spill] sm:$0xff] %v4242_v52  ;;  %v1005_v43 = vadd.f32 %v989_v55, %v4180_v0  ;;  %v1006_v41 = vadd.f32 %v990_v16, %v4183_v58  ;;  %v4246_v34 = vpop.eup %2393  ;;  %v946_v49 = vadd.f32 1.0, %v2390_v18  ;;  %2405 = vrcp.f32 %v938_v47 }
 0x103   :  { %5553 = vst [vmem:[#allocation51_spill] sm:$0xff] %v4246_v34  ;;  %v1007_v56 = vadd.f32 %v991_v21, %v4186_v6  ;;  %v1008_v39 = vadd.f32 %v992_v36, %v4189_v57  ;;  %v4250_v8 = vpop.eup %2395  ;;  %2407 = vrcp.f32 %v939_v29  ;;  %v1009_v24 = vadd.f32 %v993_v9, %v4192_v50  ;;  %v5565_v36 = vld [vmem:[#allocation46_spill] sm:$0xff] }
 0x104   :  { %5554 = vst [vmem:[#allocation52_spill] sm:$0xff] %v4250_v8  ;;  %v1010_v38 = vadd.f32 %v994_v14, %v4196_v37  ;;  %v1016_v55 = vstv %s4222_s5  ;;  %v4255_v1 = vpop.eup %2397  ;;  %2409 = vrcp.f32 %v940_v46  ;;  %v1011_v18 = vadd.f32 %v995_v48, %v4199_v26 }
 0x105   :  { %5555 = vst [vmem:[#allocation54_spill] sm:$0xff] %v4255_v1  ;;  %v1012_v17 = vadd.f32 %v996_v5, %v4202_v42  ;;  %v1013_v0 = vadd.f32 %v997_v59, %v4205_v12  ;;  %v4260_v2 = vpop.eup %2399  ;;  %2411 = vrcp.f32 %v941_v13  ;;  %v1014_v58 = vadd.f32 %v998_v61, %v4208_v44  ;;  %v5561_v44 = vld [vmem:[#allocation34_spill] sm:$0xff]  ;;  %v5568_v59 = vld [vmem:[#allocation48_spill] sm:$0xff] }
 0x106   :  { %5556 = vst [vmem:[#allocation56_spill] sm:$0xff] %v4260_v2  ;;  %v4264_v29 = vstv %s4226_s27  ;;  %v4267_v9 = vstv %s4230_s7  ;;  %v4269_v51 = vpop.eup %2401  ;;  %2413 = vrcp.f32 %v942_v22  ;;  %v1017_v6 = vmul.f32 %v4052_v53, %v1016_v55 }
 0x107   :  { %5557 = vst [vmem:[#allocation59_spill] sm:$0xff] %v4269_v51  ;;  %v1018_v16 = vmul.f32 %v4058_v11, %v1016_v55  ;;  %v1019_v5 = vmul.f32 %v4062_v60, %v1016_v55  ;;  %v4274_v57 = vpop.eup %2403  ;;  %2415 = vrcp.f32 %v943_v35  ;;  %v1020_v13 = vmul.f32 %v4067_v31, %v1016_v55 }
 0x108   :  { %5558 = vst [vmem:[#allocation6_spill] sm:$0xff] %v4274_v57  ;;  %v1021_v50 = vmul.f32 %v4072_v23, %v1016_v55  ;;  %v1022_v37 = vmul.f32 %v4080_v27, %v1016_v55  ;;  %v4279_v26 = vpop.eup %2405  ;;  %2417 = vrcp.f32 %v944_v15  ;;  %v1023_v22 = vmul.f32 %v4088_v33, %v1016_v55 }
 0x109   :  { %5559 = vst [vmem:[#allocation8_spill] sm:$0xff] %v4279_v26  ;;  %v1024_v42 = vmul.f32 %v4096_v10, %v1016_v55  ;;  %v1025_v61 = vmul.f32 %v4104_v63, %v1016_v55  ;;  %v4284_v12 = vpop.eup %2407  ;;  %2419 = vrcp.f32 %v945_v30  ;;  %v1026_v46 = vmul.f32 %v4113_v4, %v1016_v55 }
 0x10a   :  { %5560 = vst [vmem:[#allocation9_spill] sm:$0xff] %v4284_v12  ;;  %v1027_v35 = vmul.f32 %v5561_v44, %v1016_v55  ;;  %v1028_v21 = vmul.f32 %v5562_v28, %v1016_v55  ;;  %v4289_v62 = vpop.eup %2409  ;;  %2421 = vrcp.f32 %v946_v49  ;;  %v1029_v47 = vmul.f32 %v5564_v54, %v1016_v55 }
 0x10b   :  { %5563 = vst [vmem:[#allocation18_spill] sm:$0xff] %v4289_v62  ;;  %v1030_v14 = vmul.f32 %v5565_v36, %v1016_v55  ;;  %v1031_v48 = vmul.f32 %v5566_v25, %v1016_v55  ;;  %v4294_v15 = vpop.eup %2411  ;;  %v1032_v63 = vmul.f32 %v5568_v59, %v1016_v55  ;;  %v1033_v30 = vadd.f32 %v1017_v6, %v4233_v3 }
 0x10c   :  { %5567 = vst [vmem:[#allocation19_spill] sm:$0xff] %v4294_v15  ;;  %v1034_v4 = vadd.f32 %v1018_v16, %v4236_v45  ;;  %v1051_v28 = vmul.f32 %v4242_v52, %v4264_v29  ;;  %v4301_v44 = vpop.eup %2413  ;;  %v1035_v49 = vadd.f32 %v1019_v5, %v1001_v7  ;;  %v1036_v10 = vadd.f32 %v1020_v13, %v1002_v20 }
 0x10d   :  { %5569 = vst [vmem:[#allocation21_spill] sm:$0xff] %v4301_v44  ;;  %v1037_v54 = vadd.f32 %v1021_v50, %v1003_v32  ;;  %v1052_v36 = vmul.f32 %v4246_v34, %v4264_v29  ;;  %v4305_v25 = vpop.eup %2415  ;;  %v1038_v33 = vadd.f32 %v1022_v37, %v1004_v40  ;;  %v1039_v27 = vadd.f32 %v1023_v22, %v1005_v43 }
 0x10e   :  { %5570 = vst [vmem:[#allocation60_spill] sm:$0xff] %v4305_v25  ;;  %v1040_v55 = vadd.f32 %v1024_v42, %v1006_v41  ;;  %v1053_v3 = vmul.f32 %v4250_v8, %v4264_v29  ;;  %v4309_v45 = vpop.eup %2417  ;;  %v1041_v6 = vadd.f32 %v1025_v61, %v1007_v56  ;;  %v1042_v16 = vadd.f32 %v1026_v46, %v1008_v39 }
 0x10f   :  { %5571 = vst [vmem:[#allocation61_spill] sm:$0xff] %v4309_v45  ;;  %v1043_v52 = vadd.f32 %v1027_v35, %v1009_v24  ;;  %v1054_v7 = vmul.f32 %v4255_v1, %v4264_v29  ;;  %v4313_v20 = vpop.eup %2419  ;;  %v1044_v32 = vadd.f32 %v1028_v21, %v1010_v38  ;;  %v1045_v5 = vadd.f32 %v1029_v47, %v1011_v18  ;;  %v5603_v1 = vld [vmem:[#allocation5_spill] sm:$0xff] }
 0x110   :  { %5572 = vst [vmem:[#allocation62_spill] sm:$0xff] %v4313_v20  ;;  %v1055_v40 = vmul.f32 %v4260_v2, %v4264_v29  ;;  %v1067_v43 = vadd.f32 %v1051_v28, %v1033_v30  ;;  %v4317_v41 = vpop.eup %2421  ;;  %v1046_v13 = vadd.f32 %v1030_v14, %v1012_v17  ;;  %v1047_v50 = vadd.f32 %v1031_v48, %v1013_v0 }
 0x111   :  { %5573 = vst [vmem:[#allocation63_spill] sm:$0xff] %v4317_v41  ;;  %v1056_v56 = vmul.f32 %v4269_v51, %v4264_v29  ;;  %v1068_v39 = vadd.f32 %v1052_v36, %v1034_v4  ;;  %v1048_v24 = vadd.f32 %v1032_v63, %v1014_v58  ;;  %v1057_v37 = vmul.f32 %v4274_v57, %v4264_v29 }
 0x112   :  { %v1058_v38 = vmul.f32 %v4279_v26, %v4264_v29  ;;  %v1069_v18 = vadd.f32 %v1053_v3, %v1035_v49  ;;  %v1059_v22 = vmul.f32 %v4284_v12, %v4264_v29  ;;  %v1060_v42 = vmul.f32 %v4289_v62, %v4264_v29 }
 0x113   :  { %v1061_v17 = vmul.f32 %v4294_v15, %v4264_v29  ;;  %v1070_v0 = vadd.f32 %v1054_v7, %v1036_v10  ;;  %v1062_v63 = vmul.f32 %v4301_v44, %v4264_v29  ;;  %v1063_v4 = vmul.f32 %v4305_v25, %v4264_v29  ;;  %v5596_v44 = vld [vmem:[#allocation41_spill] sm:$0xff] }
 0x114   :  { %v1071_v58 = vadd.f32 %v1055_v40, %v1037_v54  ;;  %v1085_v61 = vadd.f32 %v4267_v9, %v1067_v43  ;;  %v1064_v46 = vmul.f32 %v4309_v45, %v4264_v29  ;;  %v1065_v35 = vmul.f32 %v4313_v20, %v4264_v29  ;;  %v5595_v45 = vld [vmem:[#allocation40_spill] sm:$0xff] }
 0x115   :  { %v1072_v28 = vadd.f32 %v1056_v56, %v1038_v33  ;;  %v1086_v21 = vadd.f32 %v4267_v9, %v1068_v39  ;;  %v1066_v10 = vmul.f32 %v4317_v41, %v4264_v29  ;;  %v1073_v47 = vadd.f32 %v1057_v37, %v1039_v27 }
 0x116   :  { %v1074_v36 = vadd.f32 %v1058_v38, %v1040_v55  ;;  %v1087_v14 = vadd.f32 %v4267_v9, %v1069_v18  ;;  %v1075_v48 = vadd.f32 %v1059_v22, %v1041_v6  ;;  %v1076_v54 = vadd.f32 %v1060_v42, %v1042_v16 }
 0x117   :  { %v1077_v30 = vadd.f32 %v1061_v17, %v1043_v52  ;;  %v1088_v49 = vadd.f32 %v4267_v9, %v1070_v0  ;;  %v1078_v3 = vadd.f32 %v1062_v63, %v1044_v32  ;;  %v1079_v7 = vadd.f32 %v1063_v4, %v1045_v5 }
 0x118   :  { %v1089_v40 = vadd.f32 %v4267_v9, %v1071_v58  ;;  %v1101_v43 = vsub.f32 0.0, %v1085_v61  ;;  %v1080_v33 = vadd.f32 %v1064_v46, %v1046_v13  ;;  %v1081_v56 = vadd.f32 %v1065_v35, %v1047_v50 }
 0x119   :  { %v1090_v39 = vadd.f32 %v4267_v9, %v1072_v28  ;;  %v1102_v20 = vsub.f32 0.0, %v1086_v21  ;;  %v1082_v29 = vadd.f32 %v1066_v10, %v1048_v24  ;;  %v1091_v27 = vadd.f32 %v4267_v9, %v1073_v47 }
 0x11a   :  { %v1092_v55 = vadd.f32 %v4267_v9, %v1074_v36  ;;  %v1103_v6 = vsub.f32 0.0, %v1087_v14  ;;  %v1093_v52 = vadd.f32 %v4267_v9, %v1075_v48  ;;  %v1094_v16 = vadd.f32 %v4267_v9, %v1076_v54 }
 0x11b   :  { %v1095_v32 = vadd.f32 %v4267_v9, %v1077_v30  ;;  %v1104_v5 = vsub.f32 0.0, %v1088_v49  ;;  %v1096_v13 = vadd.f32 %v4267_v9, %v1078_v3  ;;  %v1097_v50 = vadd.f32 %v4267_v9, %v1079_v7 }
 0x11c   :  { %v1105_v37 = vsub.f32 0.0, %v1089_v40  ;;  %v1117_v24 = vmul.f32 1.442695, %v1101_v43  ;;  %v1098_v38 = vadd.f32 %v4267_v9, %v1080_v33  ;;  %v1099_v18 = vadd.f32 %v4267_v9, %v1081_v56 }
 0x11d   :  { %v1106_v22 = vsub.f32 0.0, %v1090_v39  ;;  %v1119_v42 = vmul.f32 1.442695, %v1102_v20  ;;  %v1100_v17 = vadd.f32 %v4267_v9, %v1082_v29  ;;  %v1107_v0 = vsub.f32 0.0, %v1091_v27  ;;  %v5574_v29 = vld [vmem:[#allocation11_spill] sm:$0xff] }
 0x11e   :  { %v1108_v63 = vsub.f32 0.0, %v1092_v55  ;;  %v1121_v4 = vmul.f32 1.442695, %v1103_v6  ;;  %v1109_v58 = vsub.f32 0.0, %v1093_v52  ;;  %v1110_v61 = vsub.f32 0.0, %v1094_v16  ;;  %v5575_v55 = vld [vmem:[#allocation58_spill] sm:$0xff] }
 0x11f   :  { %v1111_v46 = vsub.f32 0.0, %v1095_v32  ;;  %v1123_v35 = vmul.f32 1.442695, %v1104_v5  ;;  %v1112_v28 = vsub.f32 0.0, %v1096_v13  ;;  %v1113_v21 = vsub.f32 0.0, %v1097_v50  ;;  %v5576_v16 = vld [vmem:[#allocation12_spill] sm:$0xff] }
 0x120   :  { %2423 = vpow2.f32 %v1117_v24  ;;  %v1125_v10 = vmul.f32 1.442695, %v1105_v37  ;;  %v1114_v47 = vsub.f32 0.0, %v1098_v38  ;;  %v1115_v36 = vsub.f32 0.0, %v1099_v18  ;;  %v5577_v5 = vld [vmem:[#allocation13_spill] sm:$0xff]  ;;  %v5578_v50 = vld [vmem:[#allocation14_spill] sm:$0xff] }
 0x121   :  { %2425 = vpow2.f32 %v1119_v42  ;;  %v1127_v14 = vmul.f32 1.442695, %v1106_v22  ;;  %v1116_v48 = vsub.f32 0.0, %v1100_v17  ;;  %v1129_v20 = vmul.f32 1.442695, %v1107_v0  ;;  %v5579_v38 = vld [vmem:[#allocation15_spill] sm:$0xff] }
 0x122   :  { %2427 = vpow2.f32 %v1121_v4  ;;  %v1131_v9 = vmul.f32 1.442695, %v1108_v63  ;;  %v1133_v54 = vmul.f32 1.442695, %v1109_v58  ;;  %v1182_v30 = vstv %s4352_s3  ;;  %v5580_v22 = vld [vmem:[#allocation16_spill] sm:$0xff]  ;;  %v5581_v17 = vld [vmem:[#allocation17_spill] sm:$0xff] }
 0x123   :  { %2429 = vpow2.f32 %v1123_v35  ;;  %v1135_v49 = vmul.f32 1.442695, %v1110_v61  ;;  %v1137_v3 = vmul.f32 1.442695, %v1111_v46  ;;  %v1139_v7 = vmul.f32 1.442695, %v1112_v28 }
 0x124   :  { %2431 = vpow2.f32 %v1125_v10  ;;  %v1141_v40 = vmul.f32 1.442695, %v1113_v21  ;;  %v1143_v43 = vmul.f32 1.442695, %v1114_v47  ;;  %v1145_v33 = vmul.f32 1.442695, %v1115_v36 }
 0x125   :  { %2433 = vpow2.f32 %v1127_v14  ;;  %v1147_v39 = vmul.f32 1.442695, %v1116_v48  ;;  %v4365_v27 = vmul.f32 %v5574_v29, %v1182_v30  ;;  %v4368_v6 = vmul.f32 %v5575_v55, %v1182_v30  ;;  %v5582_v58 = vld [vmem:[#allocation20_spill] sm:$0xff]  ;;  %v5583_v46 = vld [vmem:[#allocation22_spill] sm:$0xff]  ;;  %v5584_v10 = vld [vmem:[#allocation23_spill] sm:$0xff] }
 0x126   :  { %v2424_v56 = vpop.eup %2423  ;;  %2435 = vpow2.f32 %v1129_v20  ;;  %v4371_v32 = vmul.f32 %v5576_v16, %v1182_v30  ;;  %v4374_v13 = vmul.f32 %v5577_v5, %v1182_v30  ;;  %v4377_v37 = vmul.f32 %v5578_v50, %v1182_v30  ;;  %v5585_v36 = vld [vmem:[#allocation24_spill] sm:$0xff]  ;;  %v5586_v20 = vld [vmem:[#allocation25_spill] sm:$0xff]  ;;  %v5590_v50 = vld [vmem:[#allocation35_spill] sm:$0xff] }
 0x127   :  { %v2426_v52 = vpop.eup %2425  ;;  %2437 = vpow2.f32 %v1131_v9  ;;  %v4380_v18 = vmul.f32 %v5579_v38, %v1182_v30  ;;  %v4383_v42 = vmul.f32 %v5580_v22, %v1182_v30  ;;  %v4386_v0 = vmul.f32 %v5581_v17, %v1182_v30  ;;  %v5591_v16 = vld [vmem:[#allocation36_spill] sm:$0xff]  ;;  %v5592_v55 = vld [vmem:[#allocation37_spill] sm:$0xff] }
 0x128   :  { %v2428_v24 = vpop.eup %2427  ;;  %2439 = vpow2.f32 %v1133_v54  ;;  %v1149_v4 = vadd.f32 1.0, %v2424_v56  ;;  %v4389_v61 = vmul.f32 %v5582_v58, %v1182_v30  ;;  %v4392_v35 = vmul.f32 %v5583_v46, %v1182_v30  ;;  %v5587_v54 = vld [vmem:[#allocation26_spill] sm:$0xff] }
 0x129   :  { %v2430_v63 = vpop.eup %2429  ;;  %2441 = vpow2.f32 %v1135_v49  ;;  %v1150_v21 = vadd.f32 1.0, %v2426_v52  ;;  %v4395_v47 = vmul.f32 %v5584_v10, %v1182_v30  ;;  %v4398_v14 = vmul.f32 %v5585_v36, %v1182_v30  ;;  %v5588_v52 = vld [vmem:[#allocation27_spill] sm:$0xff]  ;;  %v5589_v10 = vld [vmem:[#allocation28_spill] sm:$0xff] }
 0x12a   :  { %v2432_v28 = vpop.eup %2431  ;;  %2443 = vpow2.f32 %v1137_v3  ;;  %v4401_v9 = vmul.f32 %v5586_v20, %v1182_v30  ;;  %v4404_v49 = vmul.f32 %v5587_v54, %v1182_v30  ;;  %v1200_v56 = vstv %s4359_s6 }
 0x12b   :  { %v2434_v48 = vpop.eup %2433  ;;  %2445 = vpow2.f32 %v1139_v7  ;;  %v1151_v3 = vadd.f32 1.0, %v2428_v24  ;;  %v4408_v58 = vmul.f32 %v5588_v52, %v1182_v30  ;;  %v4411_v17 = vmul.f32 %v5589_v10, %v1182_v30  ;;  %v5593_v30 = vld [vmem:[#allocation38_spill] sm:$0xff] }
 0x12c   :  { %v2436_v46 = vpop.eup %2435  ;;  %2447 = vpow2.f32 %v1141_v40  ;;  %v1152_v22 = vadd.f32 1.0, %v2430_v63  ;;  %v1153_v7 = vadd.f32 1.0, %v2432_v28  ;;  %v4414_v38 = vstv %s4362_s8  ;;  %v5594_v63 = vld [vmem:[#allocation39_spill] sm:$0xff] }
 0x12d   :  { %v2438_v36 = vpop.eup %2437  ;;  %2449 = vpow2.f32 %v1143_v43  ;;  %v1154_v54 = vadd.f32 1.0, %v2434_v48  ;;  %v1201_v5 = vmul.f32 %v5590_v50, %v1200_v56  ;;  %v1202_v40 = vmul.f32 %v5591_v16, %v1200_v56  ;;  %v5597_v50 = vld [vmem:[#allocation42_spill] sm:$0xff]  ;;  %v5598_v16 = vld [vmem:[#allocation45_spill] sm:$0xff] }
 0x12e   :  { %v2440_v20 = vpop.eup %2439  ;;  %2451 = vpow2.f32 %v1145_v33  ;;  %v1155_v52 = vadd.f32 1.0, %v2436_v46  ;;  %v1203_v29 = vmul.f32 %v5592_v55, %v1200_v56  ;;  %v1204_v10 = vmul.f32 %v5593_v30, %v1200_v56  ;;  %v5600_v30 = vld [vmem:[#allocation53_spill] sm:$0xff] }
 0x12f   :  { %v2442_v24 = vpop.eup %2441  ;;  %2453 = vpow2.f32 %v1147_v39  ;;  %v1156_v43 = vadd.f32 1.0, %v2438_v36  ;;  %v1205_v28 = vmul.f32 %v5594_v63, %v1200_v56  ;;  %v1206_v25 = vmul.f32 %v5595_v45, %v1200_v56  ;;  %v5599_v39 = vld [vmem:[#allocation49_spill] sm:$0xff]  ;;  %v5601_v36 = vld [vmem:[#allocation55_spill] sm:$0xff] }
 0x130   :  { %v2444_v41 = vpop.eup %2443  ;;  %v1207_v33 = vmul.f32 %v5596_v44, %v1200_v56  ;;  %v1157_v15 = vadd.f32 1.0, %v2440_v20  ;;  %v1208_v62 = vmul.f32 %v5597_v50, %v1200_v56  ;;  %v1209_v12 = vmul.f32 %v5598_v16, %v1200_v56  ;;  %v5602_v45 = vld [vmem:[#allocation57_spill] sm:$0xff]  ;;  %v5604_v16 = vld [vmem:[#allocation7_spill] sm:$0xff] }
 0x131   :  { %v2446_v48 = vpop.eup %2445  ;;  %v1210_v46 = vmul.f32 %v5599_v39, %v1200_v56  ;;  %v1158_v55 = vadd.f32 1.0, %v2442_v24  ;;  %2455 = vrcp.f32 %v1149_v4  ;;  %v1211_v57 = vmul.f32 %v5600_v30, %v1200_v56 }
 0x132   :  { %v2448_v26 = vpop.eup %2447  ;;  %v1212_v51 = vmul.f32 %v5601_v36, %v1200_v56  ;;  %v1159_v2 = vadd.f32 1.0, %v2444_v41  ;;  %2457 = vrcp.f32 %v1150_v21  ;;  %v1213_v44 = vmul.f32 %v5602_v45, %v1200_v56 }
 0x133   :  { %v2450_v63 = vpop.eup %2449  ;;  %v1214_v20 = vmul.f32 %v5603_v1, %v1200_v56  ;;  %v1160_v50 = vadd.f32 1.0, %v2446_v48  ;;  %2459 = vrcp.f32 %v1151_v3  ;;  %v1215_v34 = vmul.f32 %v5604_v16, %v1200_v56 }
 0x134   :  { %v2452_v8 = vpop.eup %2451  ;;  %v1216_v39 = vmul.f32 %v5551_v19, %v1200_v56  ;;  %v1161_v4 = vadd.f32 1.0, %v2448_v26  ;;  %2461 = vrcp.f32 %v1152_v22  ;;  %v1217_v30 = vadd.f32 %v1201_v5, %v4365_v27 }
 0x135   :  { %v2454_v24 = vpop.eup %2453  ;;  %v1218_v36 = vadd.f32 %v1202_v40, %v4368_v6  ;;  %v1162_v41 = vadd.f32 1.0, %v2450_v63  ;;  %2463 = vrcp.f32 %v1153_v7  ;;  %v1219_v21 = vadd.f32 %v1203_v29, %v4371_v32  ;;  %v5619_v7 = vld [vmem:[#allocation43_spill] sm:$0xff] }
 0x136   :  { %v1220_v1 = vadd.f32 %v1204_v10, %v4374_v13  ;;  %v1163_v45 = vadd.f32 1.0, %v2452_v8  ;;  %2465 = vrcp.f32 %v1154_v54  ;;  %v1221_v3 = vadd.f32 %v1205_v28, %v4377_v37 }
 0x137   :  { %v1222_v48 = vadd.f32 %v1206_v25, %v4380_v18  ;;  %v4438_v56 = vpop.eup %2455  ;;  %v1164_v26 = vadd.f32 1.0, %v2454_v24  ;;  %2467 = vrcp.f32 %v1155_v52  ;;  %v1223_v27 = vadd.f32 %v1207_v33, %v4383_v42  ;;  %v5622_v33 = vld [vmem:[#allocation46_spill] sm:$0xff] }
 0x138   :  { %5605 = vst [vmem:[#allocation7_spill] sm:$0xff] %v4438_v56  ;;  %v1224_v6 = vadd.f32 %v1208_v62, %v4386_v0  ;;  %v4442_v5 = vpop.eup %2457  ;;  %2469 = vrcp.f32 %v1156_v43  ;;  %v1225_v29 = vadd.f32 %v1209_v12, %v4389_v61  ;;  %v1226_v8 = vadd.f32 %v1210_v46, %v4392_v35  ;;  %v5614_v35 = vld [vmem:[#allocation31_spill] sm:$0xff]  ;;  %v5620_v43 = vld [vmem:[#allocation44_spill] sm:$0xff] }
 0x139   :  { %5606 = vst [vmem:[#allocation64_spill] sm:$0xff] %v4442_v5  ;;  %v1227_v32 = vadd.f32 %v1211_v57, %v4395_v47  ;;  %v4449_v25 = vpop.eup %2459  ;;  %2471 = vrcp.f32 %v1157_v15  ;;  %v1228_v13 = vadd.f32 %v1212_v51, %v4398_v14  ;;  %v1229_v37 = vadd.f32 %v1213_v44, %v4401_v9  ;;  %v5615_v47 = vld [vmem:[#allocation32_spill] sm:$0xff]  ;;  %v5623_v46 = vld [vmem:[#allocation47_spill] sm:$0xff] }
 0x13a   :  { %5607 = vst [vmem:[#allocation65_spill] sm:$0xff] %v4449_v25  ;;  %v1230_v62 = vadd.f32 %v1214_v20, %v4404_v49  ;;  %v4454_v18 = vpop.eup %2461  ;;  %2473 = vrcp.f32 %v1158_v55  ;;  %v1231_v12 = vadd.f32 %v1215_v34, %v4408_v58  ;;  %v1232_v22 = vadd.f32 %v1216_v39, %v4411_v17  ;;  %v5611_v17 = vld [vmem:[#allocation29_spill] sm:$0xff]  ;;  %v5618_v49 = vld [vmem:[#allocation34_spill] sm:$0xff] }
 0x13b   :  { %5608 = vst [vmem:[#allocation66_spill] sm:$0xff] %v4454_v18  ;;  %v1235_v57 = vmul.f32 %v4052_v53, %v4414_v38  ;;  %v4460_v42 = vpop.eup %2463  ;;  %2475 = vrcp.f32 %v1159_v2  ;;  %v1236_v51 = vmul.f32 %v4058_v11, %v4414_v38  ;;  %v1237_v44 = vmul.f32 %v4062_v60, %v4414_v38  ;;  %v5612_v2 = vld [vmem:[#allocation30_spill] sm:$0xff] }
 0x13c   :  { %5609 = vst [vmem:[#allocation67_spill] sm:$0xff] %v4460_v42  ;;  %v1238_v15 = vmul.f32 %v4067_v31, %v4414_v38  ;;  %v4468_v55 = vpop.eup %2465  ;;  %2477 = vrcp.f32 %v1160_v50  ;;  %v1239_v34 = vmul.f32 %v4072_v23, %v4414_v38  ;;  %v1240_v0 = vmul.f32 %v5611_v17, %v4414_v38  ;;  %v5616_v50 = vld [vmem:[#allocation33_spill] sm:$0xff]  ;;  %v5626_v18 = vld [vmem:[#allocation50_spill] sm:$0xff] }
 0x13d   :  { %5610 = vst [vmem:[#allocation68_spill] sm:$0xff] %v4468_v55  ;;  %v1241_v58 = vmul.f32 %v5612_v2, %v4414_v38  ;;  %v4476_v61 = vpop.eup %2467  ;;  %2479 = vrcp.f32 %v1161_v4  ;;  %v1242_v10 = vmul.f32 %v5614_v35, %v4414_v38  ;;  %v1243_v14 = vmul.f32 %v5615_v47, %v4414_v38 }
 0x13e   :  { %5613 = vst [vmem:[#allocation29_spill] sm:$0xff] %v4476_v61  ;;  %v1244_v9 = vmul.f32 %v5616_v50, %v4414_v38  ;;  %v4486_v54 = vpop.eup %2469  ;;  %2481 = vrcp.f32 %v1162_v41  ;;  %v1245_v52 = vmul.f32 %v5618_v49, %v4414_v38  ;;  %v1246_v40 = vmul.f32 %v5619_v7, %v4414_v38  ;;  %v5676_v49 = vld [vmem:[#allocation5_spill] sm:$0xff] }
 0x13f   :  { %5617 = vst [vmem:[#allocation69_spill] sm:$0xff] %v4486_v54  ;;  %v1247_v63 = vmul.f32 %v5620_v43, %v4414_v38  ;;  %v4496_v28 = vpop.eup %2471  ;;  %2483 = vrcp.f32 %v1163_v45  ;;  %v1248_v39 = vmul.f32 %v5622_v33, %v4414_v38  ;;  %v1249_v20 = vmul.f32 %v5623_v46, %v4414_v38  ;;  %v5628_v43 = vld [vmem:[#allocation51_spill] sm:$0xff] }
 0x140   :  { %5621 = vst [vmem:[#allocation70_spill] sm:$0xff] %v4496_v28  ;;  %v1250_v24 = vmul.f32 %v5568_v59, %v4414_v38  ;;  %v4504_v4 = vpop.eup %2473  ;;  %2485 = vrcp.f32 %v1164_v26  ;;  %v1251_v41 = vadd.f32 %v1235_v57, %v1217_v30  ;;  %v1252_v54 = vadd.f32 %v1236_v51, %v1218_v36  ;;  %v5630_v57 = vld [vmem:[#allocation52_spill] sm:$0xff] }
 0x141   :  { %5624 = vst [vmem:[#allocation71_spill] sm:$0xff] %v4504_v4  ;;  %v1268_v61 = vstv %s4447_s14  ;;  %v4507_v55 = vpop.eup %2475  ;;  %v1253_v42 = vadd.f32 %v1237_v44, %v1219_v21  ;;  %v1254_v28 = vadd.f32 %v1238_v15, %v1220_v1  ;;  %v1255_v45 = vadd.f32 %v1239_v34, %v1221_v3  ;;  %v5632_v15 = vld [vmem:[#allocation54_spill] sm:$0xff] }
 0x142   :  { %5625 = vst [vmem:[#allocation72_spill] sm:$0xff] %v4507_v55  ;;  %v1269_v25 = vmul.f32 %v5626_v18, %v1268_v61  ;;  %v4510_v5 = vpop.eup %2477  ;;  %v1256_v56 = vadd.f32 %v1240_v0, %v1222_v48  ;;  %v1257_v46 = vadd.f32 %v1241_v58, %v1223_v27  ;;  %v1258_v33 = vadd.f32 %v1242_v10, %v1224_v6  ;;  %v5634_v0 = vld [vmem:[#allocation56_spill] sm:$0xff]  ;;  %v5645_v4 = vld [vmem:[#allocation62_spill] sm:$0xff] }
 0x143   :  { %5627 = vst [vmem:[#allocation73_spill] sm:$0xff] %v4510_v5  ;;  %v1270_v38 = vmul.f32 %v5628_v43, %v1268_v61  ;;  %v4513_v59 = vpop.eup %2479  ;;  %v1259_v26 = vadd.f32 %v1243_v14, %v1225_v29  ;;  %v1260_v30 = vadd.f32 %v1244_v9, %v1226_v8  ;;  %v1261_v36 = vadd.f32 %v1245_v52, %v1227_v32  ;;  %v5636_v32 = vld [vmem:[#allocation59_spill] sm:$0xff] }
 0x144   :  { %5629 = vst [vmem:[#allocation74_spill] sm:$0xff] %v4513_v59  ;;  %v1271_v21 = vmul.f32 %v5630_v57, %v1268_v61  ;;  %v4516_v1 = vpop.eup %2481  ;;  %v1262_v3 = vadd.f32 %v1246_v40, %v1228_v13  ;;  %v1263_v51 = vadd.f32 %v1247_v63, %v1229_v37  ;;  %v1264_v44 = vadd.f32 %v1248_v39, %v1230_v62  ;;  %v5637_v13 = vld [vmem:[#allocation6_spill] sm:$0xff]  ;;  %v5638_v62 = vld [vmem:[#allocation8_spill] sm:$0xff]  ;;  %v5639_v63 = vld [vmem:[#allocation9_spill] sm:$0xff] }
 0x145   :  { %5631 = vst [vmem:[#allocation75_spill] sm:$0xff] %v4516_v1  ;;  %v1272_v48 = vmul.f32 %v5632_v15, %v1268_v61  ;;  %v4519_v27 = vpop.eup %2483  ;;  %v1265_v6 = vadd.f32 %v1249_v20, %v1231_v12  ;;  %v1266_v34 = vadd.f32 %v1250_v24, %v1232_v22  ;;  %v1273_v58 = vmul.f32 %v5634_v0, %v1268_v61  ;;  %v5640_v12 = vld [vmem:[#allocation18_spill] sm:$0xff]  ;;  %v5641_v20 = vld [vmem:[#allocation19_spill] sm:$0xff]  ;;  %v5643_v1 = vld [vmem:[#allocation60_spill] sm:$0xff] }
 0x146   :  { %5633 = vst [vmem:[#allocation76_spill] sm:$0xff] %v4519_v27  ;;  %v1285_v29 = vadd.f32 %v1269_v25, %v1251_v41  ;;  %v4522_v8 = vpop.eup %2485  ;;  %v1274_v10 = vmul.f32 %v5636_v32, %v1268_v61  ;;  %v1286_v14 = vadd.f32 %v1270_v38, %v1252_v54  ;;  %v1302_v9 = vstv %s4484_s9  ;;  %v5642_v25 = vld [vmem:[#allocation21_spill] sm:$0xff]  ;;  %v5646_v32 = vld [vmem:[#allocation63_spill] sm:$0xff] }
 0x147   :  { %5635 = vst [vmem:[#allocation77_spill] sm:$0xff] %v4522_v8  ;;  %v4527_v52 = vstv %s4494_s30  ;;  %v1275_v37 = vmul.f32 %v5637_v13, %v1268_v61  ;;  %v1276_v40 = vmul.f32 %v5638_v62, %v1268_v61  ;;  %v1277_v39 = vmul.f32 %v5639_v63, %v1268_v61  ;;  %v5644_v54 = vld [vmem:[#allocation61_spill] sm:$0xff] }
 0x148   :  { %v1287_v27 = vadd.f32 %v1271_v21, %v1253_v42  ;;  %v1278_v22 = vmul.f32 %v5640_v12, %v1268_v61  ;;  %v1279_v24 = vmul.f32 %v5641_v20, %v1268_v61  ;;  %v1280_v41 = vmul.f32 %v5642_v25, %v1268_v61 }
 0x149   :  { %v1288_v8 = vadd.f32 %v1272_v48, %v1254_v28  ;;  %v1281_v59 = vmul.f32 %v5643_v1, %v1268_v61  ;;  %v1282_v38 = vmul.f32 %v5644_v54, %v1268_v61  ;;  %v1289_v5 = vadd.f32 %v1273_v58, %v1255_v45 }
 0x14a   :  { %v1303_v55 = vadd.f32 %v1302_v9, %v1285_v29  ;;  %v1283_v13 = vmul.f32 %v5645_v4, %v1268_v61  ;;  %v1284_v62 = vmul.f32 %v5646_v32, %v1268_v61  ;;  %v1290_v0 = vadd.f32 %v1274_v10, %v1256_v56  ;;  %v5673_v32 = vld [vmem:[#allocation53_spill] sm:$0xff] }
 0x14b   :  { %v1304_v63 = vadd.f32 %v1302_v9, %v1286_v14  ;;  %v1291_v42 = vadd.f32 %v1275_v37, %v1257_v46  ;;  %v1292_v21 = vadd.f32 %v1276_v40, %v1258_v33  ;;  %v1293_v12 = vadd.f32 %v1277_v39, %v1259_v26  ;;  %v5648_v39 = vld [vmem:[#allocation58_spill] sm:$0xff] }
 0x14c   :  { %v1305_v15 = vadd.f32 %v1302_v9, %v1287_v27  ;;  %v1294_v20 = vadd.f32 %v1278_v22, %v1260_v30  ;;  %v1295_v57 = vadd.f32 %v1279_v24, %v1261_v36  ;;  %v1296_v25 = vadd.f32 %v1280_v41, %v1262_v3 }
 0x14d   :  { %v1306_v28 = vadd.f32 %v1302_v9, %v1288_v8  ;;  %v1297_v48 = vadd.f32 %v1281_v59, %v1263_v51  ;;  %v1298_v1 = vadd.f32 %v1282_v38, %v1264_v44  ;;  %v1307_v43 = vadd.f32 %v1302_v9, %v1289_v5 }
 0x14e   :  { %v1319_v54 = vsub.f32 0.0, %v1303_v55  ;;  %v1299_v45 = vadd.f32 %v1283_v13, %v1265_v6  ;;  %v1300_v58 = vadd.f32 %v1284_v62, %v1266_v34  ;;  %v1308_v29 = vadd.f32 %v1302_v9, %v1290_v0 }
 0x14f   :  { %v1320_v4 = vsub.f32 0.0, %v1304_v63  ;;  %v1309_v18 = vadd.f32 %v1302_v9, %v1291_v42  ;;  %v1310_v61 = vadd.f32 %v1302_v9, %v1292_v21  ;;  %v1311_v56 = vadd.f32 %v1302_v9, %v1293_v12 }
 0x150   :  { %v1321_v10 = vsub.f32 0.0, %v1305_v15  ;;  %v1312_v46 = vadd.f32 %v1302_v9, %v1294_v20  ;;  %v1313_v33 = vadd.f32 %v1302_v9, %v1295_v57  ;;  %v1314_v26 = vadd.f32 %v1302_v9, %v1296_v25 }
 0x151   :  { %v1322_v27 = vsub.f32 0.0, %v1306_v28  ;;  %v1315_v30 = vadd.f32 %v1302_v9, %v1297_v48  ;;  %v1316_v36 = vadd.f32 %v1302_v9, %v1298_v1  ;;  %v1323_v3 = vsub.f32 0.0, %v1307_v43  ;;  %v5649_v48 = vld [vmem:[#allocation12_spill] sm:$0xff] }
 0x152   :  { %v1335_v8 = vmul.f32 1.442695, %v1319_v54  ;;  %v1317_v59 = vadd.f32 %v1302_v9, %v1299_v45  ;;  %v1318_v51 = vadd.f32 %v1302_v9, %v1300_v58  ;;  %v1324_v5 = vsub.f32 0.0, %v1308_v29  ;;  %v5650_v58 = vld [vmem:[#allocation13_spill] sm:$0xff] }
 0x153   :  { %v1337_v55 = vmul.f32 1.442695, %v1320_v4  ;;  %v1325_v44 = vsub.f32 0.0, %v1309_v18  ;;  %v1326_v6 = vsub.f32 0.0, %v1310_v61  ;;  %v1327_v34 = vsub.f32 0.0, %v1311_v56  ;;  %v5647_v18 = vld [vmem:[#allocation11_spill] sm:$0xff] }
 0x154   :  { %v1339_v0 = vmul.f32 1.442695, %v1321_v10  ;;  %v1328_v14 = vsub.f32 0.0, %v1312_v46  ;;  %v1329_v13 = vsub.f32 0.0, %v1313_v33  ;;  %v1330_v37 = vsub.f32 0.0, %v1314_v26  ;;  %v5651_v61 = vld [vmem:[#allocation14_spill] sm:$0xff] }
 0x155   :  { %v1341_v15 = vmul.f32 1.442695, %v1322_v27  ;;  %v1331_v62 = vsub.f32 0.0, %v1315_v30  ;;  %v1332_v57 = vsub.f32 0.0, %v1316_v36  ;;  %2487 = vpow2.f32 %v1335_v8  ;;  %v5652_v46 = vld [vmem:[#allocation15_spill] sm:$0xff]  ;;  %v5653_v26 = vld [vmem:[#allocation16_spill] sm:$0xff] }
 0x156   :  { %v1343_v40 = vmul.f32 1.442695, %v1323_v3  ;;  %v1333_v63 = vsub.f32 0.0, %v1317_v59  ;;  %v1334_v1 = vsub.f32 0.0, %v1318_v51  ;;  %2489 = vpow2.f32 %v1337_v55  ;;  %v5654_v30 = vld [vmem:[#allocation17_spill] sm:$0xff]  ;;  %v5655_v8 = vld [vmem:[#allocation20_spill] sm:$0xff] }
 0x157   :  { %v1345_v43 = vmul.f32 1.442695, %v1324_v5  ;;  %2491 = vpow2.f32 %v1339_v0  ;;  %v1347_v4 = vmul.f32 1.442695, %v1325_v44  ;;  %v4543_v9 = vmul.f32 %v5647_v18, %v4527_v52  ;;  %v5656_v51 = vld [vmem:[#allocation22_spill] sm:$0xff]  ;;  %v5657_v55 = vld [vmem:[#allocation23_spill] sm:$0xff] }
 0x158   :  { %v4547_v12 = vmul.f32 %v5648_v39, %v4527_v52  ;;  %2493 = vpow2.f32 %v1341_v15  ;;  %v1349_v22 = vmul.f32 1.442695, %v1326_v6  ;;  %v1351_v20 = vmul.f32 1.442695, %v1327_v34  ;;  %v5658_v34 = vld [vmem:[#allocation24_spill] sm:$0xff]  ;;  %v5671_v39 = vld [vmem:[#allocation45_spill] sm:$0xff] }
 0x159   :  { %v1353_v24 = vmul.f32 1.442695, %v1328_v14  ;;  %2495 = vpow2.f32 %v1343_v40  ;;  %v1355_v25 = vmul.f32 1.442695, %v1329_v13  ;;  %v1357_v41 = vmul.f32 1.442695, %v1330_v37 }
 0x15a   :  { %v1359_v54 = vmul.f32 1.442695, %v1331_v62  ;;  %2497 = vpow2.f32 %v1345_v43  ;;  %v1361_v38 = vmul.f32 1.442695, %v1332_v57  ;;  %v1363_v42 = vmul.f32 1.442695, %v1333_v63 }
 0x15b   :  { %v1365_v21 = vmul.f32 1.442695, %v1334_v1  ;;  %v2488_v28 = vpop.eup %2487  ;;  %2499 = vpow2.f32 %v1347_v4  ;;  %v4551_v45 = vmul.f32 %v5649_v48, %v4527_v52  ;;  %v4555_v29 = vmul.f32 %v5650_v58, %v4527_v52  ;;  %v5659_v14 = vld [vmem:[#allocation25_spill] sm:$0xff]  ;;  %v5660_v57 = vld [vmem:[#allocation26_spill] sm:$0xff]  ;;  %v5661_v63 = vld [vmem:[#allocation27_spill] sm:$0xff] }
 0x15c   :  { %v4559_v56 = vmul.f32 %v5651_v61, %v4527_v52  ;;  %v2490_v10 = vpop.eup %2489  ;;  %2501 = vpow2.f32 %v1349_v22  ;;  %v4563_v33 = vmul.f32 %v5652_v46, %v4527_v52  ;;  %v4567_v27 = vmul.f32 %v5653_v26, %v4527_v52  ;;  %v5666_v26 = vld [vmem:[#allocation38_spill] sm:$0xff]  ;;  %v5667_v46 = vld [vmem:[#allocation39_spill] sm:$0xff]  ;;  %v5672_v18 = vld [vmem:[#allocation49_spill] sm:$0xff] }
 0x15d   :  { %v4571_v36 = vmul.f32 %v5654_v30, %v4527_v52  ;;  %v2492_v3 = vpop.eup %2491  ;;  %2503 = vpow2.f32 %v1351_v20  ;;  %v4575_v59 = vmul.f32 %v5655_v8, %v4527_v52  ;;  %v4579_v5 = vmul.f32 %v5656_v51, %v4527_v52  ;;  %v5662_v20 = vld [vmem:[#allocation28_spill] sm:$0xff] }
 0x15e   :  { %v4583_v44 = vmul.f32 %v5657_v55, %v4527_v52  ;;  %v2494_v6 = vpop.eup %2493  ;;  %2505 = vpow2.f32 %v1353_v24  ;;  %v4587_v0 = vmul.f32 %v5658_v34, %v4527_v52  ;;  %v4591_v13 = vmul.f32 %v5659_v14, %v4527_v52  ;;  %v5664_v55 = vld [vmem:[#allocation36_spill] sm:$0xff] }
 0x15f   :  { %v1418_v37 = vstv %s4539_s11  ;;  %v2496_v15 = vpop.eup %2495  ;;  %2507 = vpow2.f32 %v1355_v25  ;;  %v1367_v62 = vadd.f32 1.0, %v2488_v28  ;;  %v4596_v40 = vmul.f32 %v5660_v57, %v4527_v52  ;;  %v5663_v28 = vld [vmem:[#allocation35_spill] sm:$0xff] }
 0x160   :  { %v4600_v1 = vmul.f32 %v5661_v63, %v4527_v52  ;;  %v2498_v43 = vpop.eup %2497  ;;  %2509 = vpow2.f32 %v1357_v41  ;;  %v1368_v4 = vadd.f32 1.0, %v2490_v10  ;;  %v1369_v22 = vadd.f32 1.0, %v2492_v3  ;;  %v5665_v63 = vld [vmem:[#allocation37_spill] sm:$0xff] }
 0x161   :  { %v4604_v24 = vmul.f32 %v5662_v20, %v4527_v52  ;;  %v2500_v14 = vpop.eup %2499  ;;  %2511 = vpow2.f32 %v1359_v54  ;;  %v1370_v25 = vadd.f32 1.0, %v2494_v6  ;;  %v1419_v34 = vmul.f32 %v5663_v28, %v1418_v37  ;;  %v5668_v20 = vld [vmem:[#allocation40_spill] sm:$0xff]  ;;  %v5669_v28 = vld [vmem:[#allocation41_spill] sm:$0xff] }
 0x162   :  { %v1420_v57 = vmul.f32 %v5664_v55, %v1418_v37  ;;  %v2502_v51 = vpop.eup %2501  ;;  %2513 = vpow2.f32 %v1361_v38  ;;  %v1371_v8 = vadd.f32 1.0, %v2496_v15  ;;  %v1421_v30 = vmul.f32 %v5665_v63, %v1418_v37  ;;  %v5670_v55 = vld [vmem:[#allocation42_spill] sm:$0xff] }
 0x163   :  { %v1422_v41 = vmul.f32 %v5666_v26, %v1418_v37  ;;  %v2504_v10 = vpop.eup %2503  ;;  %2515 = vpow2.f32 %v1363_v42  ;;  %v1372_v3 = vadd.f32 1.0, %v2498_v43  ;;  %v1423_v52 = vmul.f32 %v5667_v46, %v1418_v37 }
 0x164   :  { %v1424_v61 = vmul.f32 %v5668_v20, %v1418_v37  ;;  %v2506_v54 = vpop.eup %2505  ;;  %2517 = vpow2.f32 %v1365_v21  ;;  %v1373_v6 = vadd.f32 1.0, %v2500_v14  ;;  %v1425_v58 = vmul.f32 %v5669_v28, %v1418_v37  ;;  %v5674_v20 = vld [vmem:[#allocation55_spill] sm:$0xff]  ;;  %v5675_v21 = vld [vmem:[#allocation57_spill] sm:$0xff] }
 0x165   :  { %v1426_v48 = vmul.f32 %v5670_v55, %v1418_v37  ;;  %v2508_v38 = vpop.eup %2507  ;;  %v1374_v15 = vadd.f32 1.0, %v2502_v51  ;;  %v1427_v63 = vmul.f32 %v5671_v39, %v1418_v37  ;;  %v1428_v26 = vmul.f32 %v5672_v18, %v1418_v37 }
 0x166   :  { %v1429_v42 = vmul.f32 %v5673_v32, %v1418_v37  ;;  %v2510_v43 = vpop.eup %2509  ;;  %v1375_v46 = vadd.f32 1.0, %v2504_v10  ;;  %v1430_v7 = vmul.f32 %v5674_v20, %v1418_v37  ;;  %v1431_v14 = vmul.f32 %v5675_v21, %v1418_v37 }
 0x167   :  { %v1432_v28 = vmul.f32 %v5676_v49, %v1418_v37  ;;  %v2512_v50 = vpop.eup %2511  ;;  %v1376_v55 = vadd.f32 1.0, %v2506_v54  ;;  %2519 = vrcp.f32 %v1367_v62  ;;  %v1433_v51 = vmul.f32 %v5604_v16, %v1418_v37 }
 0x168   :  { %v1434_v39 = vmul.f32 %v5551_v19, %v1418_v37  ;;  %v2514_v32 = vpop.eup %2513  ;;  %v1377_v18 = vadd.f32 1.0, %v2508_v38  ;;  %2521 = vrcp.f32 %v1368_v4  ;;  %v4627_v10 = vadd.f32 %v1419_v34, %v4543_v9  ;;  %v5688_v38 = vld [vmem:[#allocation44_spill] sm:$0xff] }
 0x169   :  { %v4630_v20 = vadd.f32 %v1420_v57, %v4547_v12  ;;  %v2516_v21 = vpop.eup %2515  ;;  %v1378_v49 = vadd.f32 1.0, %v2510_v43  ;;  %2523 = vrcp.f32 %v1369_v22  ;;  %v4633_v62 = vadd.f32 %v1421_v30, %v4551_v45  ;;  %v5690_v43 = vld [vmem:[#allocation47_spill] sm:$0xff] }
 0x16a   :  { %v4636_v54 = vadd.f32 %v1422_v41, %v4555_v29  ;;  %v2518_v37 = vpop.eup %2517  ;;  %v1379_v19 = vadd.f32 1.0, %v2512_v50  ;;  %2525 = vrcp.f32 %v1370_v25  ;;  %v1439_v4 = vadd.f32 %v1423_v52, %v4559_v56  ;;  %v5684_v25 = vld [vmem:[#allocation33_spill] sm:$0xff] }
 0x16b   :  { %v1440_v9 = vadd.f32 %v1424_v61, %v4563_v33  ;;  %v1380_v34 = vadd.f32 1.0, %v2514_v32  ;;  %2527 = vrcp.f32 %v1371_v8  ;;  %v1441_v12 = vadd.f32 %v1425_v58, %v4567_v27 }
 0x16c   :  { %v1442_v57 = vadd.f32 %v1426_v48, %v4571_v36  ;;  %v1381_v22 = vadd.f32 1.0, %v2516_v21  ;;  %2529 = vrcp.f32 %v1372_v3  ;;  %v1443_v45 = vadd.f32 %v1427_v63, %v4575_v59  ;;  %v5686_v3 = vld [vmem:[#allocation43_spill] sm:$0xff] }
 0x16d   :  { %v1444_v29 = vadd.f32 %v1428_v26, %v4579_v5  ;;  %v4644_v50 = vpop.eup %2519  ;;  %v1382_v30 = vadd.f32 1.0, %v2518_v37  ;;  %2531 = vrcp.f32 %v1373_v6  ;;  %v1445_v56 = vadd.f32 %v1429_v42, %v4583_v44 }
 0x16e   :  { %5677 = vst [vmem:[#allocation78_spill] sm:$0xff] %v4644_v50  ;;  %v1452_v61 = vstv %s4617_s26  ;;  %v4648_v32 = vpop.eup %2521  ;;  %2533 = vrcp.f32 %v1374_v15  ;;  %v1446_v58 = vadd.f32 %v1430_v7, %v4587_v0  ;;  %v1447_v48 = vadd.f32 %v1431_v14, %v4591_v13  ;;  %v5689_v15 = vld [vmem:[#allocation46_spill] sm:$0xff] }
 0x16f   :  { %5678 = vst [vmem:[#allocation79_spill] sm:$0xff] %v4648_v32  ;;  %v1448_v33 = vadd.f32 %v1432_v28, %v4596_v40  ;;  %v4653_v27 = vpop.eup %2523  ;;  %2535 = vrcp.f32 %v1375_v46  ;;  %v1449_v26 = vadd.f32 %v1433_v51, %v4600_v1  ;;  %v1450_v36 = vadd.f32 %v1434_v39, %v4604_v24  ;;  %v5685_v28 = vld [vmem:[#allocation34_spill] sm:$0xff]  ;;  %v5692_v51 = vld [vmem:[#allocation48_spill] sm:$0xff] }
 0x170   :  { %5679 = vst [vmem:[#allocation80_spill] sm:$0xff] %v4653_v27  ;;  %v4658_v8 = vstv %s4624_s12  ;;  %v4660_v59 = vpop.eup %2525  ;;  %2537 = vrcp.f32 %v1376_v55  ;;  %v1453_v5 = vmul.f32 %v4052_v53, %v1452_v61  ;;  %v1454_v7 = vmul.f32 %v4058_v11, %v1452_v61 }
 0x171   :  { %5680 = vst [vmem:[#allocation81_spill] sm:$0xff] %v4660_v59  ;;  %v1455_v44 = vmul.f32 %v4062_v60, %v1452_v61  ;;  %v4665_v0 = vpop.eup %2527  ;;  %2539 = vrcp.f32 %v1377_v18  ;;  %v1456_v46 = vmul.f32 %v4067_v31, %v1452_v61  ;;  %v1457_v13 = vmul.f32 %v4072_v23, %v1452_v61 }
 0x172   :  { %5681 = vst [vmem:[#allocation82_spill] sm:$0xff] %v4665_v0  ;;  %v1458_v39 = vmul.f32 %v5611_v17, %v1452_v61  ;;  %v4670_v40 = vpop.eup %2529  ;;  %2541 = vrcp.f32 %v1378_v49  ;;  %v1459_v55 = vmul.f32 %v5612_v2, %v1452_v61  ;;  %v1460_v63 = vmul.f32 %v5614_v35, %v1452_v61  ;;  %v5694_v0 = vld [vmem:[#allocation50_spill] sm:$0xff] }
 0x173   :  { %5682 = vst [vmem:[#allocation83_spill] sm:$0xff] %v4670_v40  ;;  %v1461_v1 = vmul.f32 %v5615_v47, %v1452_v61  ;;  %v4675_v24 = vpop.eup %2531  ;;  %2543 = vrcp.f32 %v1379_v19  ;;  %v1462_v18 = vmul.f32 %v5684_v25, %v1452_v61  ;;  %v1463_v41 = vmul.f32 %v5685_v28, %v1452_v61  ;;  %v5744_v25 = vld [vmem:[#allocation57_spill] sm:$0xff] }
 0x174   :  { %5683 = vst [vmem:[#allocation84_spill] sm:$0xff] %v4675_v24  ;;  %v1464_v52 = vmul.f32 %v5686_v3, %v1452_v61  ;;  %v4680_v6 = vpop.eup %2533  ;;  %2545 = vrcp.f32 %v1380_v34  ;;  %v1465_v49 = vmul.f32 %v5688_v38, %v1452_v61  ;;  %v1466_v42 = vmul.f32 %v5689_v15, %v1452_v61  ;;  %v5740_v15 = vld [vmem:[#allocation45_spill] sm:$0xff] }
 0x175   :  { %5687 = vst [vmem:[#allocation85_spill] sm:$0xff] %v4680_v6  ;;  %v1467_v21 = vmul.f32 %v5690_v43, %v1452_v61  ;;  %v4685_v14 = vpop.eup %2535  ;;  %2547 = vrcp.f32 %v1381_v22  ;;  %v1468_v19 = vmul.f32 %v5692_v51, %v1452_v61  ;;  %v1469_v37 = vadd.f32 %v1453_v5, %v4627_v10  ;;  %v5696_v10 = vld [vmem:[#allocation51_spill] sm:$0xff]  ;;  %v5741_v38 = vld [vmem:[#allocation49_spill] sm:$0xff] }
 0x176   :  { %5691 = vst [vmem:[#allocation86_spill] sm:$0xff] %v4685_v14  ;;  %v1470_v24 = vadd.f32 %v1454_v7, %v4630_v20  ;;  %v4692_v40 = vpop.eup %2537  ;;  %2549 = vrcp.f32 %v1382_v30  ;;  %v1471_v34 = vadd.f32 %v1455_v44, %v4633_v62  ;;  %v1472_v6 = vadd.f32 %v1456_v46, %v4636_v54  ;;  %v5698_v62 = vld [vmem:[#allocation52_spill] sm:$0xff]  ;;  %v5742_v3 = vld [vmem:[#allocation53_spill] sm:$0xff] }
 0x177   :  { %5693 = vst [vmem:[#allocation87_spill] sm:$0xff] %v4692_v40  ;;  %v1487_v59 = vmul.f32 %v5694_v0, %v4658_v8  ;;  %v4698_v14 = vpop.eup %2539  ;;  %v1473_v22 = vadd.f32 %v1457_v13, %v1439_v4  ;;  %v1474_v61 = vadd.f32 %v1458_v39, %v1440_v9  ;;  %v1475_v27 = vadd.f32 %v1459_v55, %v1441_v12  ;;  %v5700_v4 = vld [vmem:[#allocation54_spill] sm:$0xff]  ;;  %v5702_v55 = vld [vmem:[#allocation56_spill] sm:$0xff] }
 0x178   :  { %5695 = vst [vmem:[#allocation88_spill] sm:$0xff] %v4698_v14  ;;  %v1488_v20 = vmul.f32 %v5696_v10, %v4658_v8  ;;  %v4702_v5 = vpop.eup %2541  ;;  %v1476_v7 = vadd.f32 %v1460_v63, %v1442_v57  ;;  %v1477_v40 = vadd.f32 %v1461_v1, %v1443_v45  ;;  %v1478_v30 = vadd.f32 %v1462_v18, %v1444_v29  ;;  %v5704_v1 = vld [vmem:[#allocation59_spill] sm:$0xff] }
 0x179   :  { %5697 = vst [vmem:[#allocation89_spill] sm:$0xff] %v4702_v5  ;;  %v1489_v44 = vmul.f32 %v5698_v62, %v4658_v8  ;;  %v4706_v54 = vpop.eup %2543  ;;  %v1479_v46 = vadd.f32 %v1463_v41, %v1445_v56  ;;  %v1480_v32 = vadd.f32 %v1464_v52, %v1446_v58  ;;  %v1481_v50 = vadd.f32 %v1465_v49, %v1447_v48  ;;  %v5705_v58 = vld [vmem:[#allocation6_spill] sm:$0xff]  ;;  %v5708_v52 = vld [vmem:[#allocation9_spill] sm:$0xff] }
 0x17a   :  { %5699 = vst [vmem:[#allocation90_spill] sm:$0xff] %v4706_v54  ;;  %v1490_v9 = vmul.f32 %v5700_v4, %v4658_v8  ;;  %v4710_v12 = vpop.eup %2545  ;;  %v1482_v13 = vadd.f32 %v1466_v42, %v1448_v33  ;;  %v1483_v39 = vadd.f32 %v1467_v21, %v1449_v26  ;;  %v1491_v57 = vmul.f32 %v5702_v55, %v4658_v8  ;;  %v5707_v33 = vld [vmem:[#allocation8_spill] sm:$0xff]  ;;  %v5713_v54 = vld [vmem:[#allocation61_spill] sm:$0xff] }
 0x17b   :  { %5701 = vst [vmem:[#allocation91_spill] sm:$0xff] %v4710_v12  ;;  %v1503_v45 = vadd.f32 %v1487_v59, %v1469_v37  ;;  %v4714_v29 = vpop.eup %2547  ;;  %v1484_v63 = vadd.f32 %v1468_v19, %v1450_v36  ;;  %v1492_v56 = vmul.f32 %v5704_v1, %v4658_v8  ;;  %v1493_v48 = vmul.f32 %v5705_v58, %v4658_v8  ;;  %v5709_v59 = vld [vmem:[#allocation18_spill] sm:$0xff]  ;;  %v5710_v36 = vld [vmem:[#allocation19_spill] sm:$0xff]  ;;  %v5711_v37 = vld [vmem:[#allocation21_spill] sm:$0xff] }
 0x17c   :  { %5703 = vst [vmem:[#allocation92_spill] sm:$0xff] %v4714_v29  ;;  %v1504_v18 = vadd.f32 %v1488_v20, %v1470_v24  ;;  %v4720_v41 = vpop.eup %2549  ;;  %v1494_v26 = vmul.f32 %v5707_v33, %v4658_v8  ;;  %v1495_v49 = vmul.f32 %v5708_v52, %v4658_v8  ;;  %v1496_v42 = vmul.f32 %v5709_v59, %v4658_v8  ;;  %v5712_v20 = vld [vmem:[#allocation60_spill] sm:$0xff]  ;;  %v5714_v33 = vld [vmem:[#allocation62_spill] sm:$0xff] }
 0x17d   :  { %5706 = vst [vmem:[#allocation93_spill] sm:$0xff] %v4720_v41  ;;  %v1505_v21 = vadd.f32 %v1489_v44, %v1471_v34  ;;  %v1497_v19 = vmul.f32 %v5710_v36, %v4658_v8  ;;  %v1498_v29 = vmul.f32 %v5711_v37, %v4658_v8  ;;  %v1506_v12 = vadd.f32 %v1490_v9, %v1472_v6  ;;  %v5715_v34 = vld [vmem:[#allocation63_spill] sm:$0xff] }
 0x17e   :  { %v1520_v24 = vstv %s4690_s15  ;;  %v1499_v41 = vmul.f32 %v5712_v20, %v4658_v8  ;;  %v1500_v5 = vmul.f32 %v5713_v54, %v4658_v8  ;;  %v1507_v14 = vadd.f32 %v1491_v57, %v1473_v22 }
 0x17f   :  { %v1521_v52 = vadd.f32 %v1520_v24, %v1503_v45  ;;  %v1501_v59 = vmul.f32 %v5714_v33, %v4658_v8  ;;  %v1502_v44 = vmul.f32 %v5715_v34, %v4658_v8  ;;  %v1508_v36 = vadd.f32 %v1492_v56, %v1474_v61 }
 0x180   :  { %v1522_v58 = vadd.f32 %v1520_v24, %v1504_v18  ;;  %v1509_v1 = vadd.f32 %v1493_v48, %v1475_v27  ;;  %v1510_v37 = vadd.f32 %v1494_v26, %v1476_v7  ;;  %v1511_v6 = vadd.f32 %v1495_v49, %v1477_v40 }
 0x181   :  { %v1523_v9 = vadd.f32 %v1520_v24, %v1505_v21  ;;  %v1512_v55 = vadd.f32 %v1496_v42, %v1478_v30  ;;  %v1513_v4 = vadd.f32 %v1497_v19, %v1479_v46  ;;  %v1514_v20 = vadd.f32 %v1498_v29, %v1480_v32 }
 0x182   :  { %v1524_v62 = vadd.f32 %v1520_v24, %v1506_v12  ;;  %v1515_v10 = vadd.f32 %v1499_v41, %v1481_v50  ;;  %v1516_v54 = vadd.f32 %v1500_v5, %v1482_v13  ;;  %v1525_v22 = vadd.f32 %v1520_v24, %v1507_v14 }
 0x183   :  { %v1537_v57 = vsub.f32 0.0, %v1521_v52  ;;  %v1517_v45 = vadd.f32 %v1501_v59, %v1483_v39  ;;  %v1518_v33 = vadd.f32 %v1502_v44, %v1484_v63  ;;  %v1526_v0 = vadd.f32 %v1520_v24, %v1508_v36  ;;  %v5716_v36 = vld [vmem:[#allocation11_spill] sm:$0xff] }
 0x184   :  { %v1538_v8 = vsub.f32 0.0, %v1522_v58  ;;  %v1527_v61 = vadd.f32 %v1520_v24, %v1509_v1  ;;  %v1528_v56 = vadd.f32 %v1520_v24, %v1510_v37  ;;  %v1529_v27 = vadd.f32 %v1520_v24, %v1511_v6 }
 0x185   :  { %v1539_v7 = vsub.f32 0.0, %v1523_v9  ;;  %v1530_v40 = vadd.f32 %v1520_v24, %v1512_v55  ;;  %v1531_v48 = vadd.f32 %v1520_v24, %v1513_v4  ;;  %v1532_v30 = vadd.f32 %v1520_v24, %v1514_v20 }
 0x186   :  { %v1540_v46 = vsub.f32 0.0, %v1524_v62  ;;  %v1533_v32 = vadd.f32 %v1520_v24, %v1515_v10  ;;  %v1534_v12 = vadd.f32 %v1520_v24, %v1516_v54  ;;  %v1541_v50 = vsub.f32 0.0, %v1525_v22 }
 0x187   :  { %v1553_v5 = vmul.f32 1.442695, %v1537_v57  ;;  %v1535_v14 = vadd.f32 %v1520_v24, %v1517_v45  ;;  %v1536_v13 = vadd.f32 %v1520_v24, %v1518_v33  ;;  %v1542_v29 = vsub.f32 0.0, %v1526_v0  ;;  %v5717_v45 = vld [vmem:[#allocation58_spill] sm:$0xff] }
 0x188   :  { %v1555_v39 = vmul.f32 1.442695, %v1538_v8  ;;  %v1543_v63 = vsub.f32 0.0, %v1527_v61  ;;  %v1544_v18 = vsub.f32 0.0, %v1528_v56  ;;  %v1545_v58 = vsub.f32 0.0, %v1529_v27  ;;  %v5718_v61 = vld [vmem:[#allocation12_spill] sm:$0xff] }
 0x189   :  { %v1557_v1 = vmul.f32 1.442695, %v1539_v7  ;;  %v1546_v41 = vsub.f32 0.0, %v1530_v40  ;;  %v1547_v26 = vsub.f32 0.0, %v1531_v48  ;;  %v1548_v52 = vsub.f32 0.0, %v1532_v30  ;;  %v5719_v7 = vld [vmem:[#allocation13_spill] sm:$0xff] }
 0x18a   :  { %v1559_v55 = vmul.f32 1.442695, %v1540_v46  ;;  %v1549_v4 = vsub.f32 0.0, %v1533_v32  ;;  %2551 = vpow2.f32 %v1553_v5  ;;  %v1561_v62 = vmul.f32 1.442695, %v1541_v50  ;;  %v5720_v48 = vld [vmem:[#allocation14_spill] sm:$0xff] }
 0x18b   :  { %v1618_v10 = vstv %s4741_s10  ;;  %v1550_v54 = vsub.f32 0.0, %v1534_v12  ;;  %v1551_v49 = vsub.f32 0.0, %v1535_v14  ;;  %2553 = vpow2.f32 %v1555_v39  ;;  %v5721_v46 = vld [vmem:[#allocation15_spill] sm:$0xff]  ;;  %v5722_v50 = vld [vmem:[#allocation16_spill] sm:$0xff]  ;;  %v5723_v14 = vld [vmem:[#allocation17_spill] sm:$0xff] }
 0x18c   :  { %v1563_v59 = vmul.f32 1.442695, %v1542_v29  ;;  %v1552_v42 = vsub.f32 0.0, %v1536_v13  ;;  %2555 = vpow2.f32 %v1557_v1  ;;  %v1565_v0 = vmul.f32 1.442695, %v1543_v63  ;;  %v5724_v29 = vld [vmem:[#allocation20_spill] sm:$0xff] }
 0x18d   :  { %2557 = vpow2.f32 %v1559_v55  ;;  %v1567_v33 = vmul.f32 1.442695, %v1544_v18  ;;  %v1569_v21 = vmul.f32 1.442695, %v1545_v58  ;;  %v4747_v19 = vmul.f32 %v5716_v36, %v1618_v10  ;;  %v5725_v18 = vld [vmem:[#allocation22_spill] sm:$0xff]  ;;  %v5726_v1 = vld [vmem:[#allocation23_spill] sm:$0xff] }
 0x18e   :  { %2559 = vpow2.f32 %v1561_v62  ;;  %v1571_v37 = vmul.f32 1.442695, %v1546_v41  ;;  %v1573_v24 = vmul.f32 1.442695, %v1547_v26  ;;  %v1575_v20 = vmul.f32 1.442695, %v1548_v52 }
 0x18f   :  { %2561 = vpow2.f32 %v1563_v59  ;;  %v1577_v44 = vmul.f32 1.442695, %v1549_v4  ;;  %v1579_v6 = vmul.f32 1.442695, %v1550_v54  ;;  %v1581_v9 = vmul.f32 1.442695, %v1551_v49 }
 0x190   :  { %v2552_v22 = vpop.eup %2551  ;;  %2563 = vpow2.f32 %v1565_v0  ;;  %v1583_v57 = vmul.f32 1.442695, %v1552_v42  ;;  %v4752_v8 = vmul.f32 %v5717_v45, %v1618_v10  ;;  %v4755_v56 = vmul.f32 %v5718_v61, %v1618_v10  ;;  %v5727_v26 = vld [vmem:[#allocation24_spill] sm:$0xff]  ;;  %v5728_v62 = vld [vmem:[#allocation25_spill] sm:$0xff]  ;;  %v5729_v0 = vld [vmem:[#allocation26_spill] sm:$0xff] }
 0x191   :  { %v2554_v27 = vpop.eup %2553  ;;  %2565 = vpow2.f32 %v1567_v33  ;;  %v4758_v40 = vmul.f32 %v5719_v7, %v1618_v10  ;;  %v4761_v30 = vmul.f32 %v5720_v48, %v1618_v10  ;;  %v4764_v32 = vmul.f32 %v5721_v46, %v1618_v10  ;;  %v5731_v61 = vld [vmem:[#allocation28_spill] sm:$0xff]  ;;  %v5732_v46 = vld [vmem:[#allocation35_spill] sm:$0xff] }
 0x192   :  { %v2556_v12 = vpop.eup %2555  ;;  %2567 = vpow2.f32 %v1569_v21  ;;  %v4767_v5 = vmul.f32 %v5722_v50, %v1618_v10  ;;  %v4770_v13 = vmul.f32 %v5723_v14, %v1618_v10  ;;  %v4773_v39 = vmul.f32 %v5724_v29, %v1618_v10  ;;  %v5730_v21 = vld [vmem:[#allocation27_spill] sm:$0xff] }
 0x193   :  { %v2558_v63 = vpop.eup %2557  ;;  %2569 = vpow2.f32 %v1571_v37  ;;  %v4776_v58 = vmul.f32 %v5725_v18, %v1618_v10  ;;  %v4779_v41 = vmul.f32 %v5726_v1, %v1618_v10  ;;  %v4782_v52 = vmul.f32 %v5727_v26, %v1618_v10  ;;  %v5734_v18 = vld [vmem:[#allocation37_spill] sm:$0xff]  ;;  %v5735_v26 = vld [vmem:[#allocation38_spill] sm:$0xff] }
 0x194   :  { %v2560_v55 = vpop.eup %2559  ;;  %2571 = vpow2.f32 %v1573_v24  ;;  %v1585_v4 = vadd.f32 1.0, %v2552_v22  ;;  %v4785_v54 = vmul.f32 %v5728_v62, %v1618_v10  ;;  %v1636_v49 = vstv %s4744_s13  ;;  %v5736_v62 = vld [vmem:[#allocation39_spill] sm:$0xff] }
 0x195   :  { %v2562_v59 = vpop.eup %2561  ;;  %2573 = vpow2.f32 %v1575_v20  ;;  %v1586_v42 = vadd.f32 1.0, %v2554_v27  ;;  %v4789_v33 = vmul.f32 %v5729_v0, %v1618_v10  ;;  %v4792_v36 = vmul.f32 %v5730_v21, %v1618_v10  ;;  %v5733_v27 = vld [vmem:[#allocation36_spill] sm:$0xff] }
 0x196   :  { %v2564_v37 = vpop.eup %2563  ;;  %2575 = vpow2.f32 %v1577_v44  ;;  %v1587_v45 = vadd.f32 1.0, %v2556_v12  ;;  %v4795_v7 = vmul.f32 %v5731_v61, %v1618_v10  ;;  %v4798_v24 = vstv %s4749_s16  ;;  %v5737_v21 = vld [vmem:[#allocation40_spill] sm:$0xff] }
 0x197   :  { %v2566_v22 = vpop.eup %2565  ;;  %2577 = vpow2.f32 %v1579_v6  ;;  %v1588_v48 = vadd.f32 1.0, %v2558_v63  ;;  %v1637_v20 = vmul.f32 %v5732_v46, %v1636_v49  ;;  %v1638_v50 = vmul.f32 %v5733_v27, %v1636_v49  ;;  %v5738_v46 = vld [vmem:[#allocation41_spill] sm:$0xff]  ;;  %v5739_v27 = vld [vmem:[#allocation42_spill] sm:$0xff] }
 0x198   :  { %v2568_v14 = vpop.eup %2567  ;;  %2579 = vpow2.f32 %v1581_v9  ;;  %v1589_v29 = vadd.f32 1.0, %v2560_v55  ;;  %v1639_v1 = vmul.f32 %v5734_v18, %v1636_v49  ;;  %v1640_v44 = vmul.f32 %v5735_v26, %v1636_v49 }
 0x199   :  { %v2570_v12 = vpop.eup %2569  ;;  %2581 = vpow2.f32 %v1583_v57  ;;  %v1590_v10 = vadd.f32 1.0, %v2562_v59  ;;  %v1641_v0 = vmul.f32 %v5736_v62, %v1636_v49  ;;  %v1642_v61 = vmul.f32 %v5737_v21, %v1636_v49  ;;  %v5743_v62 = vld [vmem:[#allocation55_spill] sm:$0xff] }
 0x19a   :  { %v2572_v6 = vpop.eup %2571  ;;  %v1591_v63 = vadd.f32 1.0, %v2564_v37  ;;  %v1592_v34 = vadd.f32 1.0, %v2566_v22  ;;  %v1643_v51 = vmul.f32 %v5738_v46, %v1636_v49  ;;  %v1644_v43 = vmul.f32 %v5739_v27, %v1636_v49  ;;  %v5745_v46 = vld [vmem:[#allocation5_spill] sm:$0xff] }
 0x19b   :  { %v2574_v9 = vpop.eup %2573  ;;  %v1593_v55 = vadd.f32 1.0, %v2568_v14  ;;  %v1645_v18 = vmul.f32 %v5740_v15, %v1636_v49  ;;  %v1646_v26 = vmul.f32 %v5741_v38, %v1636_v49  ;;  %v1647_v57 = vmul.f32 %v5742_v3, %v1636_v49  ;;  %v5746_v38 = vld [vmem:[#allocation10_spill] sm:$0xff] }
 0x19c   :  { %v2576_v59 = vpop.eup %2575  ;;  %v1594_v28 = vadd.f32 1.0, %v2570_v12  ;;  %2583 = vrcp.f32 %v1585_v4  ;;  %v1648_v21 = vmul.f32 %v5743_v62, %v1636_v49  ;;  %v1649_v37 = vmul.f32 %v5744_v25, %v1636_v49 }
 0x19d   :  { %v2578_v22 = vpop.eup %2577  ;;  %v1595_v47 = vadd.f32 1.0, %v2572_v6  ;;  %2585 = vrcp.f32 %v1586_v42  ;;  %v1650_v27 = vmul.f32 %v5745_v46, %v1636_v49  ;;  %v1651_v14 = vmul.f32 %v5604_v16, %v1636_v49 }
 0x19e   :  { %v2580_v35 = vpop.eup %2579  ;;  %v1596_v15 = vadd.f32 1.0, %v2574_v9  ;;  %2587 = vrcp.f32 %v1587_v45  ;;  %v1652_v2 = vmul.f32 %v5746_v38, %v1636_v49  ;;  %v1653_v3 = vadd.f32 %v1637_v20, %v4747_v19 }
 0x19f   :  { %v2582_v12 = vpop.eup %2581  ;;  %v1597_v4 = vadd.f32 1.0, %v2576_v59  ;;  %2589 = vrcp.f32 %v1588_v48  ;;  %v1654_v62 = vadd.f32 %v1638_v50, %v4752_v8  ;;  %v1655_v25 = vadd.f32 %v1639_v1, %v4755_v56 }
 0x1a0   :  { %v1598_v6 = vadd.f32 1.0, %v2578_v22  ;;  %2591 = vrcp.f32 %v1589_v29  ;;  %v1656_v42 = vadd.f32 %v1640_v44, %v4758_v40  ;;  %v1657_v16 = vadd.f32 %v1641_v0, %v4761_v30  ;;  %v5751_v29 = vld [vmem:[#allocation34_spill] sm:$0xff]  ;;  %v5752_v44 = vld [vmem:[#allocation43_spill] sm:$0xff]  ;;  %v5753_v0 = vld [vmem:[#allocation44_spill] sm:$0xff] }
 0x1a1   :  { %v1599_v46 = vadd.f32 1.0, %v2580_v35  ;;  %2593 = vrcp.f32 %v1590_v10  ;;  %v1658_v45 = vadd.f32 %v1642_v61, %v4764_v32  ;;  %v1659_v49 = vadd.f32 %v1643_v51, %v4767_v5 }
 0x1a2   :  { %v4823_v19 = vpop.eup %2583  ;;  %v1600_v20 = vadd.f32 1.0, %v2582_v12  ;;  %2595 = vrcp.f32 %v1591_v63  ;;  %v1660_v8 = vadd.f32 %v1644_v43, %v4770_v13  ;;  %v1661_v56 = vadd.f32 %v1645_v18, %v4773_v39  ;;  %v5754_v63 = vld [vmem:[#allocation46_spill] sm:$0xff]  ;;  %v5755_v18 = vld [vmem:[#allocation47_spill] sm:$0xff] }
 0x1a3   :  { %v4829_v48 = vpop.eup %2585  ;;  %2597 = vrcp.f32 %v1592_v34  ;;  %v1662_v35 = vadd.f32 %v1646_v26, %v4776_v58  ;;  %v1663_v40 = vadd.f32 %v1647_v57, %v4779_v41  ;;  %v1664_v30 = vadd.f32 %v1648_v21, %v4782_v52  ;;  %v5756_v57 = vld [vmem:[#allocation48_spill] sm:$0xff] }
 0x1a4   :  { %v4834_v51 = vpop.eup %2587  ;;  %2599 = vrcp.f32 %v1593_v55  ;;  %v1665_v32 = vadd.f32 %v1649_v37, %v4785_v54  ;;  %v1666_v43 = vadd.f32 %v1650_v27, %v4789_v33  ;;  %v1667_v5 = vadd.f32 %v1651_v14, %v4792_v36 }
 0x1a5   :  { %v4839_v13 = vpop.eup %2589  ;;  %2601 = vrcp.f32 %v1594_v28  ;;  %v1668_v34 = vadd.f32 %v1652_v2, %v4795_v7  ;;  %v1671_v39 = vmul.f32 %v4052_v53, %v4798_v24  ;;  %v1672_v58 = vmul.f32 %v4058_v11, %v4798_v24  ;;  %v5747_v11 = vld [vmem:[#allocation30_spill] sm:$0xff] }
 0x1a6   :  { %v4846_v41 = vpop.eup %2591  ;;  %2603 = vrcp.f32 %v1595_v47  ;;  %v1673_v52 = vmul.f32 %v4062_v60, %v4798_v24  ;;  %v1674_v54 = vmul.f32 %v4067_v31, %v4798_v24  ;;  %v1675_v28 = vmul.f32 %v4072_v23, %v4798_v24  ;;  %v5748_v47 = vld [vmem:[#allocation31_spill] sm:$0xff]  ;;  %v5749_v31 = vld [vmem:[#allocation32_spill] sm:$0xff]  ;;  %v5750_v23 = vld [vmem:[#allocation33_spill] sm:$0xff] }
 0x1a7   :  { %v4854_v33 = vpop.eup %2593  ;;  %2605 = vrcp.f32 %v1596_v15  ;;  %v1676_v53 = vmul.f32 %v5611_v17, %v4798_v24  ;;  %v1677_v2 = vmul.f32 %v5747_v11, %v4798_v24  ;;  %v1678_v36 = vmul.f32 %v5748_v47, %v4798_v24 }
 0x1a8   :  { %v4862_v60 = vpop.eup %2595  ;;  %2607 = vrcp.f32 %v1597_v4  ;;  %v1679_v7 = vmul.f32 %v5749_v31, %v4798_v24  ;;  %v1680_v50 = vmul.f32 %v5750_v23, %v4798_v24  ;;  %v1681_v1 = vmul.f32 %v5751_v29, %v4798_v24  ;;  %v5759_v4 = vld [vmem:[#allocation50_spill] sm:$0xff]  ;;  %v5762_v29 = vld [vmem:[#allocation52_spill] sm:$0xff] }
 0x1a9   :  { %v4870_v17 = vpop.eup %2597  ;;  %2609 = vrcp.f32 %v1598_v6  ;;  %v1682_v10 = vmul.f32 %v5752_v44, %v4798_v24  ;;  %v1683_v61 = vmul.f32 %v5753_v0, %v4798_v24  ;;  %v1684_v9 = vmul.f32 %v5754_v63, %v4798_v24  ;;  %v5766_v44 = vld [vmem:[#allocation56_spill] sm:$0xff] }
 0x1aa   :  { %v4878_v55 = vpop.eup %2599  ;;  %2611 = vrcp.f32 %v1599_v46  ;;  %v1685_v26 = vmul.f32 %v5755_v18, %v4798_v24  ;;  %v1686_v59 = vmul.f32 %v5756_v57, %v4798_v24  ;;  %v1704_v21 = vstv %s4827_s17  ;;  %v5760_v46 = vld [vmem:[#allocation51_spill] sm:$0xff]  ;;  %v5775_v18 = vld [vmem:[#allocation21_spill] sm:$0xff]  ;;  %v5776_v57 = vld [vmem:[#allocation60_spill] sm:$0xff] }
 0x1ab   :  { %v4885_v37 = vpop.eup %2601  ;;  %2613 = vrcp.f32 %v1600_v20  ;;  %v1687_v22 = vadd.f32 %v1671_v39, %v1653_v3  ;;  %v1688_v27 = vadd.f32 %v1672_v58, %v1654_v62  ;;  %v1689_v14 = vadd.f32 %v1673_v52, %v1655_v25  ;;  %v5764_v58 = vld [vmem:[#allocation54_spill] sm:$0xff] }
 0x1ac   :  { %5757 = vst [vmem:[#allocation11_spill] sm:$0xff] %v4885_v37  ;;  %v4889_v15 = vpop.eup %2603  ;;  %v1690_v38 = vadd.f32 %v1674_v54, %v1656_v42  ;;  %v1691_v12 = vadd.f32 %v1675_v28, %v1657_v16  ;;  %v1705_v6 = vmul.f32 %v5759_v4, %v1704_v21  ;;  %v1706_v11 = vmul.f32 %v5760_v46, %v1704_v21 }
 0x1ad   :  { %5758 = vst [vmem:[#allocation58_spill] sm:$0xff] %v4889_v15  ;;  %v4893_v47 = vpop.eup %2605  ;;  %v1692_v24 = vadd.f32 %v1676_v53, %v1658_v45  ;;  %v1693_v31 = vadd.f32 %v1677_v2, %v1659_v49  ;;  %v1694_v23 = vadd.f32 %v1678_v36, %v1660_v8  ;;  %v1707_v20 = vmul.f32 %v5762_v29, %v1704_v21  ;;  %v5768_v49 = vld [vmem:[#allocation59_spill] sm:$0xff]  ;;  %v5778_v29 = vld [vmem:[#allocation62_spill] sm:$0xff]  ;;  %v5810_v15 = vld [vmem:[#allocation92_spill] sm:$0xff] }
 0x1ae   :  { %5761 = vst [vmem:[#allocation12_spill] sm:$0xff] %v4893_v47  ;;  %v4896_v3 = vpop.eup %2607  ;;  %v1695_v62 = vadd.f32 %v1679_v7, %v1661_v56  ;;  %v1696_v25 = vadd.f32 %v1680_v50, %v1662_v35  ;;  %v1697_v39 = vadd.f32 %v1681_v1, %v1663_v40  ;;  %v1708_v52 = vmul.f32 %v5764_v58, %v1704_v21  ;;  %v5770_v40 = vld [vmem:[#allocation6_spill] sm:$0xff]  ;;  %v5771_v7 = vld [vmem:[#allocation8_spill] sm:$0xff] }
 0x1af   :  { %5763 = vst [vmem:[#allocation13_spill] sm:$0xff] %v4896_v3  ;;  %v4899_v42 = vpop.eup %2609  ;;  %v1698_v16 = vadd.f32 %v1682_v10, %v1664_v30  ;;  %v1699_v54 = vadd.f32 %v1683_v61, %v1665_v32  ;;  %v1700_v28 = vadd.f32 %v1684_v9, %v1666_v43  ;;  %v1709_v0 = vmul.f32 %v5766_v44, %v1704_v21  ;;  %v5772_v32 = vld [vmem:[#allocation9_spill] sm:$0xff]  ;;  %v5773_v1 = vld [vmem:[#allocation18_spill] sm:$0xff]  ;;  %v5774_v61 = vld [vmem:[#allocation19_spill] sm:$0xff] }
 0x1b0   :  { %5765 = vst [vmem:[#allocation14_spill] sm:$0xff] %v4899_v42  ;;  %v4902_v63 = vpop.eup %2611  ;;  %v1701_v45 = vadd.f32 %v1685_v26, %v1667_v5  ;;  %v1710_v8 = vmul.f32 %v5768_v49, %v1704_v21  ;;  %v1721_v53 = vadd.f32 %v1705_v6, %v1687_v22  ;;  %v1722_v2 = vadd.f32 %v1706_v11, %v1688_v27  ;;  %v5777_v6 = vld [vmem:[#allocation61_spill] sm:$0xff] }
 0x1b1   :  { %5767 = vst [vmem:[#allocation15_spill] sm:$0xff] %v4902_v63  ;;  %v4905_v56 = vpop.eup %2613  ;;  %v1702_v35 = vadd.f32 %v1686_v59, %v1668_v34  ;;  %v1711_v36 = vmul.f32 %v5770_v40, %v1704_v21  ;;  %v1712_v50 = vmul.f32 %v5771_v7, %v1704_v21  ;;  %v1723_v30 = vadd.f32 %v1707_v20, %v1689_v14  ;;  %v5779_v20 = vld [vmem:[#allocation63_spill] sm:$0xff]  ;;  %v5807_v42 = vld [vmem:[#allocation89_spill] sm:$0xff] }
 0x1b2   :  { %5769 = vst [vmem:[#allocation16_spill] sm:$0xff] %v4905_v56  ;;  %v1713_v43 = vmul.f32 %v5772_v32, %v1704_v21  ;;  %v1714_v10 = vmul.f32 %v5773_v1, %v1704_v21  ;;  %v1715_v9 = vmul.f32 %v5774_v61, %v1704_v21  ;;  %v1724_v5 = vadd.f32 %v1708_v52, %v1690_v38  ;;  %v5804_v56 = vld [vmem:[#allocation86_spill] sm:$0xff]  ;;  %v5805_v63 = vld [vmem:[#allocation87_spill] sm:$0xff] }
 0x1b3   :  { %v1716_v26 = vmul.f32 %v5775_v18, %v1704_v21  ;;  %v1717_v22 = vmul.f32 %v5776_v57, %v1704_v21  ;;  %v1725_v27 = vadd.f32 %v1709_v0, %v1691_v12  ;;  %v1738_v4 = vstv %s4887_s18 }
 0x1b4   :  { %v1718_v34 = vmul.f32 %v5777_v6, %v1704_v21  ;;  %v1726_v59 = vadd.f32 %v1710_v8, %v1692_v24  ;;  %v1739_v46 = vadd.f32 %v1738_v4, %v1721_v53  ;;  %v1740_v11 = vadd.f32 %v1738_v4, %v1722_v2 }
 0x1b5   :  { %v1719_v14 = vmul.f32 %v5778_v29, %v1704_v21  ;;  %v1720_v58 = vmul.f32 %v5779_v20, %v1704_v21  ;;  %v1727_v44 = vadd.f32 %v1711_v36, %v1693_v31  ;;  %v1741_v49 = vadd.f32 %v1738_v4, %v1723_v30 }
 0x1b6   :  { %v1728_v40 = vadd.f32 %v1712_v50, %v1694_v23  ;;  %v1729_v7 = vadd.f32 %v1713_v43, %v1695_v62  ;;  %v1730_v38 = vadd.f32 %v1714_v10, %v1696_v25  ;;  %v1742_v52 = vadd.f32 %v1738_v4, %v1724_v5 }
 0x1b7   :  { %v1731_v32 = vadd.f32 %v1715_v9, %v1697_v39  ;;  %v1732_v1 = vadd.f32 %v1716_v26, %v1698_v16  ;;  %v1733_v61 = vadd.f32 %v1717_v22, %v1699_v54  ;;  %v1743_v12 = vadd.f32 %v1738_v4, %v1725_v27 }
 0x1b8   :  { %v1734_v0 = vadd.f32 %v1718_v34, %v1700_v28  ;;  %v1744_v18 = vadd.f32 %v1738_v4, %v1726_v59  ;;  %v1755_v57 = vsub.f32 0.0, %v1739_v46  ;;  %v1756_v24 = vsub.f32 0.0, %v1740_v11 }
 0x1b9   :  { %v1735_v8 = vadd.f32 %v1719_v14, %v1701_v45  ;;  %v1736_v53 = vadd.f32 %v1720_v58, %v1702_v35  ;;  %v1745_v2 = vadd.f32 %v1738_v4, %v1727_v44  ;;  %v1757_v6 = vsub.f32 0.0, %v1741_v49 }
 0x1ba   :  { %v1746_v29 = vadd.f32 %v1738_v4, %v1728_v40  ;;  %v1747_v21 = vadd.f32 %v1738_v4, %v1729_v7  ;;  %v1748_v31 = vadd.f32 %v1738_v4, %v1730_v38  ;;  %v1758_v36 = vsub.f32 0.0, %v1742_v52 }
 0x1bb   :  { %v1749_v23 = vadd.f32 %v1738_v4, %v1731_v32  ;;  %v1750_v62 = vadd.f32 %v1738_v4, %v1732_v1  ;;  %v1751_v25 = vadd.f32 %v1738_v4, %v1733_v61  ;;  %v1759_v39 = vsub.f32 0.0, %v1743_v12 }
 0x1bc   :  { %v1752_v16 = vadd.f32 %v1738_v4, %v1734_v0  ;;  %v1760_v54 = vsub.f32 0.0, %v1744_v18  ;;  %v1771_v28 = vmul.f32 1.442695, %v1755_v57  ;;  %v1773_v50 = vmul.f32 1.442695, %v1756_v24  ;;  %v5780_v0 = vld [vmem:[#allocation7_spill] sm:$0xff] }
 0x1bd   :  { %v1753_v30 = vadd.f32 %v1738_v4, %v1735_v8  ;;  %v1754_v43 = vadd.f32 %v1738_v4, %v1736_v53  ;;  %v1761_v45 = vsub.f32 0.0, %v1745_v2  ;;  %v1775_v35 = vmul.f32 1.442695, %v1757_v6  ;;  %v5781_v24 = vld [vmem:[#allocation64_spill] sm:$0xff]  ;;  %v5782_v53 = vld [vmem:[#allocation65_spill] sm:$0xff]  ;;  %v5783_v6 = vld [vmem:[#allocation66_spill] sm:$0xff] }
 0x1be   :  { %v1762_v10 = vsub.f32 0.0, %v1746_v29  ;;  %v1763_v9 = vsub.f32 0.0, %v1747_v21  ;;  %v1764_v5 = vsub.f32 0.0, %v1748_v31  ;;  %v1777_v26 = vmul.f32 1.442695, %v1758_v36  ;;  %v5784_v31 = vld [vmem:[#allocation67_spill] sm:$0xff] }
 0x1bf   :  { %v1765_v22 = vsub.f32 0.0, %v1749_v23  ;;  %v1766_v27 = vsub.f32 0.0, %v1750_v62  ;;  %2615 = vpow2.f32 %v1771_v28  ;;  %v1779_v34 = vmul.f32 1.442695, %v1759_v39  ;;  %v5785_v23 = vld [vmem:[#allocation68_spill] sm:$0xff] }
 0x1c0   :  { %v1767_v59 = vsub.f32 0.0, %v1751_v25  ;;  %v1768_v46 = vsub.f32 0.0, %v1752_v16  ;;  %2617 = vpow2.f32 %v1773_v50  ;;  %v1781_v11 = vmul.f32 1.442695, %v1760_v54  ;;  %v5786_v25 = vld [vmem:[#allocation29_spill] sm:$0xff]  ;;  %v5788_v50 = vld [vmem:[#allocation70_spill] sm:$0xff] }
 0x1c1   :  { %v1769_v14 = vsub.f32 0.0, %v1753_v30  ;;  %v1770_v20 = vsub.f32 0.0, %v1754_v43  ;;  %2619 = vpow2.f32 %v1775_v35  ;;  %v1783_v58 = vmul.f32 1.442695, %v1761_v45  ;;  %v5787_v54 = vld [vmem:[#allocation69_spill] sm:$0xff]  ;;  %v5789_v43 = vld [vmem:[#allocation71_spill] sm:$0xff] }
 0x1c2   :  { %2621 = vpow2.f32 %v1777_v26  ;;  %v1785_v4 = vmul.f32 1.442695, %v1762_v10  ;;  %v1836_v44 = vstv %s4918_s0  ;;  %v1787_v49 = vmul.f32 1.442695, %v1763_v9  ;;  %v5790_v9 = vld [vmem:[#allocation72_spill] sm:$0xff] }
 0x1c3   :  { %2623 = vpow2.f32 %v1779_v34  ;;  %v1789_v40 = vmul.f32 1.442695, %v1764_v5  ;;  %v1791_v7 = vmul.f32 1.442695, %v1765_v22  ;;  %v1793_v38 = vmul.f32 1.442695, %v1766_v27 }
 0x1c4   :  { %2625 = vpow2.f32 %v1781_v11  ;;  %v1795_v52 = vmul.f32 1.442695, %v1767_v59  ;;  %v1797_v32 = vmul.f32 1.442695, %v1768_v46  ;;  %v1799_v61 = vmul.f32 1.442695, %v1769_v14 }
 0x1c5   :  { %v2616_v1 = vpop.eup %2615  ;;  %2627 = vpow2.f32 %v1783_v58  ;;  %v1801_v12 = vmul.f32 1.442695, %v1770_v20  ;;  %v4924_v18 = vmul.f32 %v5780_v0, %v1836_v44  ;;  %v4927_v8 = vmul.f32 %v5781_v24, %v1836_v44  ;;  %v5791_v34 = vld [vmem:[#allocation73_spill] sm:$0xff]  ;;  %v5792_v46 = vld [vmem:[#allocation74_spill] sm:$0xff]  ;;  %v5793_v58 = vld [vmem:[#allocation75_spill] sm:$0xff] }
 0x1c6   :  { %v2618_v57 = vpop.eup %2617  ;;  %2629 = vpow2.f32 %v1785_v4  ;;  %v4930_v2 = vmul.f32 %v5782_v53, %v1836_v44  ;;  %v4933_v29 = vmul.f32 %v5783_v6, %v1836_v44  ;;  %v4936_v36 = vmul.f32 %v5784_v31, %v1836_v44  ;;  %v5797_v31 = vld [vmem:[#allocation79_spill] sm:$0xff] }
 0x1c7   :  { %v2620_v21 = vpop.eup %2619  ;;  %2631 = vpow2.f32 %v1787_v49  ;;  %v4939_v62 = vmul.f32 %v5785_v23, %v1836_v44  ;;  %v4942_v39 = vmul.f32 %v5786_v25, %v1836_v44  ;;  %v4945_v28 = vmul.f32 %v5787_v54, %v1836_v44  ;;  %v5794_v49 = vld [vmem:[#allocation76_spill] sm:$0xff] }
 0x1c8   :  { %v2622_v16 = vpop.eup %2621  ;;  %2633 = vpow2.f32 %v1789_v40  ;;  %v4948_v30 = vmul.f32 %v5788_v50, %v1836_v44  ;;  %v4951_v45 = vmul.f32 %v5789_v43, %v1836_v44  ;;  %v1803_v10 = vadd.f32 1.0, %v2616_v1  ;;  %v5799_v50 = vld [vmem:[#allocation81_spill] sm:$0xff] }
 0x1c9   :  { %v2624_v35 = vpop.eup %2623  ;;  %2635 = vpow2.f32 %v1791_v7  ;;  %v4954_v5 = vmul.f32 %v5790_v9, %v1836_v44  ;;  %v1854_v26 = vstv %s4920_s19  ;;  %v1804_v27 = vadd.f32 1.0, %v2618_v57  ;;  %v5796_v57 = vld [vmem:[#allocation78_spill] sm:$0xff] }
 0x1ca   :  { %v2626_v22 = vpop.eup %2625  ;;  %2637 = vpow2.f32 %v1793_v38  ;;  %v4958_v59 = vmul.f32 %v5791_v34, %v1836_v44  ;;  %v4961_v11 = vmul.f32 %v5792_v46, %v1836_v44  ;;  %v1805_v20 = vadd.f32 1.0, %v2620_v21  ;;  %v5795_v38 = vld [vmem:[#allocation77_spill] sm:$0xff]  ;;  %v5798_v21 = vld [vmem:[#allocation80_spill] sm:$0xff]  ;;  %v5800_v9 = vld [vmem:[#allocation82_spill] sm:$0xff] }
 0x1cb   :  { %v2628_v14 = vpop.eup %2627  ;;  %2639 = vpow2.f32 %v1795_v52  ;;  %v4964_v4 = vmul.f32 %v5793_v58, %v1836_v44  ;;  %v4967_v40 = vmul.f32 %v5794_v49, %v1836_v44  ;;  %v1806_v1 = vadd.f32 1.0, %v2622_v16  ;;  %v5802_v58 = vld [vmem:[#allocation84_spill] sm:$0xff] }
 0x1cc   :  { %v2630_v7 = vpop.eup %2629  ;;  %2641 = vpow2.f32 %v1797_v32  ;;  %v4970_v0 = vmul.f32 %v5795_v38, %v1836_v44  ;;  %v1855_v24 = vmul.f32 %v5796_v57, %v1854_v26  ;;  %v1807_v6 = vadd.f32 1.0, %v2624_v35  ;;  %v5801_v44 = vld [vmem:[#allocation83_spill] sm:$0xff]  ;;  %v5803_v38 = vld [vmem:[#allocation85_spill] sm:$0xff] }
 0x1cd   :  { %v2632_v53 = vpop.eup %2631  ;;  %2643 = vpow2.f32 %v1799_v61  ;;  %v1856_v52 = vmul.f32 %v5797_v31, %v1854_v26  ;;  %v1857_v23 = vmul.f32 %v5798_v21, %v1854_v26  ;;  %v1808_v54 = vadd.f32 1.0, %v2626_v22 }
 0x1ce   :  { %v2634_v25 = vpop.eup %2633  ;;  %2645 = vpow2.f32 %v1801_v12  ;;  %v1858_v43 = vmul.f32 %v5799_v50, %v1854_v26  ;;  %v1859_v32 = vmul.f32 %v5800_v9, %v1854_v26  ;;  %v1809_v34 = vadd.f32 1.0, %v2628_v14  ;;  %v5806_v9 = vld [vmem:[#allocation88_spill] sm:$0xff] }
 0x1cf   :  { %v2636_v16 = vpop.eup %2635  ;;  %v1860_v46 = vmul.f32 %v5801_v44, %v1854_v26  ;;  %v1861_v49 = vmul.f32 %v5802_v58, %v1854_v26  ;;  %v1862_v61 = vmul.f32 %v5803_v38, %v1854_v26  ;;  %v1810_v57 = vadd.f32 1.0, %v2630_v7  ;;  %v5808_v38 = vld [vmem:[#allocation90_spill] sm:$0xff]  ;;  %v5809_v7 = vld [vmem:[#allocation91_spill] sm:$0xff] }
 0x1d0   :  { %v2638_v35 = vpop.eup %2637  ;;  %v1811_v31 = vadd.f32 1.0, %v2632_v53  ;;  %v1863_v21 = vmul.f32 %v5804_v56, %v1854_v26  ;;  %v1864_v12 = vmul.f32 %v5805_v63, %v1854_v26  ;;  %v1812_v50 = vadd.f32 1.0, %v2634_v25  ;;  %v5811_v25 = vld [vmem:[#allocation93_spill] sm:$0xff] }
 0x1d1   :  { %v2640_v22 = vpop.eup %2639  ;;  %2647 = vrcp.f32 %v1803_v10  ;;  %v1865_v14 = vmul.f32 %v5806_v9, %v1854_v26  ;;  %v1866_v44 = vmul.f32 %v5807_v42, %v1854_v26  ;;  %v1813_v58 = vadd.f32 1.0, %v2636_v16 }
 0x1d2   :  { %v2642_v3 = vpop.eup %2641  ;;  %2649 = vrcp.f32 %v1804_v27  ;;  %v1867_v47 = vmul.f32 %v5808_v38, %v1854_v26  ;;  %v1868_v53 = vmul.f32 %v5809_v7, %v1854_v26  ;;  %v1814_v63 = vadd.f32 1.0, %v2638_v35 }
 0x1d3   :  { %v2644_v56 = vpop.eup %2643  ;;  %2651 = vrcp.f32 %v1805_v20  ;;  %v1869_v37 = vmul.f32 %v5810_v15, %v1854_v26  ;;  %v1870_v10 = vmul.f32 %v5811_v25, %v1854_v26  ;;  %v1815_v42 = vadd.f32 1.0, %v2640_v22 }
 0x1d4   :  { %v2646_v9 = vpop.eup %2645  ;;  %2653 = vrcp.f32 %v1806_v1  ;;  %v1871_v27 = vadd.f32 %v1855_v24, %v4924_v18  ;;  %v1872_v16 = vadd.f32 %v1856_v52, %v4927_v8  ;;  %v1816_v38 = vadd.f32 1.0, %v2642_v3 }
 0x1d5   :  { %2655 = vrcp.f32 %v1807_v6  ;;  %v1873_v7 = vadd.f32 %v1857_v23, %v4930_v2  ;;  %v1874_v20 = vadd.f32 %v1858_v43, %v4933_v29  ;;  %v1817_v35 = vadd.f32 1.0, %v2644_v56 }
 0x1d6   :  { %2657 = vrcp.f32 %v1808_v54  ;;  %v4999_v15 = vadd.f32 %v1859_v32, %v4936_v36  ;;  %v5002_v26 = vadd.f32 %v1860_v46, %v4939_v62  ;;  %v1818_v22 = vadd.f32 1.0, %v2646_v9 }
 0x1d7   :  { %v2648_v1 = vpop.eup %2647  ;;  %2659 = vrcp.f32 %v1809_v34  ;;  %v1877_v18 = vadd.f32 %v1861_v49, %v4942_v39  ;;  %v1878_v3 = vadd.f32 %v1862_v61, %v4945_v28  ;;  %v1879_v2 = vadd.f32 %v1863_v21, %v4948_v30  ;;  %v5812_v49 = vld [vmem:[#allocation11_spill] sm:$0xff]  ;;  %v5815_v21 = vld [vmem:[#allocation13_spill] sm:$0xff] }
 0x1d8   :  { %v2650_v8 = vpop.eup %2649  ;;  %2661 = vrcp.f32 %v1810_v57  ;;  %v1880_v29 = vadd.f32 %v1864_v12, %v4951_v45  ;;  %v1888_v36 = vstv %s4982_s20  ;;  %v1881_v62 = vadd.f32 %v1865_v14, %v4954_v5  ;;  %v5814_v57 = vld [vmem:[#allocation12_spill] sm:$0xff] }
 0x1d9   :  { %v2652_v24 = vpop.eup %2651  ;;  %2663 = vrcp.f32 %v1811_v31  ;;  %v5011_v6 = vadd.f32 %v1866_v44, %v4958_v59  ;;  %v5014_v39 = vadd.f32 %v1867_v47, %v4961_v11  ;;  %v5017_v52 = vadd.f32 %v1868_v53, %v4964_v4  ;;  %v5818_v44 = vld [vmem:[#allocation16_spill] sm:$0xff] }
 0x1da   :  { %v2654_v28 = vpop.eup %2653  ;;  %2665 = vrcp.f32 %v1812_v50  ;;  %v5020_v30 = vadd.f32 %v1869_v37, %v4967_v40  ;;  %v5023_v45 = vadd.f32 %v1870_v10, %v4970_v0  ;;  %v1889_v5 = vmul.f32 %v4823_v19, %v1888_v36  ;;  %v5817_v50 = vld [vmem:[#allocation15_spill] sm:$0xff] }
 0x1db   :  { %v2656_v23 = vpop.eup %2655  ;;  %2667 = vrcp.f32 %v1813_v58  ;;  %v5027_v59 = vstv %s4988_s21  ;;  %v5030_v54 = vstv %s4992_s22  ;;  %v1890_v11 = vmul.f32 %v4829_v48, %v1888_v36 }
 0x1dc   :  { %v2658_v47 = vpop.eup %2657  ;;  %2669 = vrcp.f32 %v1814_v63  ;;  %v1891_v4 = vmul.f32 %v4834_v51, %v1888_v36  ;;  %v1892_v37 = vmul.f32 %v4839_v13, %v1888_v36  ;;  %v1893_v0 = vmul.f32 %v4846_v41, %v1888_v36  ;;  %v5813_v51 = vld [vmem:[#allocation58_spill] sm:$0xff] }
 0x1dd   :  { %v2660_v40 = vpop.eup %2659  ;;  %2671 = vrcp.f32 %v1815_v42  ;;  %v1894_v43 = vmul.f32 %v4854_v33, %v1888_v36  ;;  %v1895_v19 = vmul.f32 %v4862_v60, %v1888_v36  ;;  %v1896_v34 = vmul.f32 %v4870_v17, %v1888_v36  ;;  %v5816_v33 = vld [vmem:[#allocation14_spill] sm:$0xff] }
 0x1de   :  { %v2662_v32 = vpop.eup %2661  ;;  %2673 = vrcp.f32 %v1816_v38  ;;  %v1897_v46 = vmul.f32 %v4878_v55, %v1888_v36  ;;  %v1898_v48 = vmul.f32 %v5812_v49, %v1888_v36  ;;  %v1899_v13 = vmul.f32 %v5813_v51, %v1888_v36 }
 0x1df   :  { %v2664_v61 = vpop.eup %2663  ;;  %2675 = vrcp.f32 %v1817_v35  ;;  %v1900_v31 = vmul.f32 %v5814_v57, %v1888_v36  ;;  %v1901_v41 = vmul.f32 %v5815_v21, %v1888_v36  ;;  %v1902_v60 = vmul.f32 %v5816_v33, %v1888_v36 }
 0x1e0   :  { %v2666_v12 = vpop.eup %2665  ;;  %2677 = vrcp.f32 %v1818_v22  ;;  %v1903_v14 = vmul.f32 %v5817_v50, %v1888_v36  ;;  %v1904_v17 = vmul.f32 %v5818_v44, %v1888_v36  ;;  %v1905_v55 = vadd.f32 %v1889_v5, %v1871_v27 }
 0x1e1   :  { %v2668_v58 = vpop.eup %2667  ;;  %v1906_v53 = vadd.f32 %v1890_v11, %v1872_v16  ;;  %v1923_v56 = vmul.f32 %v2648_v1, %v5027_v59  ;;  %v1924_v63 = vmul.f32 %v2650_v8, %v5027_v59  ;;  %v1907_v10 = vadd.f32 %v1891_v4, %v1873_v7 }
 0x1e2   :  { %v2670_v25 = vpop.eup %2669  ;;  %v1908_v9 = vadd.f32 %v1892_v37, %v1874_v20  ;;  %v1925_v42 = vmul.f32 %v2652_v24, %v5027_v59  ;;  %v1926_v38 = vmul.f32 %v2654_v28, %v5027_v59  ;;  %v1909_v22 = vadd.f32 %v1893_v0, %v4999_v15 }
 0x1e3   :  { %v2672_v35 = vpop.eup %2671  ;;  %v1910_v49 = vadd.f32 %v1894_v43, %v5002_v26  ;;  %v1911_v36 = vadd.f32 %v1895_v19, %v1877_v18  ;;  %v1927_v27 = vmul.f32 %v2656_v23, %v5027_v59  ;;  %v1912_v5 = vadd.f32 %v1896_v34, %v1878_v3 }
 0x1e4   :  { %v2674_v16 = vpop.eup %2673  ;;  %v1913_v1 = vadd.f32 %v1897_v46, %v1879_v2  ;;  %v1914_v11 = vadd.f32 %v1898_v48, %v1880_v29  ;;  %v1928_v8 = vmul.f32 %v2658_v47, %v5027_v59  ;;  %v1915_v20 = vadd.f32 %v1899_v13, %v1881_v62 }
 0x1e5   :  { %v2676_v7 = vpop.eup %2675  ;;  %v1929_v24 = vmul.f32 %v2660_v40, %v5027_v59  ;;  %v1939_v4 = vadd.f32 %v1923_v56, %v1905_v55  ;;  %v1940_v28 = vadd.f32 %v1924_v63, %v1906_v53  ;;  %v1916_v15 = vadd.f32 %v1900_v31, %v5011_v6 }
 0x1e6   :  { %v2678_v37 = vpop.eup %2677  ;;  %v1930_v26 = vmul.f32 %v2662_v32, %v5027_v59  ;;  %v1941_v18 = vadd.f32 %v1925_v42, %v1907_v10  ;;  %v1942_v0 = vadd.f32 %v1926_v38, %v1908_v9  ;;  %v1917_v23 = vadd.f32 %v1901_v41, %v5014_v39 }
 0x1e7   :  { %v1918_v3 = vadd.f32 %v1902_v60, %v5017_v52  ;;  %v1931_v2 = vmul.f32 %v2664_v61, %v5027_v59  ;;  %v1943_v29 = vadd.f32 %v1927_v27, %v1909_v22  ;;  %v1919_v62 = vadd.f32 %v1903_v14, %v5020_v30 }
 0x1e8   :  { %v1920_v47 = vadd.f32 %v1904_v17, %v5023_v45  ;;  %v1932_v40 = vmul.f32 %v2666_v12, %v5027_v59  ;;  %v1944_v43 = vadd.f32 %v1928_v8, %v1910_v49  ;;  %v1933_v6 = vmul.f32 %v2668_v58, %v5027_v59 }
 0x1e9   :  { %v1945_v19 = vadd.f32 %v1929_v24, %v1911_v36  ;;  %v1957_v32 = vadd.f32 %v5030_v54, %v1939_v4  ;;  %v1958_v34 = vadd.f32 %v5030_v54, %v1940_v28  ;;  %v1934_v39 = vmul.f32 %v2670_v25, %v5027_v59 }
 0x1ea   :  { %v1946_v52 = vadd.f32 %v1930_v26, %v1912_v5  ;;  %v1959_v46 = vadd.f32 %v5030_v54, %v1941_v18  ;;  %v1960_v48 = vadd.f32 %v5030_v54, %v1942_v0  ;;  %v1935_v30 = vmul.f32 %v2672_v35, %v5027_v59 }
 0x1eb   :  { %v1936_v45 = vmul.f32 %v2674_v16, %v5027_v59  ;;  %v1947_v61 = vadd.f32 %v1931_v2, %v1913_v1  ;;  %v1961_v51 = vadd.f32 %v5030_v54, %v1943_v29  ;;  %v1937_v13 = vmul.f32 %v2676_v7, %v5027_v59 }
 0x1ec   :  { %v1938_v57 = vmul.f32 %v2678_v37, %v5027_v59  ;;  %v1948_v31 = vadd.f32 %v1932_v40, %v1914_v11  ;;  %v1962_v21 = vadd.f32 %v5030_v54, %v1944_v43  ;;  %v1949_v41 = vadd.f32 %v1933_v6, %v1915_v20 }
 0x1ed   :  { %v1963_v12 = vadd.f32 %v5030_v54, %v1945_v19  ;;  %v1973_v33 = vsub.f32 0.0, %v1957_v32  ;;  %v1974_v60 = vsub.f32 0.0, %v1958_v34  ;;  %v1950_v50 = vadd.f32 %v1934_v39, %v1916_v15 }
 0x1ee   :  { %v1964_v14 = vadd.f32 %v5030_v54, %v1946_v52  ;;  %v1975_v44 = vsub.f32 0.0, %v1959_v46  ;;  %v1976_v17 = vsub.f32 0.0, %v1960_v48  ;;  %v1951_v58 = vadd.f32 %v1935_v30, %v1917_v23 }
 0x1ef   :  { %v1952_v55 = vadd.f32 %v1936_v45, %v1918_v3  ;;  %v1965_v53 = vadd.f32 %v5030_v54, %v1947_v61  ;;  %v1977_v56 = vsub.f32 0.0, %v1961_v51  ;;  %v1953_v63 = vadd.f32 %v1937_v13, %v1919_v62 }
 0x1f0   :  { %v1954_v59 = vadd.f32 %v1938_v57, %v1920_v47  ;;  %v1966_v25 = vadd.f32 %v5030_v54, %v1948_v31  ;;  %v1978_v10 = vsub.f32 0.0, %v1962_v21  ;;  %v1967_v9 = vadd.f32 %v5030_v54, %v1949_v41 }
 0x1f1   :  { %v1979_v42 = vsub.f32 0.0, %v1963_v12  ;;  %v1989_v38 = vmul.f32 1.442695, %v1973_v33  ;;  %v1991_v35 = vmul.f32 1.442695, %v1974_v60  ;;  %v1968_v22 = vadd.f32 %v5030_v54, %v1950_v50 }
 0x1f2   :  { %v1980_v49 = vsub.f32 0.0, %v1964_v14  ;;  %v1993_v36 = vmul.f32 1.442695, %v1975_v44  ;;  %v1995_v27 = vmul.f32 1.442695, %v1976_v17  ;;  %v1969_v16 = vadd.f32 %v5030_v54, %v1951_v58 }
 0x1f3   :  { %v1981_v5 = vsub.f32 0.0, %v1965_v53  ;;  %2679 = vpow2.f32 %v1989_v38  ;;  %v1997_v1 = vmul.f32 1.442695, %v1977_v56  ;;  %v1970_v11 = vadd.f32 %v5030_v54, %v1952_v55 }
 0x1f4   :  { %v1982_v8 = vsub.f32 0.0, %v1966_v25  ;;  %2681 = vpow2.f32 %v1991_v35  ;;  %v1999_v7 = vmul.f32 1.442695, %v1978_v10  ;;  %v1971_v20 = vadd.f32 %v5030_v54, %v1953_v63 }
 0x1f5   :  { %v1983_v24 = vsub.f32 0.0, %v1967_v9  ;;  %2683 = vpow2.f32 %v1993_v36  ;;  %v2001_v4 = vmul.f32 1.442695, %v1979_v42  ;;  %v1972_v28 = vadd.f32 %v5030_v54, %v1954_v59 }
 0x1f6   :  { %v1984_v37 = vsub.f32 0.0, %v1968_v22  ;;  %2685 = vpow2.f32 %v1995_v27  ;;  %v2003_v15 = vmul.f32 1.442695, %v1980_v49  ;;  %v1985_v26 = vsub.f32 0.0, %v1969_v16 }
 0x1f7   :  { %2687 = vpow2.f32 %v1997_v1  ;;  %v2005_v18 = vmul.f32 1.442695, %v1981_v5  ;;  %v1986_v0 = vsub.f32 0.0, %v1970_v11  ;;  %v2007_v23 = vmul.f32 1.442695, %v1982_v8 }
 0x1f8   :  { %2689 = vpow2.f32 %v1999_v7  ;;  %v1987_v2 = vsub.f32 0.0, %v1971_v20  ;;  %v2009_v29 = vmul.f32 1.442695, %v1983_v24  ;;  %v1988_v47 = vsub.f32 0.0, %v1972_v28 }
 0x1f9   :  { %v2680_v3 = vpop.eup %2679  ;;  %2691 = vpow2.f32 %v2001_v4  ;;  %v2011_v40 = vmul.f32 1.442695, %v1984_v37  ;;  %v2013_v54 = vmul.f32 1.442695, %v1985_v26  ;;  %v2015_v19 = vmul.f32 1.442695, %v1986_v0 }
 0x1fa   :  { %v2682_v62 = vpop.eup %2681  ;;  %2693 = vpow2.f32 %v2003_v15  ;;  %v2017_v34 = vmul.f32 1.442695, %v1987_v2  ;;  %v2019_v52 = vmul.f32 1.442695, %v1988_v47  ;;  %v2021_v48 = vadd.f32 1.0, %v2680_v3 }
 0x1fb   :  { %v2684_v43 = vpop.eup %2683  ;;  %2695 = vpow2.f32 %v2005_v18  ;;  %v2022_v45 = vadd.f32 1.0, %v2682_v62 }
 0x1fc   :  { %v2686_v6 = vpop.eup %2685  ;;  %2697 = vpow2.f32 %v2007_v23  ;;  %v2023_v51 = vadd.f32 1.0, %v2684_v43 }
 0x1fd   :  { %v2688_v32 = vpop.eup %2687  ;;  %2699 = vpow2.f32 %v2009_v29  ;;  %v2024_v57 = vadd.f32 1.0, %v2686_v6 }
 0x1fe   :  { %v2690_v39 = vpop.eup %2689  ;;  %2701 = vpow2.f32 %v2011_v40  ;;  %v2025_v21 = vadd.f32 1.0, %v2688_v32 }
 0x1ff   :  { %v2692_v46 = vpop.eup %2691  ;;  %2703 = vpow2.f32 %v2013_v54  ;;  %v2026_v12 = vadd.f32 1.0, %v2690_v39 }
 0x200   :  { %v2694_v30 = vpop.eup %2693  ;;  %2705 = vpow2.f32 %v2015_v19  ;;  %v2027_v60 = vadd.f32 1.0, %v2692_v46 }
 0x201   :  { %v2696_v61 = vpop.eup %2695  ;;  %2707 = vpow2.f32 %v2017_v34  ;;  %v2028_v14 = vadd.f32 1.0, %v2694_v30 }
 0x202   :  { %v2698_v13 = vpop.eup %2697  ;;  %2709 = vpow2.f32 %v2019_v52  ;;  %v2029_v17 = vadd.f32 1.0, %v2696_v61 }
 0x203   :  { %v2700_v31 = vpop.eup %2699  ;;  %2711 = vrcp.f32 %v2021_v48  ;;  %v2030_v55 = vadd.f32 1.0, %v2698_v13 }
 0x204   :  { %v2702_v41 = vpop.eup %2701  ;;  %2713 = vrcp.f32 %v2022_v45  ;;  %v2031_v56 = vadd.f32 1.0, %v2700_v31 }
 0x205   :  { %v2704_v33 = vpop.eup %2703  ;;  %2715 = vrcp.f32 %v2023_v51  ;;  %v2032_v59 = vadd.f32 1.0, %v2702_v41 }
 0x206   :  { %v2706_v50 = vpop.eup %2705  ;;  %2717 = vrcp.f32 %v2024_v57  ;;  %v2033_v10 = vadd.f32 1.0, %v2704_v33 }
 0x207   :  { %v2708_v44 = vpop.eup %2707  ;;  %2719 = vrcp.f32 %v2025_v21  ;;  %v2034_v42 = vadd.f32 1.0, %v2706_v50 }
 0x208   :  { %v2710_v58 = vpop.eup %2709  ;;  %2721 = vrcp.f32 %v2026_v12  ;;  %v2035_v35 = vadd.f32 1.0, %v2708_v44 }
 0x209   :  { %v2712_v53 = vpop.eup %2711  ;;  %2723 = vrcp.f32 %v2027_v60  ;;  %v2036_v49 = vadd.f32 1.0, %v2710_v58 }
 0x20a   :  { %v2714_v63 = vpop.eup %2713  ;;  %2725 = vrcp.f32 %v2028_v14  ;;  %2053 = vst [vmem:[%s5136_s2] sm:$0xff] %v2712_v53 }
 0x20b   :  { %v2716_v25 = vpop.eup %2715  ;;  %2727 = vrcp.f32 %v2029_v17  ;;  %2054 = vst [vmem:[%s5136_s2 + $0x8] sm:$0xff] %v2714_v63 }
 0x20c   :  { %v2718_v9 = vpop.eup %2717  ;;  %2729 = vrcp.f32 %v2030_v55  ;;  %2055 = vst [vmem:[%s5136_s2 + $0x10] sm:$0xff] %v2716_v25 }
 0x20d   :  { %v2720_v38 = vpop.eup %2719  ;;  %2731 = vrcp.f32 %v2031_v56  ;;  %2056 = vst [vmem:[%s5136_s2 + $0x18] sm:$0xff] %v2718_v9 }
 0x20e   :  { %v2722_v22 = vpop.eup %2721  ;;  %2733 = vrcp.f32 %v2032_v59  ;;  %2057 = vst [vmem:[%s5136_s2 + $0x20] sm:$0xff] %v2720_v38 }
 0x20f   :  { %v2724_v36 = vpop.eup %2723  ;;  %2735 = vrcp.f32 %v2033_v10  ;;  %2058 = vst [vmem:[%s5136_s2 + $0x28] sm:$0xff] %v2722_v22 }
 0x210   :  { %v2726_v27 = vpop.eup %2725  ;;  %2737 = vrcp.f32 %v2034_v42  ;;  %2059 = vst [vmem:[%s5136_s2 + $0x30] sm:$0xff] %v2724_v36 }
 0x211   :  { %v2728_v16 = vpop.eup %2727  ;;  %2739 = vrcp.f32 %v2035_v35  ;;  %2060 = vst [vmem:[%s5136_s2 + $0x38] sm:$0xff] %v2726_v27 }
 0x212   :  { %v2730_v5 = vpop.eup %2729  ;;  %2741 = vrcp.f32 %v2036_v49  ;;  %2061 = vst [vmem:[%s5136_s2 + $0x40] sm:$0xff] %v2728_v16 }
 0x213   :  { %v2732_v1 = vpop.eup %2731  ;;  %2062 = vst [vmem:[%s5136_s2 + $0x48] sm:$0xff] %v2730_v5 }
 0x214   :  { %v2734_v11 = vpop.eup %2733  ;;  %2063 = vst [vmem:[%s5136_s2 + $0x50] sm:$0xff] %v2732_v1 }
 0x215   :  { %v2736_v8 = vpop.eup %2735  ;;  %2064 = vst [vmem:[%s5136_s2 + $0x58] sm:$0xff] %v2734_v11 }
 0x216   :  { %v2738_v7 = vpop.eup %2737  ;;  %2065 = vst [vmem:[%s5136_s2 + $0x60] sm:$0xff] %v2736_v8 }
 0x217   :  { %v2740_v20 = vpop.eup %2739  ;;  %2066 = vst [vmem:[%s5136_s2 + $0x68] sm:$0xff] %v2738_v7 }
 0x218   :  { %v2742_v24 = vpop.eup %2741  ;;  %2067 = vst [vmem:[%s5136_s2 + $0x70] sm:$0xff] %v2740_v20 }
 0x219   :  { %2068 = vst [vmem:[%s5136_s2 + $0x78] sm:$0xff] %v2742_v24 }
 0x21a   :  { %2073 = vsyncpa [#allocation3], 1 }

</bundles_post_ra>
